<compile_context>
chip_gen: v5e
topology: v5e:2x2
jax: 0.10.0
libtpu: 0.0.40
codegen_flags: <defaults>
</compile_context>

<pallas_src>
import math
from functools import partial

import jax
import jax.numpy as jnp
from jax.experimental import pallas as pl
from jax.experimental.pallas import tpu as pltpu


_BN_EPS = 1e-5
_VMEM_LIMIT = 40 * 1024 * 1024  # stays under v7x's 64 MiB/TC; fine on v5e/v6e


def stride_generator(n_s, reverse=False):
    strides = [1, 2] * 10
    return list(reversed(strides[:n_s])) if reverse else strides[:n_s]


def _pick_row_tile(rows):
    """Largest row tile that divides `rows`, is a multiple of 8 and <= 1024."""
    if rows <= 1024:
        return rows
    for t in range(1024, 7, -8):
        if rows % t == 0:
            return t
    return rows


def _conv_stats_kernel(lhs_ref, w_ref, gb_ref, fold_ref, y_ref, aff_ref, *, inv_count):
    """Phase 1: conv (single K = P*9*Cin matmul) + single-pass BN statistics.

    lhs_ref : (TM, P*9*Cin)  bf16  packed im2col (P output pixels per row)
    w_ref   : (P*9*Cin, P*Cout) bf16  block-diagonal conv weight kron(I_P, W)
    gb_ref  : (2, P*Cout) f32  rows = [gamma; beta], tiled over the P pixel slots
    fold_ref: (P*Cout, P*Cout) f32  folds per-slot partials into per-channel totals
    y_ref   : (TM, P*Cout) f32  conv output (lane-dense packed layout)
    aff_ref : (2, P*Cout) f32  running [sum; sumsq]; overwritten with [scale; shift]
                               at the last grid step (resident accumulator block)
    """
    step = pl.program_id(0)

    acc = jnp.dot(lhs_ref[...], w_ref[...], preferred_element_type=jnp.float32)
    y_ref[...] = acc

    @pl.when(step == 0)
    def _():
        aff_ref[...] = jnp.zeros_like(aff_ref)

    part = jnp.concatenate(
        [jnp.sum(acc, axis=0, keepdims=True),
         jnp.sum(acc * acc, axis=0, keepdims=True)],
        axis=0,
    )
    aff_ref[...] = aff_ref[...] + part

    @pl.when(step == pl.num_programs(0) - 1)
    def _():
        # Fold the P pixel-slot partial sums per channel and broadcast them back
        # to the packed lane layout with one tiny MXU matmul (no relayout).
        tot = jnp.dot(aff_ref[...], fold_ref[...], preferred_element_type=jnp.float32)
        gb = gb_ref[...]
        mean = tot[0:1, :] * inv_count
        var = tot[1:2, :] * inv_count - mean * mean  # biased var (BN training mode)
        scale = gb[0:1, :] * jax.lax.rsqrt(var + _BN_EPS)
        shift = gb[1:2, :] - mean * scale
        aff_ref[...] = jnp.concatenate([scale, shift], axis=0)


def _bn_gelu_kernel(y_ref, aff_ref, o_ref):
    """Phase 2: fused BatchNorm affine (one FMA) + exact erf GELU."""
    aff = aff_ref[...]
    z = y_ref[...] * aff[0:1, :] + aff[1:2, :]
    o_ref[...] = 0.5 * z * (1.0 + jax.lax.erf(z * (1.0 / math.sqrt(2.0))))


def convsc_forward(x_nhwc, layer_params, stride):
    """One ConvSC layer: conv3x3(stride, pad=1) + BN(train stats) + GELU. x: (N,H,W,Cin)."""
    w, _bias, gamma, beta = layer_params  # conv bias is exactly cancelled by BN mean subtraction
    n, h, wd, cin = x_nhwc.shape
    cout = w.shape[-1]
    h_out = (h + 2 - 3) // stride + 1
    w_out = (wd + 2 - 3) // stride + 1
    m = n * h_out * w_out
    k = 9 * cin

    # --- host-side layout glue (pure padding/slicing/reshape, bf16 for the MXU) ---
    xp = jnp.pad(x_nhwc, ((0, 0), (1, 1), (1, 1), (0, 0)))
    cols = jnp.concatenate(
        [xp[:, kh:kh + stride * h_out:stride, kw:kw + stride * w_out:stride, :]
         for kh in range(3) for kw in range(3)],
        axis=-1,
    )  # (N, H_out, W_out, 9*Cin), K ordered (kh, kw, c)
    cols = cols.reshape(m, k).astype(jnp.bfloat16)

    # Pack P consecutive output pixels along lanes so every kernel load/store is
    # 128-lane dense (contiguous reinterpretation, no data movement).
    if cout <= 128 and 128 % cout == 0 and m % (128 // cout) == 0:
        p = 128 // cout
    else:
        p = 1
    rows = m // p
    lane = p * cout
    kp = p * k

    lhs = cols.reshape(rows, kp)
    w9 = w.reshape(k, cout).astype(jnp.float32)
    w_bd = jnp.kron(jnp.eye(p, dtype=jnp.float32), w9).astype(jnp.bfloat16)      # (kp, lane)
    fold = jnp.kron(jnp.ones((p, p), jnp.float32), jnp.eye(cout, dtype=jnp.float32))  # (lane, lane)
    gb = jnp.stack([jnp.tile(gamma.astype(jnp.float32), p),
                    jnp.tile(beta.astype(jnp.float32), p)], axis=0)               # (2, lane)

    tm = _pick_row_tile(rows)
    grid = (rows // tm,)

    bytes_a = (lhs.size * 2 + w_bd.size * 2 + gb.size * 4 + fold.size * 4
               + rows * lane * 4 + 2 * lane * 4)
    y, aff = pl.pallas_call(
        partial(_conv_stats_kernel, inv_count=1.0 / float(m)),
        out_shape=(jax.ShapeDtypeStruct((rows, lane), jnp.float32),
                   jax.ShapeDtypeStruct((2, lane), jnp.float32)),
        grid=grid,
        in_specs=[pl.BlockSpec((tm, kp), lambda i: (i, 0)),
                  pl.BlockSpec((kp, lane), lambda i: (0, 0)),
                  pl.BlockSpec((2, lane), lambda i: (0, 0)),
                  pl.BlockSpec((lane, lane), lambda i: (0, 0))],
        out_specs=(pl.BlockSpec((tm, lane), lambda i: (i, 0)),
                   pl.BlockSpec((2, lane), lambda i: (0, 0))),
        compiler_params=pltpu.CompilerParams(
            dimension_semantics=("arbitrary",),  # stats accumulate across the M grid
            vmem_limit_bytes=_VMEM_LIMIT),
        cost_estimate=pl.CostEstimate(flops=2 * rows * kp * lane,
                                      transcendentals=0,
                                      bytes_accessed=bytes_a),
    )(lhs, w_bd, gb, fold)

    bytes_b = rows * lane * 4 * 2 + 2 * lane * 4
    out = pl.pallas_call(
        _bn_gelu_kernel,
        out_shape=jax.ShapeDtypeStruct((rows, lane), jnp.float32),
        grid=grid,
        in_specs=[pl.BlockSpec((tm, lane), lambda i: (i, 0)),
                  pl.BlockSpec((2, lane), lambda i: (0, 0))],
        out_specs=pl.BlockSpec((tm, lane), lambda i: (i, 0)),
        compiler_params=pltpu.CompilerParams(
            dimension_semantics=("parallel",),
            vmem_limit_bytes=_VMEM_LIMIT),
        cost_estimate=pl.CostEstimate(flops=10 * rows * lane,
                                      transcendentals=rows * lane,
                                      bytes_accessed=bytes_b),
    )(y, aff)

    return out.reshape(n, h_out, w_out, cout)


def init_encoder_params(key, c_in, c_hid, n_s):
    """Deterministic synthetic parameters matching nn.Conv2d / nn.BatchNorm2d shapes."""
    strides = stride_generator(n_s)
    params = []
    cin = c_in
    for _ in strides:
        key, k1, k2 = jax.random.split(key, 3)
        fan_in = cin * 9
        w = jax.random.normal(k1, (3, 3, cin, c_hid), jnp.float32) * (1.0 / math.sqrt(fan_in))
        b = jax.random.normal(k2, (c_hid,), jnp.float32) * 0.01  # no-op under training BN
        gamma = jnp.ones((c_hid,), jnp.float32)   # BN weight init
        beta = jnp.zeros((c_hid,), jnp.float32)   # BN bias init
        params.append((w, b, gamma, beta))
        cin = c_hid
    return params, strides


def encoder_forward(x_nchw, params, strides):
    """Mirrors Encoder.forward: returns (last_feature, [skip_1, ..., skip_N]) in NCHW."""
    x = jnp.transpose(x_nchw, (0, 2, 3, 1))  # NCHW -> NHWC for the kernels
    skips = []
    for lp, s in zip(params, strides):
        x = convsc_forward(x, lp, s)
        skips.append(jnp.transpose(x, (0, 3, 1, 2)))  # back to NCHW, like PyTorch
    return skips[-1], skips


if __name__ == "__main__":
    key = jax.random.PRNGKey(0)
    C_in, C_hid, N_S = 4, 32, 4  # strides -> [1, 2, 1, 2]
    kx, kp_ = jax.random.split(key)

    x = jax.random.normal(kx, (2, C_in, 16, 16), jnp.float32)  # NCHW like PyTorch
    params, strides = init_encoder_params(kp_, C_in, C_hid, N_S)

    fwd = jax.jit(partial(encoder_forward, strides=tuple(strides)))
    out, skips = fwd(x, params)
    jax.block_until_ready(out)
    for s in skips:
        jax.block_until_ready(s)

    # sanity: final spatial size 16 -> 16 -> 8 -> 8 -> 4, channels = C_hid
    assert out.shape == (2, C_hid, 4, 4), out.shape
    assert len(skips) == N_S

    print("KERNEL_OK")
</pallas_src>

<mosaic_0001>
module attributes {stable_mosaic.version = 11 : i64} {
  func.func @_bn_gelu_kernel(%arg0: i32, %arg1: memref<128x128xf32, #tpu.memory_space<vmem>>, %arg2: memref<2x128xf32, #tpu.memory_space<vmem>>, %arg3: memref<128x128xf32, #tpu.memory_space<vmem>>) attributes {dimension_semantics = [#tpu.dimension_semantics<parallel>], iteration_bounds = array<i64: 1>, scalar_prefetch = 0 : i64, scratch_operands = 0 : i64, tpu.core_type = #tpu.core_type<tc>, window_params = [{transform_indices = @transform_0, window_bounds = array<i64: 128, 128>}, {pipeline_mode = #tpu.pipeline_mode<synchronous>, transform_indices = @transform_1, window_bounds = array<i64: 2, 128>}, {transform_indices = @transform_2, window_bounds = array<i64: 128, 128>}]} {
    %c0 = arith.constant 0 : index
    %c0_0 = arith.constant 0 : index
    %0 = vector.load %arg2[%c0, %c0_0] : memref<2x128xf32, #tpu.memory_space<vmem>>, vector<2x128xf32>
    %c0_1 = arith.constant 0 : index
    %c0_2 = arith.constant 0 : index
    %1 = vector.load %arg1[%c0_1, %c0_2] : memref<128x128xf32, #tpu.memory_space<vmem>>, vector<128x128xf32>
    %2 = vector.extract_strided_slice %0 {offsets = [0, 0], sizes = [1, 128], strides = [1, 1]} : vector<2x128xf32> to vector<1x128xf32>
    %3 = vector.broadcast %2 : vector<1x128xf32> to vector<128x128xf32>
    %4 = arith.mulf %1, %3 : vector<128x128xf32>
    %5 = vector.extract_strided_slice %0 {offsets = [1, 0], sizes = [1, 128], strides = [1, 1]} : vector<2x128xf32> to vector<1x128xf32>
    %6 = vector.broadcast %5 : vector<1x128xf32> to vector<128x128xf32>
    %7 = arith.addf %4, %6 : vector<128x128xf32>
    %cst = arith.constant 5.000000e-01 : f32
    %8 = vector.broadcast %cst : f32 to vector<128x128xf32>
    %9 = arith.mulf %8, %7 : vector<128x128xf32>
    %cst_3 = arith.constant 0.707106769 : f32
    %10 = vector.broadcast %cst_3 : f32 to vector<128x128xf32>
    %11 = arith.mulf %7, %10 : vector<128x128xf32>
    %12 = math.erf %11 : vector<128x128xf32>
    %cst_4 = arith.constant 1.000000e+00 : f32
    %13 = vector.broadcast %cst_4 : f32 to vector<128x128xf32>
    %14 = arith.addf %13, %12 : vector<128x128xf32>
    %15 = arith.mulf %9, %14 : vector<128x128xf32>
    %c0_5 = arith.constant 0 : index
    %c0_6 = arith.constant 0 : index
    %16 = vector.load %arg3[%c0_5, %c0_6] : memref<128x128xf32, #tpu.memory_space<vmem>>, vector<128x128xf32>
    tpu.vector_store %arg3[%c0_5, %c0_6], %15 {strides = array<i32>} : memref<128x128xf32, #tpu.memory_space<vmem>>, vector<128x128xf32>,
    return
  }
  func.func @transform_0(%arg0: i32) -> (i32, i32) {
    %c0_i32 = arith.constant 0 : i32
    %c0_i32_0 = arith.constant 0 : i32
    return %arg0, %c0_i32 : i32, i32
  }
  func.func @transform_1(%arg0: i32) -> (i32, i32) {
    %c0_i32 = arith.constant 0 : i32
    %c0_i32_0 = arith.constant 0 : i32
    %c0_i32_1 = arith.constant 0 : i32
    return %c0_i32, %c0_i32_0 : i32, i32
  }
  func.func @transform_2(%arg0: i32) -> (i32, i32) {
    %c0_i32 = arith.constant 0 : i32
    %c0_i32_0 = arith.constant 0 : i32
    return %arg0, %c0_i32 : i32, i32
  }
}

module attributes {stable_mosaic.version = 11 : i64} {
  func.func @_conv_stats_kernel(%arg0: i32, %arg1: memref<128x144xbf16, #tpu.memory_space<vmem>>, %arg2: memref<144x128xbf16, #tpu.memory_space<vmem>>, %arg3: memref<2x128xf32, #tpu.memory_space<vmem>>, %arg4: memref<128x128xf32, #tpu.memory_space<vmem>>, %arg5: memref<128x128xf32, #tpu.memory_space<vmem>>, %arg6: memref<2x128xf32, #tpu.memory_space<vmem>>) attributes {dimension_semantics = [#tpu.dimension_semantics<arbitrary>], iteration_bounds = array<i64: 1>, scalar_prefetch = 0 : i64, scratch_operands = 0 : i64, tpu.core_type = #tpu.core_type<tc>, window_params = [{transform_indices = @transform_0, window_bounds = array<i64: 128, 144>}, {pipeline_mode = #tpu.pipeline_mode<synchronous>, transform_indices = @transform_1, window_bounds = array<i64: 144, 128>}, {pipeline_mode = #tpu.pipeline_mode<synchronous>, transform_indices = @transform_2, window_bounds = array<i64: 2, 128>}, {pipeline_mode = #tpu.pipeline_mode<synchronous>, transform_indices = @transform_3, window_bounds = array<i64: 128, 128>}, {transform_indices = @transform_4, window_bounds = array<i64: 128, 128>}, {pipeline_mode = #tpu.pipeline_mode<synchronous>, transform_indices = @transform_5, window_bounds = array<i64: 2, 128>}]} {
    %c0 = arith.constant 0 : index
    %c0_0 = arith.constant 0 : index
    %0 = vector.load %arg1[%c0, %c0_0] : memref<128x144xbf16, #tpu.memory_space<vmem>>, vector<128x144xbf16>
    %c0_1 = arith.constant 0 : index
    %c0_2 = arith.constant 0 : index
    %1 = vector.load %arg2[%c0_1, %c0_2] : memref<144x128xbf16, #tpu.memory_space<vmem>>, vector<144x128xbf16>
    %cst = arith.constant dense<0.000000e+00> : vector<128x128xf32>
    %2 = tpu.matmul %0, %1, %cst {dimension_numbers = #tpu.dot_dimension_numbers<[1], [0], [0], [1], [0, 0, 1, 1], [], []>} : vector<128x144xbf16>, vector<144x128xbf16>, vector<128x128xf32> -> vector<128x128xf32>
    %c0_3 = arith.constant 0 : index
    %c0_4 = arith.constant 0 : index
    %3 = vector.load %arg5[%c0_3, %c0_4] : memref<128x128xf32, #tpu.memory_space<vmem>>, vector<128x128xf32>
    tpu.vector_store %arg5[%c0_3, %c0_4], %2 {strides = array<i32>} : memref<128x128xf32, #tpu.memory_space<vmem>>, vector<128x128xf32>,
    %c0_i32 = arith.constant 0 : i32
    %4 = arith.cmpi eq, %arg0, %c0_i32 : i32
    %5 = arith.extui %4 : i1 to i32
    %c0_i32_5 = arith.constant 0 : i32
    %6 = arith.cmpi ne, %5, %c0_i32_5 : i32
    scf.if %6 {
      %cst_14 = arith.constant 0.000000e+00 : f32
      %19 = vector.broadcast %cst_14 : f32 to vector<2x128xf32>
      %c0_15 = arith.constant 0 : index
      %c0_16 = arith.constant 0 : index
      %20 = vector.load %arg6[%c0_15, %c0_16] : memref<2x128xf32, #tpu.memory_space<vmem>>, vector<2x128xf32>
      tpu.vector_store %arg6[%c0_15, %c0_16], %19 {strides = array<i32>} : memref<2x128xf32, #tpu.memory_space<vmem>>, vector<2x128xf32>,
    } else {
    }
    %cst_6 = arith.constant dense<0.000000e+00> : vector<128xf32>
    %7 = vector.multi_reduction <add>, %2, %cst_6 [0] : vector<128x128xf32> to vector<128xf32>
    %8 = vector.shape_cast %7 : vector<128xf32> to vector<1x128xf32>
    %9 = arith.mulf %2, %2 : vector<128x128xf32>
    %cst_7 = arith.constant dense<0.000000e+00> : vector<128xf32>
    %10 = vector.multi_reduction <add>, %9, %cst_7 [0] : vector<128x128xf32> to vector<128xf32>
    %11 = vector.shape_cast %10 : vector<128xf32> to vector<1x128xf32>
    %12 = tpu.concatenate %8, %11 in 0 : vector<1x128xf32>, vector<1x128xf32> -> vector<2x128xf32>
    %c0_8 = arith.constant 0 : index
    %c0_9 = arith.constant 0 : index
    %13 = vector.load %arg6[%c0_8, %c0_9] : memref<2x128xf32, #tpu.memory_space<vmem>>, vector<2x128xf32>
    %14 = arith.addf %13, %12 : vector<2x128xf32>
    %c0_10 = arith.constant 0 : index
    %c0_11 = arith.constant 0 : index
    %15 = vector.load %arg6[%c0_10, %c0_11] : memref<2x128xf32, #tpu.memory_space<vmem>>, vector<2x128xf32>
    tpu.vector_store %arg6[%c0_10, %c0_11], %14 {strides = array<i32>} : memref<2x128xf32, #tpu.memory_space<vmem>>, vector<2x128xf32>,
    %c0_i32_12 = arith.constant 0 : i32
    %16 = arith.cmpi eq, %arg0, %c0_i32_12 : i32
    %17 = arith.extui %16 : i1 to i32
    %c0_i32_13 = arith.constant 0 : i32
    %18 = arith.cmpi ne, %17, %c0_i32_13 : i32
    scf.if %18 {
      %c0_14 = arith.constant 0 : index
      %c0_15 = arith.constant 0 : index
      %19 = vector.load %arg6[%c0_14, %c0_15] : memref<2x128xf32, #tpu.memory_space<vmem>>, vector<2x128xf32>
      %c0_16 = arith.constant 0 : index
      %c0_17 = arith.constant 0 : index
      %20 = vector.load %arg4[%c0_16, %c0_17] : memref<128x128xf32, #tpu.memory_space<vmem>>, vector<128x128xf32>
      %cst_18 = arith.constant dense<0.000000e+00> : vector<2x128xf32>
      %21 = tpu.matmul %19, %20, %cst_18 {dimension_numbers = #tpu.dot_dimension_numbers<[1], [0], [0], [1], [0, 0, 1, 1], [], []>} : vector<2x128xf32>, vector<128x128xf32>, vector<2x128xf32> -> vector<2x128xf32>
      %c0_19 = arith.constant 0 : index
      %c0_20 = arith.constant 0 : index
      %22 = vector.load %arg3[%c0_19, %c0_20] : memref<2x128xf32, #tpu.memory_space<vmem>>, vector<2x128xf32>
      %23 = vector.extract_strided_slice %21 {offsets = [0, 0], sizes = [1, 128], strides = [1, 1]} : vector<2x128xf32> to vector<1x128xf32>
      %cst_21 = arith.constant 0.001953125 : f32
      %24 = vector.broadcast %cst_21 : f32 to vector<1x128xf32>
      %25 = arith.mulf %23, %24 : vector<1x128xf32>
      %26 = vector.extract_strided_slice %21 {offsets = [1, 0], sizes = [1, 128], strides = [1, 1]} : vector<2x128xf32> to vector<1x128xf32>
      %cst_22 = arith.constant 0.001953125 : f32
      %27 = vector.broadcast %cst_22 : f32 to vector<1x128xf32>
      %28 = arith.mulf %26, %27 : vector<1x128xf32>
      %29 = arith.mulf %25, %25 : vector<1x128xf32>
      %30 = arith.subf %28, %29 : vector<1x128xf32>
      %31 = vector.extract_strided_slice %22 {offsets = [0, 0], sizes = [1, 128], strides = [1, 1]} : vector<2x128xf32> to vector<1x128xf32>
      %cst_23 = arith.constant 9.99999974E-6 : f32
      %32 = vector.broadcast %cst_23 : f32 to vector<1x128xf32>
      %33 = arith.addf %30, %32 : vector<1x128xf32>
      %34 = math.rsqrt %33 : vector<1x128xf32>
      %35 = arith.mulf %31, %34 : vector<1x128xf32>
      %36 = vector.extract_strided_slice %22 {offsets = [1, 0], sizes = [1, 128], strides = [1, 1]} : vector<2x128xf32> to vector<1x128xf32>
      %37 = arith.mulf %25, %35 : vector<1x128xf32>
      %38 = arith.subf %36, %37 : vector<1x128xf32>
      %39 = tpu.concatenate %35, %38 in 0 : vector<1x128xf32>, vector<1x128xf32> -> vector<2x128xf32>
      %c0_24 = arith.constant 0 : index
      %c0_25 = arith.constant 0 : index
      %40 = vector.load %arg6[%c0_24, %c0_25] : memref<2x128xf32, #tpu.memory_space<vmem>>, vector<2x128xf32>
      tpu.vector_store %arg6[%c0_24, %c0_25], %39 {strides = array<i32>} : memref<2x128xf32, #tpu.memory_space<vmem>>, vector<2x128xf32>,
    } else {
    }
    return
  }
  func.func @transform_0(%arg0: i32) -> (i32, i32) {
    %c0_i32 = arith.constant 0 : i32
    %c0_i32_0 = arith.constant 0 : i32
    return %arg0, %c0_i32 : i32, i32
  }
  func.func @transform_1(%arg0: i32) -> (i32, i32) {
    %c0_i32 = arith.constant 0 : i32
    %c0_i32_0 = arith.constant 0 : i32
    %c0_i32_1 = arith.constant 0 : i32
    return %c0_i32, %c0_i32_0 : i32, i32
  }
  func.func @transform_2(%arg0: i32) -> (i32, i32) {
    %c0_i32 = arith.constant 0 : i32
    %c0_i32_0 = arith.constant 0 : i32
    %c0_i32_1 = arith.constant 0 : i32
    return %c0_i32, %c0_i32_0 : i32, i32
  }
  func.func @transform_3(%arg0: i32) -> (i32, i32) {
    %c0_i32 = arith.constant 0 : i32
    %c0_i32_0 = arith.constant 0 : i32
    %c0_i32_1 = arith.constant 0 : i32
    return %c0_i32, %c0_i32_0 : i32, i32
  }
  func.func @transform_4(%arg0: i32) -> (i32, i32) {
    %c0_i32 = arith.constant 0 : i32
    %c0_i32_0 = arith.constant 0 : i32
    return %arg0, %c0_i32 : i32, i32
  }
  func.func @transform_5(%arg0: i32) -> (i32, i32) {
    %c0_i32 = arith.constant 0 : i32
    %c0_i32_0 = arith.constant 0 : i32
    %c0_i32_1 = arith.constant 0 : i32
    return %c0_i32, %c0_i32_0 : i32, i32
  }
}

module attributes {stable_mosaic.version = 11 : i64} {
  func.func @_conv_stats_kernel(%arg0: i32, %arg1: memref<32x1152xbf16, #tpu.memory_space<vmem>>, %arg2: memref<1152x128xbf16, #tpu.memory_space<vmem>>, %arg3: memref<2x128xf32, #tpu.memory_space<vmem>>, %arg4: memref<128x128xf32, #tpu.memory_space<vmem>>, %arg5: memref<32x128xf32, #tpu.memory_space<vmem>>, %arg6: memref<2x128xf32, #tpu.memory_space<vmem>>) attributes {dimension_semantics = [#tpu.dimension_semantics<arbitrary>], iteration_bounds = array<i64: 1>, scalar_prefetch = 0 : i64, scratch_operands = 0 : i64, tpu.core_type = #tpu.core_type<tc>, window_params = [{transform_indices = @transform_0, window_bounds = array<i64: 32, 1152>}, {pipeline_mode = #tpu.pipeline_mode<synchronous>, transform_indices = @transform_1, window_bounds = array<i64: 1152, 128>}, {pipeline_mode = #tpu.pipeline_mode<synchronous>, transform_indices = @transform_2, window_bounds = array<i64: 2, 128>}, {pipeline_mode = #tpu.pipeline_mode<synchronous>, transform_indices = @transform_3, window_bounds = array<i64: 128, 128>}, {transform_indices = @transform_4, window_bounds = array<i64: 32, 128>}, {pipeline_mode = #tpu.pipeline_mode<synchronous>, transform_indices = @transform_5, window_bounds = array<i64: 2, 128>}]} {
    %c0 = arith.constant 0 : index
    %c0_0 = arith.constant 0 : index
    %0 = vector.load %arg1[%c0, %c0_0] : memref<32x1152xbf16, #tpu.memory_space<vmem>>, vector<32x1152xbf16>
    %c0_1 = arith.constant 0 : index
    %c0_2 = arith.constant 0 : index
    %1 = vector.load %arg2[%c0_1, %c0_2] : memref<1152x128xbf16, #tpu.memory_space<vmem>>, vector<1152x128xbf16>
    %cst = arith.constant dense<0.000000e+00> : vector<32x128xf32>
    %2 = tpu.matmul %0, %1, %cst {dimension_numbers = #tpu.dot_dimension_numbers<[1], [0], [0], [1], [0, 0, 1, 1], [], []>} : vector<32x1152xbf16>, vector<1152x128xbf16>, vector<32x128xf32> -> vector<32x128xf32>
    %c0_3 = arith.constant 0 : index
    %c0_4 = arith.constant 0 : index
    %3 = vector.load %arg5[%c0_3, %c0_4] : memref<32x128xf32, #tpu.memory_space<vmem>>, vector<32x128xf32>
    tpu.vector_store %arg5[%c0_3, %c0_4], %2 {strides = array<i32>} : memref<32x128xf32, #tpu.memory_space<vmem>>, vector<32x128xf32>,
    %c0_i32 = arith.constant 0 : i32
    %4 = arith.cmpi eq, %arg0, %c0_i32 : i32
    %5 = arith.extui %4 : i1 to i32
    %c0_i32_5 = arith.constant 0 : i32
    %6 = arith.cmpi ne, %5, %c0_i32_5 : i32
    scf.if %6 {
      %cst_14 = arith.constant 0.000000e+00 : f32
      %19 = vector.broadcast %cst_14 : f32 to vector<2x128xf32>
      %c0_15 = arith.constant 0 : index
      %c0_16 = arith.constant 0 : index
      %20 = vector.load %arg6[%c0_15, %c0_16] : memref<2x128xf32, #tpu.memory_space<vmem>>, vector<2x128xf32>
      tpu.vector_store %arg6[%c0_15, %c0_16], %19 {strides = array<i32>} : memref<2x128xf32, #tpu.memory_space<vmem>>, vector<2x128xf32>,
    } else {
    }
    %cst_6 = arith.constant dense<0.000000e+00> : vector<128xf32>
    %7 = vector.multi_reduction <add>, %2, %cst_6 [0] : vector<32x128xf32> to vector<128xf32>
    %8 = vector.shape_cast %7 : vector<128xf32> to vector<1x128xf32>
    %9 = arith.mulf %2, %2 : vector<32x128xf32>
    %cst_7 = arith.constant dense<0.000000e+00> : vector<128xf32>
    %10 = vector.multi_reduction <add>, %9, %cst_7 [0] : vector<32x128xf32> to vector<128xf32>
    %11 = vector.shape_cast %10 : vector<128xf32> to vector<1x128xf32>
    %12 = tpu.concatenate %8, %11 in 0 : vector<1x128xf32>, vector<1x128xf32> -> vector<2x128xf32>
    %c0_8 = arith.constant 0 : index
    %c0_9 = arith.constant 0 : index
    %13 = vector.load %arg6[%c0_8, %c0_9] : memref<2x128xf32, #tpu.memory_space<vmem>>, vector<2x128xf32>
    %14 = arith.addf %13, %12 : vector<2x128xf32>
    %c0_10 = arith.constant 0 : index
    %c0_11 = arith.constant 0 : index
    %15 = vector.load %arg6[%c0_10, %c0_11] : memref<2x128xf32, #tpu.memory_space<vmem>>, vector<2x128xf32>
    tpu.vector_store %arg6[%c0_10, %c0_11], %14 {strides = array<i32>} : memref<2x128xf32, #tpu.memory_space<vmem>>, vector<2x128xf32>,
    %c0_i32_12 = arith.constant 0 : i32
    %16 = arith.cmpi eq, %arg0, %c0_i32_12 : i32
    %17 = arith.extui %16 : i1 to i32
    %c0_i32_13 = arith.constant 0 : i32
    %18 = arith.cmpi ne, %17, %c0_i32_13 : i32
    scf.if %18 {
      %c0_14 = arith.constant 0 : index
      %c0_15 = arith.constant 0 : index
      %19 = vector.load %arg6[%c0_14, %c0_15] : memref<2x128xf32, #tpu.memory_space<vmem>>, vector<2x128xf32>
      %c0_16 = arith.constant 0 : index
      %c0_17 = arith.constant 0 : index
      %20 = vector.load %arg4[%c0_16, %c0_17] : memref<128x128xf32, #tpu.memory_space<vmem>>, vector<128x128xf32>
      %cst_18 = arith.constant dense<0.000000e+00> : vector<2x128xf32>
      %21 = tpu.matmul %19, %20, %cst_18 {dimension_numbers = #tpu.dot_dimension_numbers<[1], [0], [0], [1], [0, 0, 1, 1], [], []>} : vector<2x128xf32>, vector<128x128xf32>, vector<2x128xf32> -> vector<2x128xf32>
      %c0_19 = arith.constant 0 : index
      %c0_20 = arith.constant 0 : index
      %22 = vector.load %arg3[%c0_19, %c0_20] : memref<2x128xf32, #tpu.memory_space<vmem>>, vector<2x128xf32>
      %23 = vector.extract_strided_slice %21 {offsets = [0, 0], sizes = [1, 128], strides = [1, 1]} : vector<2x128xf32> to vector<1x128xf32>
      %cst_21 = arith.constant 7.812500e-03 : f32
      %24 = vector.broadcast %cst_21 : f32 to vector<1x128xf32>
      %25 = arith.mulf %23, %24 : vector<1x128xf32>
      %26 = vector.extract_strided_slice %21 {offsets = [1, 0], sizes = [1, 128], strides = [1, 1]} : vector<2x128xf32> to vector<1x128xf32>
      %cst_22 = arith.constant 7.812500e-03 : f32
      %27 = vector.broadcast %cst_22 : f32 to vector<1x128xf32>
      %28 = arith.mulf %26, %27 : vector<1x128xf32>
      %29 = arith.mulf %25, %25 : vector<1x128xf32>
      %30 = arith.subf %28, %29 : vector<1x128xf32>
      %31 = vector.extract_strided_slice %22 {offsets = [0, 0], sizes = [1, 128], strides = [1, 1]} : vector<2x128xf32> to vector<1x128xf32>
      %cst_23 = arith.constant 9.99999974E-6 : f32
      %32 = vector.broadcast %cst_23 : f32 to vector<1x128xf32>
      %33 = arith.addf %30, %32 : vector<1x128xf32>
      %34 = math.rsqrt %33 : vector<1x128xf32>
      %35 = arith.mulf %31, %34 : vector<1x128xf32>
      %36 = vector.extract_strided_slice %22 {offsets = [1, 0], sizes = [1, 128], strides = [1, 1]} : vector<2x128xf32> to vector<1x128xf32>
      %37 = arith.mulf %25, %35 : vector<1x128xf32>
      %38 = arith.subf %36, %37 : vector<1x128xf32>
      %39 = tpu.concatenate %35, %38 in 0 : vector<1x128xf32>, vector<1x128xf32> -> vector<2x128xf32>
      %c0_24 = arith.constant 0 : index
      %c0_25 = arith.constant 0 : index
      %40 = vector.load %arg6[%c0_24, %c0_25] : memref<2x128xf32, #tpu.memory_space<vmem>>, vector<2x128xf32>
      tpu.vector_store %arg6[%c0_24, %c0_25], %39 {strides = array<i32>} : memref<2x128xf32, #tpu.memory_space<vmem>>, vector<2x128xf32>,
    } else {
    }
    return
  }
  func.func @transform_0(%arg0: i32) -> (i32, i32) {
    %c0_i32 = arith.constant 0 : i32
    %c0_i32_0 = arith.constant 0 : i32
    return %arg0, %c0_i32 : i32, i32
  }
  func.func @transform_1(%arg0: i32) -> (i32, i32) {
    %c0_i32 = arith.constant 0 : i32
    %c0_i32_0 = arith.constant 0 : i32
    %c0_i32_1 = arith.constant 0 : i32
    return %c0_i32, %c0_i32_0 : i32, i32
  }
  func.func @transform_2(%arg0: i32) -> (i32, i32) {
    %c0_i32 = arith.constant 0 : i32
    %c0_i32_0 = arith.constant 0 : i32
    %c0_i32_1 = arith.constant 0 : i32
    return %c0_i32, %c0_i32_0 : i32, i32
  }
  func.func @transform_3(%arg0: i32) -> (i32, i32) {
    %c0_i32 = arith.constant 0 : i32
    %c0_i32_0 = arith.constant 0 : i32
    %c0_i32_1 = arith.constant 0 : i32
    return %c0_i32, %c0_i32_0 : i32, i32
  }
  func.func @transform_4(%arg0: i32) -> (i32, i32) {
    %c0_i32 = arith.constant 0 : i32
    %c0_i32_0 = arith.constant 0 : i32
    return %arg0, %c0_i32 : i32, i32
  }
  func.func @transform_5(%arg0: i32) -> (i32, i32) {
    %c0_i32 = arith.constant 0 : i32
    %c0_i32_0 = arith.constant 0 : i32
    %c0_i32_1 = arith.constant 0 : i32
    return %c0_i32, %c0_i32_0 : i32, i32
  }
}

module attributes {stable_mosaic.version = 11 : i64} {
  func.func @_bn_gelu_kernel(%arg0: i32, %arg1: memref<32x128xf32, #tpu.memory_space<vmem>>, %arg2: memref<2x128xf32, #tpu.memory_space<vmem>>, %arg3: memref<32x128xf32, #tpu.memory_space<vmem>>) attributes {dimension_semantics = [#tpu.dimension_semantics<parallel>], iteration_bounds = array<i64: 1>, scalar_prefetch = 0 : i64, scratch_operands = 0 : i64, tpu.core_type = #tpu.core_type<tc>, window_params = [{transform_indices = @transform_0, window_bounds = array<i64: 32, 128>}, {pipeline_mode = #tpu.pipeline_mode<synchronous>, transform_indices = @transform_1, window_bounds = array<i64: 2, 128>}, {transform_indices = @transform_2, window_bounds = array<i64: 32, 128>}]} {
    %c0 = arith.constant 0 : index
    %c0_0 = arith.constant 0 : index
    %0 = vector.load %arg2[%c0, %c0_0] : memref<2x128xf32, #tpu.memory_space<vmem>>, vector<2x128xf32>
    %c0_1 = arith.constant 0 : index
    %c0_2 = arith.constant 0 : index
    %1 = vector.load %arg1[%c0_1, %c0_2] : memref<32x128xf32, #tpu.memory_space<vmem>>, vector<32x128xf32>
    %2 = vector.extract_strided_slice %0 {offsets = [0, 0], sizes = [1, 128], strides = [1, 1]} : vector<2x128xf32> to vector<1x128xf32>
    %3 = vector.broadcast %2 : vector<1x128xf32> to vector<32x128xf32>
    %4 = arith.mulf %1, %3 : vector<32x128xf32>
    %5 = vector.extract_strided_slice %0 {offsets = [1, 0], sizes = [1, 128], strides = [1, 1]} : vector<2x128xf32> to vector<1x128xf32>
    %6 = vector.broadcast %5 : vector<1x128xf32> to vector<32x128xf32>
    %7 = arith.addf %4, %6 : vector<32x128xf32>
    %cst = arith.constant 5.000000e-01 : f32
    %8 = vector.broadcast %cst : f32 to vector<32x128xf32>
    %9 = arith.mulf %8, %7 : vector<32x128xf32>
    %cst_3 = arith.constant 0.707106769 : f32
    %10 = vector.broadcast %cst_3 : f32 to vector<32x128xf32>
    %11 = arith.mulf %7, %10 : vector<32x128xf32>
    %12 = math.erf %11 : vector<32x128xf32>
    %cst_4 = arith.constant 1.000000e+00 : f32
    %13 = vector.broadcast %cst_4 : f32 to vector<32x128xf32>
    %14 = arith.addf %13, %12 : vector<32x128xf32>
    %15 = arith.mulf %9, %14 : vector<32x128xf32>
    %c0_5 = arith.constant 0 : index
    %c0_6 = arith.constant 0 : index
    %16 = vector.load %arg3[%c0_5, %c0_6] : memref<32x128xf32, #tpu.memory_space<vmem>>, vector<32x128xf32>
    tpu.vector_store %arg3[%c0_5, %c0_6], %15 {strides = array<i32>} : memref<32x128xf32, #tpu.memory_space<vmem>>, vector<32x128xf32>,
    return
  }
  func.func @transform_0(%arg0: i32) -> (i32, i32) {
    %c0_i32 = arith.constant 0 : i32
    %c0_i32_0 = arith.constant 0 : i32
    return %arg0, %c0_i32 : i32, i32
  }
  func.func @transform_1(%arg0: i32) -> (i32, i32) {
    %c0_i32 = arith.constant 0 : i32
    %c0_i32_0 = arith.constant 0 : i32
    %c0_i32_1 = arith.constant 0 : i32
    return %c0_i32, %c0_i32_0 : i32, i32
  }
  func.func @transform_2(%arg0: i32) -> (i32, i32) {
    %c0_i32 = arith.constant 0 : i32
    %c0_i32_0 = arith.constant 0 : i32
    return %arg0, %c0_i32 : i32, i32
  }
}

module attributes {stable_mosaic.version = 11 : i64} {
  func.func @_conv_stats_kernel(%arg0: i32, %arg1: memref<8x1152xbf16, #tpu.memory_space<vmem>>, %arg2: memref<1152x128xbf16, #tpu.memory_space<vmem>>, %arg3: memref<2x128xf32, #tpu.memory_space<vmem>>, %arg4: memref<128x128xf32, #tpu.memory_space<vmem>>, %arg5: memref<8x128xf32, #tpu.memory_space<vmem>>, %arg6: memref<2x128xf32, #tpu.memory_space<vmem>>) attributes {dimension_semantics = [#tpu.dimension_semantics<arbitrary>], iteration_bounds = array<i64: 1>, scalar_prefetch = 0 : i64, scratch_operands = 0 : i64, tpu.core_type = #tpu.core_type<tc>, window_params = [{transform_indices = @transform_0, window_bounds = array<i64: 8, 1152>}, {pipeline_mode = #tpu.pipeline_mode<synchronous>, transform_indices = @transform_1, window_bounds = array<i64: 1152, 128>}, {pipeline_mode = #tpu.pipeline_mode<synchronous>, transform_indices = @transform_2, window_bounds = array<i64: 2, 128>}, {pipeline_mode = #tpu.pipeline_mode<synchronous>, transform_indices = @transform_3, window_bounds = array<i64: 128, 128>}, {transform_indices = @transform_4, window_bounds = array<i64: 8, 128>}, {pipeline_mode = #tpu.pipeline_mode<synchronous>, transform_indices = @transform_5, window_bounds = array<i64: 2, 128>}]} {
    %c0 = arith.constant 0 : index
    %c0_0 = arith.constant 0 : index
    %0 = vector.load %arg1[%c0, %c0_0] : memref<8x1152xbf16, #tpu.memory_space<vmem>>, vector<8x1152xbf16>
    %c0_1 = arith.constant 0 : index
    %c0_2 = arith.constant 0 : index
    %1 = vector.load %arg2[%c0_1, %c0_2] : memref<1152x128xbf16, #tpu.memory_space<vmem>>, vector<1152x128xbf16>
    %cst = arith.constant dense<0.000000e+00> : vector<8x128xf32>
    %2 = tpu.matmul %0, %1, %cst {dimension_numbers = #tpu.dot_dimension_numbers<[1], [0], [0], [1], [0, 0, 1, 1], [], []>} : vector<8x1152xbf16>, vector<1152x128xbf16>, vector<8x128xf32> -> vector<8x128xf32>
    %c0_3 = arith.constant 0 : index
    %c0_4 = arith.constant 0 : index
    %3 = vector.load %arg5[%c0_3, %c0_4] : memref<8x128xf32, #tpu.memory_space<vmem>>, vector<8x128xf32>
    tpu.vector_store %arg5[%c0_3, %c0_4], %2 {strides = array<i32>} : memref<8x128xf32, #tpu.memory_space<vmem>>, vector<8x128xf32>,
    %c0_i32 = arith.constant 0 : i32
    %4 = arith.cmpi eq, %arg0, %c0_i32 : i32
    %5 = arith.extui %4 : i1 to i32
    %c0_i32_5 = arith.constant 0 : i32
    %6 = arith.cmpi ne, %5, %c0_i32_5 : i32
    scf.if %6 {
      %cst_14 = arith.constant 0.000000e+00 : f32
      %19 = vector.broadcast %cst_14 : f32 to vector<2x128xf32>
      %c0_15 = arith.constant 0 : index
      %c0_16 = arith.constant 0 : index
      %20 = vector.load %arg6[%c0_15, %c0_16] : memref<2x128xf32, #tpu.memory_space<vmem>>, vector<2x128xf32>
      tpu.vector_store %arg6[%c0_15, %c0_16], %19 {strides = array<i32>} : memref<2x128xf32, #tpu.memory_space<vmem>>, vector<2x128xf32>,
    } else {
    }
    %cst_6 = arith.constant dense<0.000000e+00> : vector<128xf32>
    %7 = vector.multi_reduction <add>, %2, %cst_6 [0] : vector<8x128xf32> to vector<128xf32>
    %8 = vector.shape_cast %7 : vector<128xf32> to vector<1x128xf32>
    %9 = arith.mulf %2, %2 : vector<8x128xf32>
    %cst_7 = arith.constant dense<0.000000e+00> : vector<128xf32>
    %10 = vector.multi_reduction <add>, %9, %cst_7 [0] : vector<8x128xf32> to vector<128xf32>
    %11 = vector.shape_cast %10 : vector<128xf32> to vector<1x128xf32>
    %12 = tpu.concatenate %8, %11 in 0 : vector<1x128xf32>, vector<1x128xf32> -> vector<2x128xf32>
    %c0_8 = arith.constant 0 : index
    %c0_9 = arith.constant 0 : index
    %13 = vector.load %arg6[%c0_8, %c0_9] : memref<2x128xf32, #tpu.memory_space<vmem>>, vector<2x128xf32>
    %14 = arith.addf %13, %12 : vector<2x128xf32>
    %c0_10 = arith.constant 0 : index
    %c0_11 = arith.constant 0 : index
    %15 = vector.load %arg6[%c0_10, %c0_11] : memref<2x128xf32, #tpu.memory_space<vmem>>, vector<2x128xf32>
    tpu.vector_store %arg6[%c0_10, %c0_11], %14 {strides = array<i32>} : memref<2x128xf32, #tpu.memory_space<vmem>>, vector<2x128xf32>,
    %c0_i32_12 = arith.constant 0 : i32
    %16 = arith.cmpi eq, %arg0, %c0_i32_12 : i32
    %17 = arith.extui %16 : i1 to i32
    %c0_i32_13 = arith.constant 0 : i32
    %18 = arith.cmpi ne, %17, %c0_i32_13 : i32
    scf.if %18 {
      %c0_14 = arith.constant 0 : index
      %c0_15 = arith.constant 0 : index
      %19 = vector.load %arg6[%c0_14, %c0_15] : memref<2x128xf32, #tpu.memory_space<vmem>>, vector<2x128xf32>
      %c0_16 = arith.constant 0 : index
      %c0_17 = arith.constant 0 : index
      %20 = vector.load %arg4[%c0_16, %c0_17] : memref<128x128xf32, #tpu.memory_space<vmem>>, vector<128x128xf32>
      %cst_18 = arith.constant dense<0.000000e+00> : vector<2x128xf32>
      %21 = tpu.matmul %19, %20, %cst_18 {dimension_numbers = #tpu.dot_dimension_numbers<[1], [0], [0], [1], [0, 0, 1, 1], [], []>} : vector<2x128xf32>, vector<128x128xf32>, vector<2x128xf32> -> vector<2x128xf32>
      %c0_19 = arith.constant 0 : index
      %c0_20 = arith.constant 0 : index
      %22 = vector.load %arg3[%c0_19, %c0_20] : memref<2x128xf32, #tpu.memory_space<vmem>>, vector<2x128xf32>
      %23 = vector.extract_strided_slice %21 {offsets = [0, 0], sizes = [1, 128], strides = [1, 1]} : vector<2x128xf32> to vector<1x128xf32>
      %cst_21 = arith.constant 3.125000e-02 : f32
      %24 = vector.broadcast %cst_21 : f32 to vector<1x128xf32>
      %25 = arith.mulf %23, %24 : vector<1x128xf32>
      %26 = vector.extract_strided_slice %21 {offsets = [1, 0], sizes = [1, 128], strides = [1, 1]} : vector<2x128xf32> to vector<1x128xf32>
      %cst_22 = arith.constant 3.125000e-02 : f32
      %27 = vector.broadcast %cst_22 : f32 to vector<1x128xf32>
      %28 = arith.mulf %26, %27 : vector<1x128xf32>
      %29 = arith.mulf %25, %25 : vector<1x128xf32>
      %30 = arith.subf %28, %29 : vector<1x128xf32>
      %31 = vector.extract_strided_slice %22 {offsets = [0, 0], sizes = [1, 128], strides = [1, 1]} : vector<2x128xf32> to vector<1x128xf32>
      %cst_23 = arith.constant 9.99999974E-6 : f32
      %32 = vector.broadcast %cst_23 : f32 to vector<1x128xf32>
      %33 = arith.addf %30, %32 : vector<1x128xf32>
      %34 = math.rsqrt %33 : vector<1x128xf32>
      %35 = arith.mulf %31, %34 : vector<1x128xf32>
      %36 = vector.extract_strided_slice %22 {offsets = [1, 0], sizes = [1, 128], strides = [1, 1]} : vector<2x128xf32> to vector<1x128xf32>
      %37 = arith.mulf %25, %35 : vector<1x128xf32>
      %38 = arith.subf %36, %37 : vector<1x128xf32>
      %39 = tpu.concatenate %35, %38 in 0 : vector<1x128xf32>, vector<1x128xf32> -> vector<2x128xf32>
      %c0_24 = arith.constant 0 : index
      %c0_25 = arith.constant 0 : index
      %40 = vector.load %arg6[%c0_24, %c0_25] : memref<2x128xf32, #tpu.memory_space<vmem>>, vector<2x128xf32>
      tpu.vector_store %arg6[%c0_24, %c0_25], %39 {strides = array<i32>} : memref<2x128xf32, #tpu.memory_space<vmem>>, vector<2x128xf32>,
    } else {
    }
    return
  }
  func.func @transform_0(%arg0: i32) -> (i32, i32) {
    %c0_i32 = arith.constant 0 : i32
    %c0_i32_0 = arith.constant 0 : i32
    return %arg0, %c0_i32 : i32, i32
  }
  func.func @transform_1(%arg0: i32) -> (i32, i32) {
    %c0_i32 = arith.constant 0 : i32
    %c0_i32_0 = arith.constant 0 : i32
    %c0_i32_1 = arith.constant 0 : i32
    return %c0_i32, %c0_i32_0 : i32, i32
  }
  func.func @transform_2(%arg0: i32) -> (i32, i32) {
    %c0_i32 = arith.constant 0 : i32
    %c0_i32_0 = arith.constant 0 : i32
    %c0_i32_1 = arith.constant 0 : i32
    return %c0_i32, %c0_i32_0 : i32, i32
  }
  func.func @transform_3(%arg0: i32) -> (i32, i32) {
    %c0_i32 = arith.constant 0 : i32
    %c0_i32_0 = arith.constant 0 : i32
    %c0_i32_1 = arith.constant 0 : i32
    return %c0_i32, %c0_i32_0 : i32, i32
  }
  func.func @transform_4(%arg0: i32) -> (i32, i32) {
    %c0_i32 = arith.constant 0 : i32
    %c0_i32_0 = arith.constant 0 : i32
    return %arg0, %c0_i32 : i32, i32
  }
  func.func @transform_5(%arg0: i32) -> (i32, i32) {
    %c0_i32 = arith.constant 0 : i32
    %c0_i32_0 = arith.constant 0 : i32
    %c0_i32_1 = arith.constant 0 : i32
    return %c0_i32, %c0_i32_0 : i32, i32
  }
}

module attributes {stable_mosaic.version = 11 : i64} {
  func.func @_bn_gelu_kernel(%arg0: i32, %arg1: memref<8x128xf32, #tpu.memory_space<vmem>>, %arg2: memref<2x128xf32, #tpu.memory_space<vmem>>, %arg3: memref<8x128xf32, #tpu.memory_space<vmem>>) attributes {dimension_semantics = [#tpu.dimension_semantics<parallel>], iteration_bounds = array<i64: 1>, scalar_prefetch = 0 : i64, scratch_operands = 0 : i64, tpu.core_type = #tpu.core_type<tc>, window_params = [{transform_indices = @transform_0, window_bounds = array<i64: 8, 128>}, {pipeline_mode = #tpu.pipeline_mode<synchronous>, transform_indices = @transform_1, window_bounds = array<i64: 2, 128>}, {transform_indices = @transform_2, window_bounds = array<i64: 8, 128>}]} {
    %c0 = arith.constant 0 : index
    %c0_0 = arith.constant 0 : index
    %0 = vector.load %arg2[%c0, %c0_0] : memref<2x128xf32, #tpu.memory_space<vmem>>, vector<2x128xf32>
    %c0_1 = arith.constant 0 : index
    %c0_2 = arith.constant 0 : index
    %1 = vector.load %arg1[%c0_1, %c0_2] : memref<8x128xf32, #tpu.memory_space<vmem>>, vector<8x128xf32>
    %2 = vector.extract_strided_slice %0 {offsets = [0, 0], sizes = [1, 128], strides = [1, 1]} : vector<2x128xf32> to vector<1x128xf32>
    %3 = vector.broadcast %2 : vector<1x128xf32> to vector<8x128xf32>
    %4 = arith.mulf %1, %3 : vector<8x128xf32>
    %5 = vector.extract_strided_slice %0 {offsets = [1, 0], sizes = [1, 128], strides = [1, 1]} : vector<2x128xf32> to vector<1x128xf32>
    %6 = vector.broadcast %5 : vector<1x128xf32> to vector<8x128xf32>
    %7 = arith.addf %4, %6 : vector<8x128xf32>
    %cst = arith.constant 5.000000e-01 : f32
    %8 = vector.broadcast %cst : f32 to vector<8x128xf32>
    %9 = arith.mulf %8, %7 : vector<8x128xf32>
    %cst_3 = arith.constant 0.707106769 : f32
    %10 = vector.broadcast %cst_3 : f32 to vector<8x128xf32>
    %11 = arith.mulf %7, %10 : vector<8x128xf32>
    %12 = math.erf %11 : vector<8x128xf32>
    %cst_4 = arith.constant 1.000000e+00 : f32
    %13 = vector.broadcast %cst_4 : f32 to vector<8x128xf32>
    %14 = arith.addf %13, %12 : vector<8x128xf32>
    %15 = arith.mulf %9, %14 : vector<8x128xf32>
    %c0_5 = arith.constant 0 : index
    %c0_6 = arith.constant 0 : index
    %16 = vector.load %arg3[%c0_5, %c0_6] : memref<8x128xf32, #tpu.memory_space<vmem>>, vector<8x128xf32>
    tpu.vector_store %arg3[%c0_5, %c0_6], %15 {strides = array<i32>} : memref<8x128xf32, #tpu.memory_space<vmem>>, vector<8x128xf32>,
    return
  }
  func.func @transform_0(%arg0: i32) -> (i32, i32) {
    %c0_i32 = arith.constant 0 : i32
    %c0_i32_0 = arith.constant 0 : i32
    return %arg0, %c0_i32 : i32, i32
  }
  func.func @transform_1(%arg0: i32) -> (i32, i32) {
    %c0_i32 = arith.constant 0 : i32
    %c0_i32_0 = arith.constant 0 : i32
    %c0_i32_1 = arith.constant 0 : i32
    return %c0_i32, %c0_i32_0 : i32, i32
  }
  func.func @transform_2(%arg0: i32) -> (i32, i32) {
    %c0_i32 = arith.constant 0 : i32
    %c0_i32_0 = arith.constant 0 : i32
    return %arg0, %c0_i32 : i32, i32
  }
}

</mosaic_0001>

<bundles_post_ra>
// kernel: mul.4
= control target key start
LH: loop header
LB: loop body
LE: loop exit
PB: predicated region body
PF: predicated region fallthrough
CT: control target
= control target key end

     0   :  { %vm39_vm0 = vcmask 261120   ;;  %s170_s0 = inlined_call_operand.vmem [shape: f32[3,3,4,32], index: 0, kind: input, shape index: {}]   ;;  %s171_s1 = inlined_call_operand.vmem [shape: f32[36,32], index: 1, kind: output, shape index: {}]  }
   0x1   :  { %v81_v0 = vld [vmem:[%s170_s0 + $0x20] sm:$0xf]  ;;  %v82_v1 = vld [vmem:[%s170_s0 + $0x1c] sm:$0xf]  ;;  %v83_v2 = vld [vmem:[%s170_s0 + $0x18] sm:$0xf] }
   0x2   :  { %7 = vst [vmem:[#allocation0 + $0x10] sm:$0xf] %v81_v0  ;;  %v84_v3 = vld [vmem:[%s170_s0 + $0x14] sm:$0xf]  ;;  %v85_v4 = vld [vmem:[%s170_s0 + $0x10] sm:$0xf] }
   0x3   :  { %11 = vst [vmem:[#allocation0 + $0x40] sm:$0xf] %v82_v1  ;;  %v86_v5 = vld [vmem:[%s170_s0 + $0xc] sm:$0xf]  ;;  %v87_v6 = vld [vmem:[%s170_s0 + $0x8] sm:$0xf] }
   0x4   :  { %15 = vst [vmem:[#allocation0 + $0x28] sm:$0xf] %v83_v2  ;;  %v88_v7 = vld [vmem:[%s170_s0 + $0x4] sm:$0xf]  ;;  %v36_v8 = vld [vmem:[%s170_s0] sm:$0xf] }
   0x5   :  { %19 = vst [vmem:[#allocation0 + $0x30] sm:$0xf] %v84_v3 }
   0x6   :  { %23 = vst [vmem:[#allocation0 + $0x20] sm:$0xf] %v85_v4 }
   0x7   :  { %27 = vst [vmem:[#allocation0 + $0x18] sm:$0xf] %v86_v5 }
   0x8   :  { %31 = vst [vmem:[#allocation0] sm:$0xf] %v87_v6 }
   0x9   :  { %35 = vst [vmem:[#allocation0 + $0x8] sm:$0xf] %v88_v7  ;;  %v77_v16 = vld [vmem:[#allocation0 + $0x10] sm:$0xf]  }
   0xa   :  { %37 = vst [vmem:[#allocation0 + $0x38] sm:$0xf] %v36_v8  ;;  %v72_v9 = vld [vmem:[#allocation0 + $0x40] sm:$0xf]  }
   0xb   :  { %v67_v10 = vld [vmem:[#allocation0 + $0x28] sm:$0xf]   ;;  %95 = vst.msk [vmem:[%s171_s1 + $0x1c] sm:$0xf] %vm39_vm0, %v72_v9  }
   0xc   :  { %v62_v11 = vld [vmem:[#allocation0 + $0x30] sm:$0xf]   ;;  %94 = vst.msk [vmem:[%s171_s1 + $0x18] sm:$0xf] %vm39_vm0, %v67_v10  }
   0xd   :  { %v57_v12 = vld [vmem:[#allocation0 + $0x20] sm:$0xf]   ;;  %93 = vst.msk [vmem:[%s171_s1 + $0x14] sm:$0xf] %vm39_vm0, %v62_v11  }
   0xe   :  { %v52_v13 = vld [vmem:[#allocation0 + $0x18] sm:$0xf]   ;;  %92 = vst.msk [vmem:[%s171_s1 + $0x10] sm:$0xf] %vm39_vm0, %v57_v12  }
   0xf   :  { %v47_v14 = vld [vmem:[#allocation0] sm:$0xf]   ;;  %91 = vst.msk [vmem:[%s171_s1 + $0xc] sm:$0xf] %vm39_vm0, %v52_v13  }
  0x10   :  { %v42_v15 = vld [vmem:[#allocation0 + $0x8] sm:$0xf]   ;;  %90 = vst.msk [vmem:[%s171_s1 + $0x8] sm:$0xf] %vm39_vm0, %v47_v14  }
  0x11   :  { %v38_v17 = vld [vmem:[#allocation0 + $0x38] sm:$0xf]   ;;  %89 = vst.msk [vmem:[%s171_s1 + $0x4] sm:$0xf] %vm39_vm0, %v42_v15  }
  0x12   :  { %40 = vst.msk [vmem:[%s171_s1] sm:$0xf] %vm39_vm0, %v38_v17  }
  0x13   :  { %96 = vst.msk [vmem:[%s171_s1 + $0x20] sm:$0xf] %vm39_vm0, %v77_v16  }

// kernel: tile.43
= control target key start
LH: loop header
LB: loop body
LE: loop exit
PB: predicated region body
PF: predicated region fallthrough
CT: control target
= control target key end

     0   :  { %s22_s0 = inlined_call_operand.vmem [shape: f32[32], index: 0, kind: input, shape index: {}]   ;;  %s23_s1 = inlined_call_operand.vmem [shape: f32[4,32], index: 1, kind: output, shape index: {}]  }
   0x1   :  { %v4_v0 = vld [vmem:[%s22_s0] ss:$0 sm:$0xff] }
   0x2   :  { %5 = vst [vmem:[%s23_s1] sm:$0xf] %v4_v0 }

// kernel: tile.48
= control target key start
LH: loop header
LB: loop body
LE: loop exit
PB: predicated region body
PF: predicated region fallthrough
CT: control target
= control target key end

     0   :  { %s37_s8 = smov 32   ;;  %s38_s9 = smov 64   ;;  %vm7_vm0 = vcmask 261120   ;;  %vm13_vm1 = vcmask 1048320   ;;  %vm19_vm2 = vcmask 785920   ;;  %vm25_vm3 = vcmask 523520   ;;  %s55_s0 = inlined_call_operand.vmem [shape: f32[4,32], index: 0, kind: input, shape index: {}]   ;;  %s56_s1 = inlined_call_operand.vmem [shape: f32[1,128], index: 1, kind: output, shape index: {}]  }
   0x1   :  { %v4_v0 = vld [vmem:[%s55_s0] sm:$0xf]  ;;  %s36_s0 = smov 96  }
   0x2   :  { %5 = vst [vmem:[#allocation1] sm:$0xf] %v4_v0 }
   0x9   :  { %v10_v1 = vld [vmem:[#allocation1 + $0x3] sm:$0x1]   ;;  %v22_v2 = vld [vmem:[#allocation1 + $0x1] sm:$0x1]   ;;  %v16_v3 = vld [vmem:[#allocation1 + $0x2] sm:$0x1]  }
   0xa   :  { %11 = vrot.lane.b32.xlu0 %v10_v1, %s36_s0  ;;  %23 = vrot.lane.b32.xlu1 %v22_v2, %s37_s8  ;;  %v6_v4 = vld [vmem:[#allocation1] sm:$0x1]  }
   0xb   :  { %8 = vst.msk [vmem:[#allocation0] sm:$0x1] %vm7_vm0, %v6_v4  }
  0x12   :  { %17 = vrot.lane.b32.xlu0 %v16_v3, %s38_s9 }
  0x7c   :  { %v12_v5 = vpop.permute.xlu0 %11   ;;  %v24_v6 = vpop.permute.xlu1 %23  }
  0x7d   :  { %14 = vst.msk [vmem:[#allocation0] sm:$0x1] %vm13_vm1, %v12_v5  }
  0x84   :  { %v18_v7 = vpop.permute.xlu0 %17  }
  0x85   :  { %20 = vst.msk [vmem:[#allocation0] sm:$0x1] %vm19_vm2, %v18_v7  }
  0x86   :  { %26 = vst.msk [vmem:[#allocation0] sm:$0x1] %vm25_vm3, %v24_v6  }
  0x8d   :  { %v29_v8 = vld [vmem:[#allocation0] sm:$0x1] }
  0x8e   :  { %32 = vst [vmem:[%s56_s1] sm:$0x1] %v29_v8 }

// kernel: encoder_forward.9
= control target key start
LH: loop header
LB: loop body
LE: loop exit
PB: predicated region body
PF: predicated region fallthrough
CT: control target
= control target key end

     0   :  { %s1540_s0 = inlined_call_operand.vmem [shape: f32[128,128], index: 0, kind: input, shape index: {}]   ;;  %s1541_s1 = inlined_call_operand.vmem [shape: f32[2,128], index: 1, kind: input, shape index: {}]   ;;  %s1542_s2 = inlined_call_operand.vmem [shape: f32[128,128], index: 2, kind: output, shape index: {}]  }
   0x1   :  { %v11_v0 = vld [vmem:[%s1541_s1] sm:$0x3]  ;;  %v13_v2 = vld [vmem:[%s1540_s0 + $0x8] sm:$0xff]  ;;  %v14_v5 = vld [vmem:[%s1540_s0 + $0x10] sm:$0xff] }
   0x2   :  { %v12_v1 = vld [vmem:[%s1540_s0] sm:$0xff]  ;;  %v858_v3 = vperm.slane %v11_v0, 0  ;;  %v860_v4 = vperm.slane %v11_v0, 1  ;;  %v15_v6 = vld [vmem:[%s1540_s0 + $0x18] sm:$0xff]  ;;  %v17_v19 = vld [vmem:[%s1540_s0 + $0x28] sm:$0xff] }
   0x3   :  { %v16_v7 = vld [vmem:[%s1540_s0 + $0x20] sm:$0xff]  ;;  %v18_v0 = vld [vmem:[%s1540_s0 + $0x30] sm:$0xff] }
   0x4   :  { %v29_v8 = vmul.f32 %v858_v3, %v12_v1  ;;  %v30_v9 = vmul.f32 %v858_v3, %v13_v2  ;;  %v31_v10 = vmul.f32 %v858_v3, %v14_v5  ;;  %v32_v11 = vmul.f32 %v858_v3, %v15_v6 }
   0x5   :  { %v33_v12 = vmul.f32 %v858_v3, %v16_v7  ;;  %v34_v27 = vmul.f32 %v858_v3, %v17_v19 }
   0x6   :  { %v877_v13 = vadd.f32 %v860_v4, %v29_v8  ;;  %v880_v14 = vadd.f32 %v860_v4, %v30_v9  ;;  %v883_v15 = vadd.f32 %v860_v4, %v31_v10  ;;  %v886_v16 = vadd.f32 %v860_v4, %v32_v11 }
   0x7   :  { %v904_v22 = vadd.f32 %v860_v4, %v33_v12  ;;  %v933_v39 = vadd.f32 %v860_v4, %v34_v27 }
   0x8   :  { %v889_v17 = vmul.f32 0.70710677, %v877_v13  ;;  %v892_v18 = vmul.f32 0.70710677, %v880_v14  ;;  %v898_v20 = vmul.f32 0.70710677, %v883_v15 }
   0x9   :  { %v901_v21 = vmul.f32 0.70710677, %v886_v16  ;;  %v924_v32 = vmul.f32 0.70710677, %v904_v22  ;;  %v943_v53 = vmul.f32 0.70710677, %v933_v39 }
   0xa   :  { %v94_v23 = vmul.f32 %v889_v17, %v889_v17  ;;  %v134_v24 = vmul.f32 %v892_v18, %v892_v18  ;;  %v174_v25 = vmul.f32 %v898_v20, %v898_v20 }
   0xb   :  { %v214_v26 = vmul.f32 %v901_v21, %v901_v21  ;;  %v254_v19 = vmul.f32 %v924_v32, %v924_v32 }
   0xc   :  { %v915_v28 = vmin.f32 %v94_v23, 16.0  ;;  %v917_v29 = vmin.f32 %v134_v24, 16.0  ;;  %v919_v30 = vmin.f32 %v174_v25, 16.0  ;;  %v35_v23 = vmul.f32 %v858_v3, %v18_v0 }
   0xd   :  { %v921_v31 = vmin.f32 %v214_v26, 16.0 }
   0xe   :  { %v96_v33 = vmul.f32 2.1237322e-06, %v915_v28  ;;  %v107_v34 = vmul.f32 3.8918573e-05, %v915_v28  ;;  %v136_v35 = vmul.f32 2.1237322e-06, %v917_v29 }
   0xf   :  { %v147_v36 = vmul.f32 3.8918573e-05, %v917_v29  ;;  %v176_v37 = vmul.f32 2.1237322e-06, %v919_v30  ;;  %v187_v38 = vmul.f32 3.8918573e-05, %v919_v30 }
  0x10   :  { %v97_v40 = vadd.f32 0.00028619796, %v96_v33  ;;  %v108_v41 = vadd.f32 0.001143296, %v107_v34  ;;  %v137_v42 = vadd.f32 0.00028619796, %v136_v35 }
  0x11   :  { %v148_v43 = vadd.f32 0.001143296, %v147_v36  ;;  %v177_v44 = vadd.f32 0.00028619796, %v176_v37  ;;  %v188_v45 = vadd.f32 0.001143296, %v187_v38 }
  0x12   :  { %v98_v46 = vmul.f32 %v97_v40, %v915_v28  ;;  %v109_v47 = vmul.f32 %v108_v41, %v915_v28  ;;  %v138_v48 = vmul.f32 %v137_v42, %v917_v29  ;;  %v216_v49 = vmul.f32 2.1237322e-06, %v921_v31 }
  0x13   :  { %v149_v50 = vmul.f32 %v148_v43, %v917_v29  ;;  %v178_v51 = vmul.f32 %v177_v44, %v919_v30  ;;  %v189_v52 = vmul.f32 %v188_v45, %v919_v30  ;;  %v227_v6 = vmul.f32 3.8918573e-05, %v921_v31 }
  0x14   :  { %v99_v54 = vadd.f32 0.0036580483, %v98_v46  ;;  %v110_v55 = vadd.f32 0.014752088, %v109_v47  ;;  %v139_v56 = vadd.f32 0.0036580483, %v138_v48 }
  0x15   :  { %v150_v57 = vadd.f32 0.014752088, %v149_v50  ;;  %v179_v58 = vadd.f32 0.0036580483, %v178_v51  ;;  %v190_v59 = vadd.f32 0.014752088, %v189_v52 }
  0x16   :  { %v100_v60 = vmul.f32 %v99_v54, %v915_v28  ;;  %v111_v61 = vmul.f32 %v110_v55, %v915_v28  ;;  %v140_v62 = vmul.f32 %v139_v56, %v917_v29  ;;  %v217_v63 = vadd.f32 0.00028619796, %v216_v49 }
  0x17   :  { %v151_v1 = vmul.f32 %v150_v57, %v917_v29  ;;  %v180_v2 = vmul.f32 %v179_v58, %v919_v30  ;;  %v191_v5 = vmul.f32 %v190_v59, %v919_v30  ;;  %v228_v36 = vadd.f32 0.001143296, %v227_v6 }
  0x18   :  { %v101_v7 = vadd.f32 0.05243302, %v100_v60  ;;  %v112_v8 = vadd.f32 0.112945676, %v111_v61  ;;  %v141_v9 = vadd.f32 0.05243302, %v140_v62  ;;  %v218_v10 = vmul.f32 %v217_v63, %v921_v31 }
  0x19   :  { %v152_v11 = vadd.f32 0.112945676, %v151_v1  ;;  %v181_v12 = vadd.f32 0.05243302, %v180_v2  ;;  %v192_v27 = vadd.f32 0.112945676, %v191_v5  ;;  %v229_v54 = vmul.f32 %v228_v36, %v921_v31 }
  0x1a   :  { %v102_v24 = vmul.f32 %v101_v7, %v915_v28  ;;  %v113_v25 = vmul.f32 %v112_v8, %v915_v28  ;;  %v142_v26 = vmul.f32 %v141_v9, %v917_v29  ;;  %v219_v35 = vadd.f32 0.0036580483, %v218_v10 }
  0x1b   :  { %v153_v33 = vmul.f32 %v152_v11, %v917_v29  ;;  %v182_v34 = vmul.f32 %v181_v12, %v919_v30  ;;  %v193_v41 = vmul.f32 %v192_v27, %v919_v30  ;;  %v966_v42 = vmul.f32 0.5, %v877_v13 }
  0x1c   :  { %v103_v37 = vadd.f32 0.18741608, %v102_v24  ;;  %v114_v38 = vadd.f32 0.4994258, %v113_v25  ;;  %v143_v40 = vadd.f32 0.18741608, %v142_v26  ;;  %v220_v45 = vmul.f32 %v219_v35, %v921_v31 }
  0x1d   :  { %v154_v43 = vadd.f32 0.4994258, %v153_v33  ;;  %v183_v44 = vadd.f32 0.18741608, %v182_v34  ;;  %v194_v49 = vadd.f32 0.4994258, %v193_v41  ;;  %v294_v56 = vmul.f32 %v943_v53, %v943_v53 }
  0x1e   :  { %v104_v46 = vmul.f32 %v103_v37, %v915_v28  ;;  %v115_v47 = vmul.f32 %v114_v38, %v915_v28  ;;  %v144_v48 = vmul.f32 %v143_v40, %v917_v29  ;;  %v221_v52 = vadd.f32 0.05243302, %v220_v45 }
  0x1f   :  { %v155_v50 = vmul.f32 %v154_v43, %v917_v29  ;;  %v184_v51 = vmul.f32 %v183_v44, %v919_v30  ;;  %v975_v55 = vmin.f32 %v254_v19, 16.0  ;;  %v980_v57 = vadd.f32 %v860_v4, %v35_v23 }
  0x20   :  { %v116_v13 = vadd.f32 1.0, %v115_v47  ;;  %v105_v28 = vadd.f32 1.1283791, %v104_v46  ;;  %v195_v59 = vmul.f32 %v194_v49, %v919_v30  ;;  %v230_v60 = vadd.f32 0.014752088, %v229_v54 }
  0x21   :  { %v156_v58 = vadd.f32 1.0, %v155_v50  ;;  %v984_v29 = vmul.f32 0.5, %v880_v14  ;;  %v145_v61 = vadd.f32 1.1283791, %v144_v48  ;;  %v987_v62 = vmul.f32 0.5, %v883_v15 }
  0x22   :  { %802 = vrcp.f32 %v116_v13  ;;  %v126_v63 = vand.u32 2147483647, %v116_v13  ;;  %v185_v0 = vadd.f32 1.1283791, %v184_v51  ;;  %v222_v1 = vmul.f32 %v221_v52, %v921_v31  ;;  %v19_v51 = vld [vmem:[%s1540_s0 + $0x38] sm:$0xff] }
  0x23   :  { %804 = vrcp.f32 %v156_v58  ;;  %v128_v2 = vand.u32 2147483648, %v116_v13  ;;  %v166_v5 = vand.u32 2147483647, %v156_v58  ;;  %v991_v6 = vmul.f32 0.5, %v886_v16 }
  0x24   :  { %v993_v30 = vmin.f32 %v294_v56, 16.0  ;;  %v106_v7 = vmul.f32 %v105_v28, %v889_v17  ;;  %v168_v14 = vand.u32 2147483648, %v156_v58  ;;  %v996_v8 = vadd.f32 1.0, %v195_v59 }
  0x25   :  { %v231_v15 = vmul.f32 %v230_v60, %v921_v31  ;;  %vm122_vm0 = vweird.f32 %v116_v13  ;;  %v146_v9 = vmul.f32 %v145_v61, %v892_v18  ;;  %vm162_vm1 = vweird.f32 %v156_v58 }
  0x26   :  { %v256_v10 = vmul.f32 2.1237322e-06, %v975_v55  ;;  %vm1001_vm2 = vcmp.eq.f32.partialorder %v126_v63, 8.507059e+37  ;;  %v1006_v16 = vmul.f32 %v185_v0, %v898_v20  ;;  %806 = vrcp.f32 %v996_v8 }
  0x27   :  { %v223_v17 = vadd.f32 0.18741608, %v222_v1  ;;  %v267_v12 = vmul.f32 3.8918573e-05, %v975_v55  ;;  %v129_v23 = vor.u32 1.1754944e-38, %v128_v2  ;;  %vm1010_vm3 = vcmp.eq.f32.partialorder %v166_v5, 8.507059e+37 }
  0x28   :  { %v803_v19 = vpop.eup %802  ;;  %v232_v18 = vadd.f32 0.112945676, %v231_v15  ;;  %v257_v25 = vadd.f32 0.00028619796, %v256_v10  ;;  %v169_v33 = vor.u32 1.1754944e-38, %v168_v14  ;;  %vm202_vm4 = vweird.f32 %v996_v8 }
  0x29   :  { %v805_v26 = vpop.eup %804  ;;  %v118_v27 = vmul.f32 %v803_v19, %v116_v13  ;;  %v206_v20 = vand.u32 2147483647, %v996_v8  ;;  %vm123_vm5 = vweird.f32 %v803_v19  ;;  %v208_v35 = vand.u32 2147483648, %v996_v8 }
  0x2a   :  { %v158_v34 = vmul.f32 %v805_v26, %v156_v58  ;;  %v233_v36 = vmul.f32 %v232_v18, %v921_v31  ;;  %v258_v38 = vmul.f32 %v257_v25, %v975_v55  ;;  %v268_v40 = vadd.f32 0.001143296, %v267_v12  ;;  %vm1024_vm7 = vmor %vm122_vm0, %vm123_vm5 }
  0x2b   :  { %v119_v37 = vsub.f32 1.0, %v118_v27  ;;  %v296_v41 = vmul.f32 2.1237322e-06, %v993_v30  ;;  %vm163_vm6 = vweird.f32 %v805_v26  ;;  %v224_v44 = vmul.f32 %v223_v17, %v921_v31 }
  0x2c   :  { %v159_v43 = vsub.f32 1.0, %v158_v34  ;;  %v234_v45 = vadd.f32 0.4994258, %v233_v36  ;;  %v807_v46 = vpop.eup %806  ;;  %v259_v48 = vadd.f32 0.0036580483, %v258_v38  ;;  %v269_v49 = vmul.f32 %v268_v40, %v975_v55  ;;  %vm1032_vm8 = vmor %vm162_vm1, %vm163_vm6 }
  0x2d   :  { %v120_v47 = vmul.f32 %v803_v19, %v119_v37  ;;  %v297_v50 = vadd.f32 0.00028619796, %v296_v41  ;;  %v198_v54 = vmul.f32 %v807_v46, %v996_v8  ;;  %v307_v28 = vmul.f32 3.8918573e-05, %v993_v30 }
  0x2e   :  { %v160_v52 = vmul.f32 %v805_v26, %v159_v43  ;;  %v235_v56 = vmul.f32 %v234_v45, %v921_v31  ;;  %v260_v61 = vmul.f32 %v259_v48, %v975_v55  ;;  %v270_v13 = vadd.f32 0.014752088, %v269_v49 }
  0x2f   :  { %v121_v59 = vadd.f32 %v803_v19, %v120_v47  ;;  %v298_v63 = vmul.f32 %v297_v50, %v993_v30  ;;  %v199_v1 = vsub.f32 1.0, %v198_v54  ;;  %vm203_vm9 = vweird.f32 %v807_v46 }
  0x30   :  { %v161_v0 = vadd.f32 %v805_v26, %v160_v52  ;;  %v1038_v2 = vadd.f32 1.0, %v235_v56  ;;  %vm1042_vm10 = vcmp.eq.f32.partialorder %v206_v20, 8.507059e+37  ;;  %v261_v58 = vadd.f32 0.05243302, %v260_v61  ;;  %vm1056_vm11 = vmor %vm202_vm4, %vm203_vm9 }
  0x31   :  { %v125_v31 = vsel %vm1024_vm7, %v803_v19, %v121_v59  ;;  %v271_v14 = vmul.f32 %v270_v13, %v975_v55  ;;  %v200_v17 = vmul.f32 %v807_v46, %v199_v1  ;;  %v209_v25 = vor.u32 1.1754944e-38, %v208_v35 }
  0x32   :  { %v130_v15 = vsel %vm1001_vm2, %v129_v23, %v125_v31  ;;  %v165_v10 = vsel %vm1032_vm8, %v805_v26, %v161_v0  ;;  %808 = vrcp.f32 %v1038_v2  ;;  %v299_v27 = vadd.f32 0.0036580483, %v298_v63  ;;  %v20_v31 = vld [vmem:[%s1540_s0 + $0x40] sm:$0xff] }
  0x33   :  { %v131_v12 = vmul.f32 %v130_v15, %v106_v7  ;;  %v170_v19 = vsel %vm1010_vm3, %v169_v33, %v165_v10  ;;  %v201_v23 = vadd.f32 %v807_v46, %v200_v17  ;;  %v262_v20 = vmul.f32 %v261_v58, %v975_v55 }
  0x34   :  { %v171_v11 = vmul.f32 %v170_v19, %v146_v9  ;;  %v308_v26 = vadd.f32 0.001143296, %v307_v28  ;;  %v225_v36 = vadd.f32 1.1283791, %v224_v44  ;;  %vm242_vm12 = vweird.f32 %v1038_v2 }
  0x35   :  { %v786_v34 = vclamps-f32 %v131_v12, 1.0  ;;  %v272_v7 = vadd.f32 0.112945676, %v271_v14  ;;  %v205_v8 = vsel %vm1056_vm11, %v807_v46, %v201_v23  ;;  %v246_v33 = vand.u32 2147483647, %v1038_v2 }
  0x36   :  { %v787_v24 = vclamps-f32 %v171_v11, 1.0  ;;  %v263_v37 = vadd.f32 0.18741608, %v262_v20  ;;  %v210_v9 = vsel %vm1042_vm10, %v209_v25, %v205_v8  ;;  %v300_v40 = vmul.f32 %v299_v27, %v993_v30 }
  0x37   :  { %v734_v38 = vadd.f32 1.0, %v786_v34  ;;  %v273_v35 = vmul.f32 %v272_v7, %v975_v55  ;;  %v211_v44 = vmul.f32 %v210_v9, %v1006_v16  ;;  %v309_v47 = vmul.f32 %v308_v26, %v993_v30 }
  0x38   :  { %v809_v41 = vpop.eup %808  ;;  %v735_v43 = vadd.f32 1.0, %v787_v24  ;;  %v264_v45 = vmul.f32 %v263_v37, %v975_v55  ;;  %v248_v49 = vand.u32 2147483648, %v1038_v2  ;;  %v301_v16 = vadd.f32 0.05243302, %v300_v40 }
  0x39   :  { %v750_v46 = vmul.f32 %v734_v38, %v966_v42  ;;  %v238_v48 = vmul.f32 %v809_v41, %v1038_v2  ;;  %v274_v50 = vadd.f32 0.4994258, %v273_v35  ;;  %v788_v54 = vclamps-f32 %v211_v44, 1.0 }
  0x3a   :  { %v751_v52 = vmul.f32 %v735_v43, %v984_v29  ;;  %vm243_vm13 = vweird.f32 %v809_v41  ;;  %v310_v28 = vadd.f32 0.014752088, %v309_v47  ;;  %v1084_v59 = vmul.f32 0.70710677, %v980_v57 }
  0x3b   :  { %766 = vst [vmem:[%s1542_s2] sm:$0xff] %v750_v46  ;;  %v239_v56 = vsub.f32 1.0, %v238_v48  ;;  %v275_v42 = vmul.f32 %v274_v50, %v975_v55  ;;  %v736_v60 = vadd.f32 1.0, %v788_v54  ;;  %v265_v29 = vadd.f32 1.1283791, %v264_v45  ;;  %vm1101_vm14 = vmor %vm242_vm12, %vm243_vm13 }
  0x3c   :  { %767 = vst [vmem:[%s1542_s2 + $0x8] sm:$0xff] %v751_v52  ;;  %v302_v61 = vmul.f32 %v301_v16, %v993_v30  ;;  %v36_v13 = vmul.f32 %v858_v3, %v19_v51  ;;  %v311_v1 = vmul.f32 %v310_v28, %v993_v30  ;;  %v334_v55 = vmul.f32 %v1084_v59, %v1084_v59 }
  0x3d   :  { %v240_v63 = vmul.f32 %v809_v41, %v239_v56  ;;  %v276_v0 = vadd.f32 1.0, %v275_v42  ;;  %v752_v5 = vmul.f32 %v736_v60, %v987_v62  ;;  %v249_v14 = vor.u32 1.1754944e-38, %v248_v49 }
  0x3e   :  { %v1106_v15 = vmul.f32 0.5, %v904_v22  ;;  %v1109_v10 = vadd.f32 %v860_v4, %v36_v13  ;;  %v226_v17 = vmul.f32 %v225_v36, %v901_v21  ;;  %vm247_vm15 = vcmp.eq.f32.partialorder %v246_v33, 8.507059e+37 }
  0x3f   :  { %v241_v12 = vadd.f32 %v809_v41, %v240_v63  ;;  %810 = vrcp.f32 %v276_v0  ;;  %768 = vst [vmem:[%s1542_s2 + $0x10] sm:$0xff] %v752_v5  ;;  %v1116_v62 = vmul.f32 0.5, %v933_v39  ;;  %v303_v2 = vadd.f32 0.18741608, %v302_v61 }
  0x40   :  { %v312_v19 = vadd.f32 0.112945676, %v311_v1  ;;  %v37_v22 = vmul.f32 %v858_v3, %v20_v31  ;;  %v1122_v25 = vmul.f32 %v265_v29, %v924_v32  ;;  %v1124_v21 = vmin.f32 %v334_v55, 16.0  ;;  %v22_v29 = vld [vmem:[%s1540_s0 + $0x50] sm:$0xff] }
  0x41   :  { %v245_v18 = vsel %vm1101_vm14, %v809_v41, %v241_v12  ;;  %v1127_v27 = vmul.f32 0.70710677, %v1109_v10  ;;  %vm282_vm0 = vweird.f32 %v276_v0  ;;  %v286_v23 = vand.u32 2147483647, %v276_v0 }
  0x42   :  { %v250_v11 = vsel %vm247_vm15, %v249_v14, %v245_v18  ;;  %v313_v39 = vmul.f32 %v312_v19, %v993_v30  ;;  %v336_v26 = vmul.f32 2.1237322e-06, %v1124_v21  ;;  %v347_v34 = vmul.f32 3.8918573e-05, %v1124_v21 }
  0x43   :  { %v251_v20 = vmul.f32 %v250_v11, %v226_v17  ;;  %v374_v36 = vmul.f32 %v1127_v27, %v1127_v27  ;;  %v288_v32 = vand.u32 2147483648, %v276_v0  ;;  %v304_v7 = vmul.f32 %v303_v2, %v993_v30 }
  0x44   :  { %v314_v24 = vadd.f32 0.4994258, %v313_v39  ;;  %v1136_v8 = vadd.f32 %v860_v4, %v37_v22  ;;  %v337_v38 = vadd.f32 0.00028619796, %v336_v26  ;;  %v348_v9 = vadd.f32 0.001143296, %v347_v34 }
  0x45   :  { %v811_v33 = vpop.eup %810  ;;  %v789_v37 = vclamps-f32 %v251_v20, 1.0  ;;  %v1138_v35 = vmin.f32 %v374_v36, 16.0  ;;  %vm1156_vm2 = vcmp.eq.f32.partialorder %v286_v23, 8.507059e+37  ;;  %v289_v60 = vor.u32 1.1754944e-38, %v288_v32 }
  0x46   :  { %v278_v40 = vmul.f32 %v811_v33, %v276_v0  ;;  %vm283_vm1 = vweird.f32 %v811_v33  ;;  %v315_v41 = vmul.f32 %v314_v24, %v993_v30  ;;  %v1142_v43 = vmul.f32 0.70710677, %v1136_v8  ;;  %v21_v30 = vld [vmem:[%s1540_s0 + $0x48] sm:$0xff] }
  0x47   :  { %v737_v44 = vadd.f32 1.0, %v789_v37  ;;  %v338_v45 = vmul.f32 %v337_v38, %v1124_v21  ;;  %v349_v47 = vmul.f32 %v348_v9, %v1124_v21  ;;  %v376_v46 = vmul.f32 2.1237322e-06, %v1138_v35  ;;  %vm1166_vm3 = vmor %vm282_vm0, %vm283_vm1 }
  0x48   :  { %v279_v48 = vsub.f32 1.0, %v278_v40  ;;  %v1147_v49 = vadd.f32 1.0, %v315_v41  ;;  %v387_v50 = vmul.f32 3.8918573e-05, %v1138_v35  ;;  %v414_v51 = vmul.f32 %v1142_v43, %v1142_v43 }
  0x49   :  { %v753_v52 = vmul.f32 %v737_v44, %v991_v6  ;;  %v339_v54 = vadd.f32 0.0036580483, %v338_v45  ;;  %v350_v16 = vadd.f32 0.014752088, %v349_v47  ;;  %v377_v56 = vadd.f32 0.00028619796, %v376_v46 }
  0x4a   :  { %v280_v42 = vmul.f32 %v811_v33, %v279_v48  ;;  %812 = vrcp.f32 %v1147_v49  ;;  %v305_v6 = vadd.f32 1.1283791, %v304_v7  ;;  %v388_v55 = vadd.f32 0.001143296, %v387_v50 }
  0x4b   :  { %769 = vst [vmem:[%s1542_s2 + $0x18] sm:$0xff] %v753_v52  ;;  %v340_v61 = vmul.f32 %v339_v54, %v1124_v21  ;;  %v351_v13 = vmul.f32 %v350_v16, %v1124_v21  ;;  %v378_v63 = vmul.f32 %v377_v56, %v1138_v35  ;;  %v1173_v31 = vmin.f32 %v414_v51, 16.0 }
  0x4c   :  { %v281_v1 = vadd.f32 %v811_v33, %v280_v42  ;;  %v38_v5 = vmul.f32 %v858_v3, %v21_v30  ;;  %vm322_vm4 = vweird.f32 %v1147_v49  ;;  %v328_v0 = vand.u32 2147483648, %v1147_v49 }
  0x4d   :  { %v341_v58 = vadd.f32 0.05243302, %v340_v61  ;;  %v352_v14 = vadd.f32 0.112945676, %v351_v13  ;;  %v379_v12 = vadd.f32 0.0036580483, %v378_v63  ;;  %v389_v2 = vmul.f32 %v388_v55, %v1138_v35 }
  0x4e   :  { %v285_v17 = vsel %vm1166_vm3, %v811_v33, %v281_v1  ;;  %v416_v19 = vmul.f32 2.1237322e-06, %v1173_v31  ;;  %v326_v18 = vand.u32 2147483647, %v1147_v49  ;;  %v329_v7 = vor.u32 1.1754944e-38, %v328_v0 }
  0x4f   :  { %v290_v22 = vsel %vm1156_vm2, %v289_v60, %v285_v17  ;;  %v342_v11 = vmul.f32 %v341_v58, %v1124_v21  ;;  %v353_v23 = vmul.f32 %v352_v14, %v1124_v21  ;;  %v380_v26 = vmul.f32 %v379_v12, %v1138_v35  ;;  %v23_v12 = vld [vmem:[%s1540_s0 + $0x58] sm:$0xff] }
  0x50   :  { %v813_v39 = vpop.eup %812  ;;  %v291_v20 = vmul.f32 %v290_v22, %v1122_v25  ;;  %v390_v34 = vadd.f32 0.014752088, %v389_v2  ;;  %v417_v36 = vadd.f32 0.00028619796, %v416_v19  ;;  %v427_v30 = vmul.f32 3.8918573e-05, %v1173_v31 }
  0x51   :  { %v318_v32 = vmul.f32 %v813_v39, %v1147_v49  ;;  %v343_v24 = vadd.f32 0.18741608, %v342_v11  ;;  %v354_v33 = vadd.f32 0.4994258, %v353_v23  ;;  %v381_v38 = vadd.f32 0.05243302, %v380_v26 }
  0x52   :  { %v790_v37 = vclamps-f32 %v291_v20, 1.0  ;;  %v391_v9 = vmul.f32 %v390_v34, %v1138_v35  ;;  %v418_v40 = vmul.f32 %v417_v36, %v1173_v31  ;;  %vm323_vm5 = vweird.f32 %v813_v39 }
  0x53   :  { %v319_v41 = vsub.f32 1.0, %v318_v32  ;;  %v344_v44 = vmul.f32 %v343_v24, %v1124_v21  ;;  %v355_v25 = vmul.f32 %v354_v33, %v1124_v21  ;;  %v382_v47 = vmul.f32 %v381_v38, %v1138_v35  ;;  %vm1202_vm6 = vmor %vm322_vm4, %vm323_vm5 }
  0x54   :  { %v738_v45 = vadd.f32 1.0, %v790_v37  ;;  %v392_v46 = vadd.f32 0.112945676, %v391_v9  ;;  %v419_v48 = vadd.f32 0.0036580483, %v418_v40  ;;  %v1197_v52 = vadd.f32 %v860_v4, %v38_v5 }
  0x55   :  { %v320_v50 = vmul.f32 %v813_v39, %v319_v41  ;;  %v356_v51 = vadd.f32 1.0, %v355_v25  ;;  %v383_v21 = vadd.f32 0.18741608, %v382_v47  ;;  %v306_v28 = vmul.f32 %v305_v6, %v943_v53 }
  0x56   :  { %v754_v54 = vmul.f32 %v738_v45, %v1106_v15  ;;  %v393_v56 = vmul.f32 %v392_v46, %v1138_v35  ;;  %v420_v42 = vmul.f32 %v419_v48, %v1173_v31  ;;  %vm327_vm7 = vcmp.eq.f32.partialorder %v326_v18, 8.507059e+37 }
  0x57   :  { %v321_v60 = vadd.f32 %v813_v39, %v320_v50  ;;  %814 = vrcp.f32 %v356_v51  ;;  %v345_v15 = vadd.f32 1.1283791, %v344_v44  ;;  %v428_v63 = vadd.f32 0.001143296, %v427_v30 }
  0x58   :  { %770 = vst [vmem:[%s1542_s2 + $0x20] sm:$0xff] %v754_v54  ;;  %v394_v49 = vadd.f32 0.4994258, %v393_v56  ;;  %v421_v13 = vadd.f32 0.05243302, %v420_v42  ;;  %v1221_v1 = vmul.f32 0.5, %v980_v57  ;;  %v384_v5 = vmul.f32 %v383_v21, %v1138_v35 }
  0x59   :  { %v325_v61 = vsel %vm1202_vm6, %v813_v39, %v321_v60  ;;  %v1218_v53 = vmul.f32 0.70710677, %v1197_v52  ;;  %v366_v55 = vand.u32 2147483647, %v356_v51  ;;  %v429_v17 = vmul.f32 %v428_v63, %v1173_v31 }
  0x5a   :  { %v330_v6 = vsel %vm327_vm7, %v329_v7, %v325_v61  ;;  %v395_v58 = vmul.f32 %v394_v49, %v1138_v35  ;;  %v422_v14 = vmul.f32 %v421_v13, %v1173_v31  ;;  %v346_v2 = vmul.f32 %v345_v15, %v1084_v59 }
  0x5b   :  { %v331_v0 = vmul.f32 %v330_v6, %v306_v28  ;;  %vm362_vm8 = vweird.f32 %v356_v51  ;;  %v454_v57 = vmul.f32 %v1218_v53, %v1218_v53  ;;  %v39_v19 = vmul.f32 %v858_v3, %v22_v29 }
  0x5c   :  { %v368_v11 = vand.u32 2147483648, %v356_v51  ;;  %v1234_v35 = vadd.f32 1.0, %v395_v58  ;;  %v430_v23 = vadd.f32 0.014752088, %v429_v17  ;;  %vm1236_vm9 = vcmp.eq.f32.partialorder %v366_v55, 8.507059e+37 }
  0x5d   :  { %v815_v22 = vpop.eup %814  ;;  %v791_v18 = vclamps-f32 %v331_v0, 1.0  ;;  %v385_v26 = vadd.f32 1.1283791, %v384_v5  ;;  %v40_v59 = vmul.f32 %v858_v3, %v23_v12  ;;  %v423_v36 = vadd.f32 0.18741608, %v422_v14 }
  0x5e   :  { %v358_v39 = vmul.f32 %v815_v22, %v356_v51  ;;  %816 = vrcp.f32 %v1234_v35  ;;  %v1242_v32 = vmin.f32 %v454_v57, 16.0  ;;  %vm363_vm10 = vweird.f32 %v815_v22 }
  0x5f   :  { %v739_v34 = vadd.f32 1.0, %v791_v18  ;;  %v431_v24 = vmul.f32 %v430_v23, %v1173_v31  ;;  %v1246_v33 = vadd.f32 %v860_v4, %v39_v19  ;;  %v369_v38 = vor.u32 1.1754944e-38, %v368_v11  ;;  %vm1257_vm11 = vmor %vm362_vm8, %vm363_vm10 }
  0x60   :  { %v359_v7 = vsub.f32 1.0, %v358_v39  ;;  %v408_v9 = vand.u32 2147483648, %v1234_v35  ;;  %v456_v40 = vmul.f32 2.1237322e-06, %v1242_v32  ;;  %v386_v44 = vmul.f32 %v385_v26, %v1127_v27  ;;  %v24_v27 = vld [vmem:[%s1540_s0 + $0x60] sm:$0xff] }
  0x61   :  { %v755_v37 = vmul.f32 %v739_v34, %v1116_v62  ;;  %v406_v25 = vand.u32 2147483647, %v1234_v35  ;;  %v432_v45 = vadd.f32 0.112945676, %v431_v24  ;;  %vm402_vm12 = vweird.f32 %v1234_v35 }
  0x62   :  { %v360_v41 = vmul.f32 %v815_v22, %v359_v7  ;;  %v457_v62 = vadd.f32 0.00028619796, %v456_v40  ;;  %v467_v46 = vmul.f32 3.8918573e-05, %v1242_v32  ;;  %v1264_v48 = vadd.f32 %v860_v4, %v40_v59 }
  0x63   :  { %771 = vst [vmem:[%s1542_s2 + $0x28] sm:$0xff] %v755_v37  ;;  %v424_v30 = vmul.f32 %v423_v36, %v1173_v31  ;;  %v433_v51 = vmul.f32 %v432_v45, %v1173_v31  ;;  %v1272_v54 = vmul.f32 0.70710677, %v1246_v33  ;;  %v409_v21 = vor.u32 1.1754944e-38, %v408_v9 }
  0x64   :  { %v361_v50 = vadd.f32 %v815_v22, %v360_v41  ;;  %v817_v16 = vpop.eup %816  ;;  %v458_v56 = vmul.f32 %v457_v62, %v1242_v32  ;;  %v468_v42 = vadd.f32 0.001143296, %v467_v46  ;;  %v1276_v28 = vmul.f32 0.70710677, %v1264_v48 }
  0x65   :  { %v398_v15 = vmul.f32 %v817_v16, %v1234_v35  ;;  %v434_v49 = vadd.f32 0.4994258, %v433_v51  ;;  %v41_v29 = vmul.f32 %v858_v3, %v24_v27  ;;  %v494_v6 = vmul.f32 %v1272_v54, %v1272_v54 }
  0x66   :  { %v365_v60 = vsel %vm1257_vm11, %v815_v22, %v361_v50  ;;  %v459_v13 = vadd.f32 0.0036580483, %v458_v56  ;;  %v469_v63 = vmul.f32 %v468_v42, %v1242_v32  ;;  %vm403_vm13 = vweird.f32 %v817_v16 }
  0x67   :  { %v370_v61 = vsel %vm1236_vm9, %v369_v38, %v365_v60  ;;  %v399_v5 = vsub.f32 1.0, %v398_v15  ;;  %v435_v0 = vmul.f32 %v434_v49, %v1173_v31  ;;  %v1289_v17 = vmin.f32 %v494_v6, 16.0  ;;  %vm1298_vm14 = vmor %vm402_vm12, %vm403_vm13 }
  0x68   :  { %v371_v55 = vmul.f32 %v370_v61, %v346_v2  ;;  %v460_v58 = vmul.f32 %v459_v13, %v1242_v32  ;;  %v470_v14 = vadd.f32 0.014752088, %v469_v63  ;;  %v534_v12 = vmul.f32 %v1276_v28, %v1276_v28 }
  0x69   :  { %v400_v19 = vmul.f32 %v817_v16, %v399_v5  ;;  %v436_v22 = vadd.f32 1.0, %v435_v0  ;;  %v1294_v18 = vadd.f32 %v860_v4, %v41_v29  ;;  %v496_v23 = vmul.f32 2.1237322e-06, %v1289_v17 }
  0x6a   :  { %v792_v57 = vclamps-f32 %v371_v55, 1.0  ;;  %v461_v31 = vadd.f32 0.05243302, %v460_v58  ;;  %v471_v11 = vmul.f32 %v470_v14, %v1242_v32  ;;  %v507_v39 = vmul.f32 3.8918573e-05, %v1289_v17 }
  0x6b   :  { %v401_v26 = vadd.f32 %v817_v16, %v400_v19  ;;  %vm407_vm15 = vcmp.eq.f32.partialorder %v406_v25, 8.507059e+37  ;;  %818 = vrcp.f32 %v436_v22  ;;  %v69_v59 = vmul.f32 0.5, %v1109_v10 }
  0x6c   :  { %v740_v20 = vadd.f32 1.0, %v792_v57  ;;  %v462_v34 = vmul.f32 %v461_v31, %v1242_v32  ;;  %v472_v35 = vadd.f32 0.112945676, %v471_v11  ;;  %v1307_v36 = vmin.f32 %v534_v12, 16.0 }
  0x6d   :  { %v405_v24 = vsel %vm1298_vm14, %v817_v16, %v401_v26  ;;  %v497_v37 = vadd.f32 0.00028619796, %v496_v23  ;;  %v508_v38 = vadd.f32 0.001143296, %v507_v39  ;;  %v425_v40 = vadd.f32 1.1283791, %v424_v30 }
  0x6e   :  { %v756_v7 = vmul.f32 %v740_v20, %v1221_v1  ;;  %v410_v9 = vsel %vm407_vm15, %v409_v21, %v405_v24  ;;  %v463_v41 = vadd.f32 0.18741608, %v462_v34  ;;  %v1313_v25 = vmul.f32 0.70710677, %v1294_v18 }
  0x6f   :  { %v411_v10 = vmul.f32 %v410_v9, %v386_v44  ;;  %vm442_vm0 = vweird.f32 %v436_v22  ;;  %v473_v45 = vmul.f32 %v472_v35, %v1242_v32  ;;  %v498_v1 = vmul.f32 %v497_v37, %v1289_v17 }
  0x70   :  { %772 = vst [vmem:[%s1542_s2 + $0x30] sm:$0xff] %v756_v7  ;;  %v446_v47 = vand.u32 2147483647, %v436_v22  ;;  %v509_v62 = vmul.f32 %v508_v38, %v1289_v17  ;;  %v536_v46 = vmul.f32 2.1237322e-06, %v1307_v36  ;;  %v448_v51 = vand.u32 2147483648, %v436_v22 }
  0x71   :  { %v547_v27 = vmul.f32 3.8918573e-05, %v1307_v36  ;;  %v819_v50 = vpop.eup %818  ;;  %v793_v30 = vclamps-f32 %v411_v10, 1.0  ;;  %v474_v16 = vadd.f32 0.4994258, %v473_v45  ;;  %v464_v44 = vmul.f32 %v463_v41, %v1242_v32  ;;  %v25_v45 = vld [vmem:[%s1540_s0 + $0x68] sm:$0xff] }
  0x72   :  { %v499_v21 = vadd.f32 0.0036580483, %v498_v1  ;;  %v438_v56 = vmul.f32 %v819_v50, %v436_v22  ;;  %v510_v42 = vadd.f32 0.014752088, %v509_v62  ;;  %v574_v60 = vmul.f32 %v1313_v25, %v1313_v25 }
  0x73   :  { %v741_v15 = vadd.f32 1.0, %v793_v30  ;;  %v475_v49 = vmul.f32 %v474_v16, %v1242_v32  ;;  %v537_v61 = vadd.f32 0.00028619796, %v536_v46  ;;  %vm443_vm1 = vweird.f32 %v819_v50 }
  0x74   :  { %v500_v29 = vmul.f32 %v499_v21, %v1289_v17  ;;  %v439_v13 = vsub.f32 1.0, %v438_v56  ;;  %v511_v63 = vmul.f32 %v510_v42, %v1289_v17  ;;  %v548_v6 = vadd.f32 0.001143296, %v547_v27  ;;  %vm1336_vm2 = vmor %vm442_vm0, %vm443_vm1 }
  0x75   :  { %v757_v55 = vmul.f32 %v741_v15, %v69_v59  ;;  %v476_v5 = vadd.f32 1.0, %v475_v49  ;;  %v538_v58 = vmul.f32 %v537_v61, %v1307_v36  ;;  %v426_v32 = vmul.f32 %v425_v40, %v1142_v43 }
  0x76   :  { %v501_v0 = vadd.f32 0.05243302, %v500_v29  ;;  %v440_v14 = vmul.f32 %v819_v50, %v439_v13  ;;  %v512_v12 = vadd.f32 0.112945676, %v511_v63  ;;  %v549_v57 = vmul.f32 %v548_v6, %v1307_v36 }
  0x77   :  { %773 = vst [vmem:[%s1542_s2 + $0x38] sm:$0xff] %v757_v55  ;;  %vm447_vm3 = vcmp.eq.f32.partialorder %v446_v47, 8.507059e+37  ;;  %v449_v2 = vor.u32 1.1754944e-38, %v448_v51  ;;  %820 = vrcp.f32 %v476_v5  ;;  %v539_v39 = vadd.f32 0.0036580483, %v538_v58  ;;  %v26_v55 = vld [vmem:[%s1540_s0 + $0x70] sm:$0xff] }
  0x78   :  { %v441_v31 = vadd.f32 %v819_v50, %v440_v14  ;;  %v502_v11 = vmul.f32 %v501_v0, %v1289_v17  ;;  %v513_v23 = vmul.f32 %v512_v12, %v1289_v17  ;;  %v70_v20 = vmul.f32 0.5, %v1136_v8 }
  0x79   :  { %v465_v26 = vadd.f32 1.1283791, %v464_v44  ;;  %v550_v59 = vadd.f32 0.014752088, %v549_v57  ;;  %v1343_v34 = vmin.f32 %v574_v60, 16.0  ;;  %v540_v7 = vmul.f32 %v539_v39, %v1307_v36 }
  0x7a   :  { %v445_v43 = vsel %vm1336_vm2, %v819_v50, %v441_v31  ;;  %v503_v22 = vadd.f32 0.18741608, %v502_v11  ;;  %v514_v35 = vadd.f32 0.4994258, %v513_v23  ;;  %v486_v8 = vand.u32 2147483647, %v476_v5 }
  0x7b   :  { %v450_v24 = vsel %vm447_vm3, %v449_v2, %v445_v43  ;;  %v551_v37 = vmul.f32 %v550_v59, %v1307_v36  ;;  %v576_v38 = vmul.f32 2.1237322e-06, %v1343_v34  ;;  %v587_v9 = vmul.f32 3.8918573e-05, %v1343_v34 }
  0x7c   :  { %v451_v40 = vmul.f32 %v450_v24, %v426_v32  ;;  %v515_v41 = vmul.f32 %v514_v35, %v1289_v17  ;;  %v541_v10 = vadd.f32 0.05243302, %v540_v7  ;;  %vm482_vm4 = vweird.f32 %v476_v5 }
  0x7d   :  { %v821_v1 = vpop.eup %820  ;;  %v488_v47 = vand.u32 2147483648, %v476_v5  ;;  %v552_v62 = vadd.f32 0.112945676, %v551_v37  ;;  %v577_v46 = vadd.f32 0.00028619796, %v576_v38  ;;  %v504_v30 = vmul.f32 %v503_v22, %v1289_v17  ;;  %v27_v38 = vld [vmem:[%s1540_s0 + $0x78] sm:$0xff] }
  0x7e   :  { %v794_v27 = vclamps-f32 %v451_v40, 1.0  ;;  %v478_v50 = vmul.f32 %v821_v1, %v476_v5  ;;  %v588_v51 = vadd.f32 0.001143296, %v587_v9  ;;  %v516_v16 = vadd.f32 1.0, %v515_v41 }
  0x7f   :  { %v542_v21 = vmul.f32 %v541_v10, %v1307_v36  ;;  %v553_v56 = vmul.f32 %v552_v62, %v1307_v36  ;;  %v42_v44 = vmul.f32 %v858_v3, %v25_v45  ;;  %vm483_vm5 = vweird.f32 %v821_v1 }
  0x80   :  { %v742_v42 = vadd.f32 1.0, %v794_v27  ;;  %v479_v60 = vsub.f32 1.0, %v478_v50  ;;  %v578_v15 = vmul.f32 %v577_v46, %v1343_v34  ;;  %v71_v49 = vmul.f32 0.5, %v1197_v52  ;;  %vm1370_vm7 = vmor %vm482_vm4, %vm483_vm5 }
  0x81   :  { %v466_v29 = vmul.f32 %v465_v26, %v1218_v53  ;;  %vm1362_vm6 = vcmp.eq.f32.partialorder %v486_v8, 8.507059e+37  ;;  %822 = vrcp.f32 %v516_v16  ;;  %v543_v63 = vadd.f32 0.18741608, %v542_v21 }
  0x82   :  { %v758_v17 = vmul.f32 %v742_v42, %v70_v20  ;;  %v480_v13 = vmul.f32 %v821_v1, %v479_v60  ;;  %v554_v6 = vadd.f32 0.4994258, %v553_v56  ;;  %v489_v52 = vor.u32 1.1754944e-38, %v488_v47 }
  0x83   :  { %v505_v53 = vadd.f32 1.1283791, %v504_v30  ;;  %v579_v58 = vadd.f32 0.0036580483, %v578_v15  ;;  %v589_v14 = vmul.f32 %v588_v51, %v1343_v34  ;;  %v526_v57 = vand.u32 2147483647, %v516_v16 }
  0x84   :  { %774 = vst [vmem:[%s1542_s2 + $0x40] sm:$0xff] %v758_v17  ;;  %v481_v12 = vadd.f32 %v821_v1, %v480_v13  ;;  %v555_v32 = vmul.f32 %v554_v6, %v1307_v36  ;;  %v1380_v19 = vadd.f32 %v860_v4, %v42_v44  ;;  %v544_v5 = vmul.f32 %v543_v63, %v1307_v36 }
  0x85   :  { %v580_v2 = vmul.f32 %v579_v58, %v1343_v34  ;;  %v590_v31 = vadd.f32 0.014752088, %v589_v14  ;;  %v43_v11 = vmul.f32 %v858_v3, %v26_v55  ;;  %v1388_v39 = vmul.f32 0.5, %v1246_v33 }
  0x86   :  { %v485_v23 = vsel %vm1370_vm7, %v821_v1, %v481_v12  ;;  %v528_v20 = vand.u32 2147483648, %v516_v16  ;;  %v1390_v26 = vadd.f32 1.0, %v555_v32  ;;  %v1396_v22 = vmul.f32 0.70710677, %v1380_v19 }
  0x87   :  { %v823_v59 = vpop.eup %822  ;;  %v490_v43 = vsel %vm1362_vm6, %v489_v52, %v485_v23  ;;  %v591_v36 = vmul.f32 %v590_v31, %v1343_v34  ;;  %v1399_v35 = vadd.f32 %v860_v4, %v43_v11  ;;  %v506_v24 = vmul.f32 %v505_v53, %v1272_v54 }
  0x88   :  { %v491_v7 = vmul.f32 %v490_v43, %v466_v29  ;;  %v518_v33 = vmul.f32 %v823_v59, %v516_v16  ;;  %v581_v37 = vadd.f32 0.05243302, %v580_v2  ;;  %vm522_vm8 = vweird.f32 %v516_v16 }
  0x89   :  { %vm1405_vm9 = vcmp.eq.f32.partialorder %v526_v57, 8.507059e+37  ;;  %v545_v40 = vadd.f32 1.1283791, %v544_v5  ;;  %824 = vrcp.f32 %v1390_v26  ;;  %vm523_vm10 = vweird.f32 %v823_v59 }
  0x8a   :  { %v795_v8 = vclamps-f32 %v491_v7, 1.0  ;;  %v519_v41 = vsub.f32 1.0, %v518_v33  ;;  %v592_v10 = vadd.f32 0.112945676, %v591_v36  ;;  %v529_v45 = vor.u32 1.1754944e-38, %v528_v20  ;;  %vm1419_vm11 = vmor %vm522_vm8, %vm523_vm10 }
  0x8b   :  { %v614_v54 = vmul.f32 %v1396_v22, %v1396_v22  ;;  %v1413_v1 = vmul.f32 0.70710677, %v1399_v35  ;;  %v44_v47 = vmul.f32 %v858_v3, %v27_v38  ;;  %v582_v27 = vmul.f32 %v581_v37, %v1343_v34 }
  0x8c   :  { %v743_v62 = vadd.f32 1.0, %v795_v8  ;;  %v520_v46 = vmul.f32 %v823_v59, %v519_v41  ;;  %v593_v50 = vmul.f32 %v592_v10, %v1343_v34  ;;  %v546_v51 = vmul.f32 %v545_v40, %v1276_v28 }
  0x8d   :  { %vm562_vm12 = vweird.f32 %v1390_v26  ;;  %v1425_v21 = vmin.f32 %v614_v54, 16.0  ;;  %v654_v3 = vmul.f32 %v1413_v1, %v1413_v1  ;;  %v566_v42 = vand.u32 2147483647, %v1390_v26 }
  0x8e   :  { %v759_v56 = vmul.f32 %v743_v62, %v71_v49  ;;  %v521_v44 = vadd.f32 %v823_v59, %v520_v46  ;;  %v594_v60 = vadd.f32 0.4994258, %v593_v50  ;;  %v568_v16 = vand.u32 2147483648, %v1390_v26 }
  0x8f   :  { %v825_v15 = vpop.eup %824  ;;  %v616_v29 = vmul.f32 2.1237322e-06, %v1425_v21  ;;  %v627_v61 = vmul.f32 3.8918573e-05, %v1425_v21  ;;  %v1433_v28 = vmin.f32 %v654_v3, 16.0  ;;  %v1442_v63 = vadd.f32 %v860_v4, %v44_v47 }
  0x90   :  { %775 = vst [vmem:[%s1542_s2 + $0x48] sm:$0xff] %v759_v56  ;;  %v525_v49 = vsel %vm1419_vm11, %v823_v59, %v521_v44  ;;  %v558_v17 = vmul.f32 %v825_v15, %v1390_v26  ;;  %v583_v13 = vadd.f32 0.18741608, %v582_v27  ;;  %v595_v55 = vmul.f32 %v594_v60, %v1343_v34 }
  0x91   :  { %v530_v6 = vsel %vm1405_vm9, %v529_v45, %v525_v49  ;;  %v617_v0 = vadd.f32 0.00028619796, %v616_v29  ;;  %v628_v52 = vadd.f32 0.001143296, %v627_v61  ;;  %vm563_vm13 = vweird.f32 %v825_v15 }
  0x92   :  { %v531_v53 = vmul.f32 %v530_v6, %v506_v24  ;;  %v559_v58 = vsub.f32 1.0, %v558_v17  ;;  %v656_v14 = vmul.f32 2.1237322e-06, %v1433_v28  ;;  %v1448_v12 = vadd.f32 1.0, %v595_v55  ;;  %vm1459_vm15 = vmor %vm562_vm12, %vm563_vm13 }
  0x93   :  { %v618_v57 = vmul.f32 %v617_v0, %v1425_v21  ;;  %v629_v32 = vmul.f32 %v628_v52, %v1425_v21  ;;  %v667_v4 = vmul.f32 3.8918573e-05, %v1433_v28  ;;  %vm1453_vm14 = vcmp.eq.f32.partialorder %v566_v42, 8.507059e+37 }
  0x94   :  { %v796_v5 = vclamps-f32 %v531_v53, 1.0  ;;  %v560_v2 = vmul.f32 %v825_v15, %v559_v58  ;;  %v657_v11 = vadd.f32 0.00028619796, %v656_v14  ;;  %v569_v20 = vor.u32 1.1754944e-38, %v568_v16 }
  0x95   :  { %v584_v59 = vmul.f32 %v583_v13, %v1343_v34  ;;  %826 = vrcp.f32 %v1448_v12  ;;  %v1466_v43 = vmul.f32 0.70710677, %v1442_v63  ;;  %v619_v24 = vadd.f32 0.0036580483, %v618_v57 }
  0x96   :  { %v744_v36 = vadd.f32 1.0, %v796_v5  ;;  %v561_v7 = vadd.f32 %v825_v15, %v560_v2  ;;  %v630_v33 = vadd.f32 0.014752088, %v629_v32  ;;  %v658_v37 = vmul.f32 %v657_v11, %v1433_v28 }
  0x97   :  { %v668_v38 = vadd.f32 0.001143296, %v667_v4  ;;  %v620_v40 = vmul.f32 %v619_v24, %v1425_v21  ;;  %v694_v45 = vmul.f32 %v1466_v43, %v1466_v43  ;;  %v585_v47 = vadd.f32 1.1283791, %v584_v59 }
  0x98   :  { %v760_v26 = vmul.f32 %v744_v36, %v1388_v39  ;;  %v565_v9 = vsel %vm1459_vm15, %v825_v15, %v561_v7  ;;  %v631_v34 = vmul.f32 %v630_v33, %v1425_v21  ;;  %v659_v41 = vadd.f32 0.0036580483, %v658_v37 }
  0x99   :  { %v570_v8 = vsel %vm1453_vm14, %v569_v20, %v565_v9  ;;  %v669_v10 = vmul.f32 %v668_v38, %v1433_v28  ;;  %v73_v39 = vmul.f32 0.5, %v1264_v48  ;;  %vm602_vm0 = vweird.f32 %v1448_v12 }
  0x9a   :  { %776 = vst [vmem:[%s1542_s2 + $0x50] sm:$0xff] %v760_v26  ;;  %v571_v54 = vmul.f32 %v570_v8, %v546_v51  ;;  %v632_v62 = vadd.f32 0.112945676, %v631_v34  ;;  %v621_v27 = vadd.f32 0.05243302, %v620_v40  ;;  %v1484_v30 = vmin.f32 %v694_v45, 16.0 }
  0x9b   :  { %v827_v46 = vpop.eup %826  ;;  %v670_v50 = vadd.f32 0.014752088, %v669_v10  ;;  %v606_v44 = vand.u32 2147483647, %v1448_v12  ;;  %v660_v42 = vmul.f32 %v659_v41, %v1433_v28  ;;  %v608_v60 = vand.u32 2147483648, %v1448_v12 }
  0x9c   :  { %v797_v3 = vclamps-f32 %v571_v54, 1.0  ;;  %v598_v56 = vmul.f32 %v827_v46, %v1448_v12  ;;  %v633_v48 = vmul.f32 %v632_v62, %v1425_v21  ;;  %v696_v15 = vmul.f32 2.1237322e-06, %v1484_v30 }
  0x9d   :  { %v671_v51 = vmul.f32 %v670_v50, %v1433_v28  ;;  %vm603_vm1 = vweird.f32 %v827_v46  ;;  %v707_v61 = vmul.f32 3.8918573e-05, %v1484_v30  ;;  %v622_v49 = vmul.f32 %v621_v27, %v1425_v21 }
  0x9e   :  { %v745_v16 = vadd.f32 1.0, %v797_v3  ;;  %v599_v29 = vsub.f32 1.0, %v598_v56  ;;  %v634_v17 = vadd.f32 0.4994258, %v633_v48  ;;  %v661_v0 = vadd.f32 0.05243302, %v660_v42  ;;  %vm1497_vm2 = vmor %vm602_vm0, %vm603_vm1 }
  0x9f   :  { %v672_v13 = vadd.f32 0.112945676, %v671_v51  ;;  %v697_v52 = vadd.f32 0.00028619796, %v696_v15  ;;  %v609_v58 = vor.u32 1.1754944e-38, %v608_v60  ;;  %v586_v4 = vmul.f32 %v585_v47, %v1313_v25 }
  0xa0   :  { %v761_v6 = vmul.f32 %v745_v16, %v73_v39  ;;  %v600_v55 = vmul.f32 %v827_v46, %v599_v29  ;;  %v635_v14 = vmul.f32 %v634_v17, %v1425_v21  ;;  %v708_v32 = vadd.f32 0.001143296, %v707_v61 }
  0xa1   :  { %v673_v57 = vmul.f32 %v672_v13, %v1433_v28  ;;  %vm607_vm3 = vcmp.eq.f32.partialorder %v606_v44, 8.507059e+37  ;;  %v698_v12 = vmul.f32 %v697_v52, %v1484_v30  ;;  %v623_v20 = vadd.f32 0.18741608, %v622_v49 }
  0xa2   :  { %777 = vst [vmem:[%s1542_s2 + $0x58] sm:$0xff] %v761_v6  ;;  %v601_v5 = vadd.f32 %v827_v46, %v600_v55  ;;  %v636_v2 = vadd.f32 1.0, %v635_v14  ;;  %v709_v11 = vmul.f32 %v708_v32, %v1484_v30  ;;  %v662_v59 = vmul.f32 %v661_v0, %v1433_v28 }
  0xa3   :  { %v674_v31 = vadd.f32 0.4994258, %v673_v57  ;;  %v699_v7 = vadd.f32 0.0036580483, %v698_v12  ;;  %v74_v33 = vmul.f32 0.5, %v1294_v18  ;;  %v624_v26 = vmul.f32 %v623_v20, %v1425_v21 }
  0xa4   :  { %v605_v23 = vsel %vm1497_vm2, %v827_v46, %v601_v5  ;;  %828 = vrcp.f32 %v636_v2  ;;  %v710_v37 = vadd.f32 0.014752088, %v709_v11  ;;  %v663_v9 = vadd.f32 0.18741608, %v662_v59 }
  0xa5   :  { %v610_v36 = vsel %vm607_vm3, %v609_v58, %v605_v23  ;;  %v675_v25 = vmul.f32 %v674_v31, %v1433_v28  ;;  %v700_v34 = vmul.f32 %v699_v7, %v1484_v30  ;;  %v625_v54 = vadd.f32 1.1283791, %v624_v26 }
  0xa6   :  { %v611_v24 = vmul.f32 %v610_v36, %v586_v4  ;;  %v711_v8 = vmul.f32 %v710_v37, %v1484_v30  ;;  %v664_v62 = vmul.f32 %v663_v9, %v1433_v28  ;;  %v648_v18 = vand.u32 2147483648, %v636_v2 }
  0xa7   :  { %v676_v40 = vadd.f32 1.0, %v675_v25  ;;  %v701_v46 = vadd.f32 0.05243302, %v700_v34  ;;  %vm642_vm4 = vweird.f32 %v636_v2  ;;  %v646_v50 = vand.u32 2147483647, %v636_v2 }
  0xa8   :  { %v798_v38 = vclamps-f32 %v611_v24, 1.0  ;;  %v712_v45 = vadd.f32 0.112945676, %v711_v8  ;;  %v626_v44 = vmul.f32 %v625_v54, %v1396_v22  ;;  %v665_v60 = vadd.f32 1.1283791, %v664_v62 }
  0xa9   :  { %830 = vrcp.f32 %v676_v40  ;;  %v649_v28 = vor.u32 1.1754944e-38, %v648_v18  ;;  %v702_v51 = vmul.f32 %v701_v46, %v1484_v30  ;;  %vm647_vm7 = vcmp.eq.f32.partialorder %v646_v50, 8.507059e+37 }
  0xaa   :  { %v746_v41 = vadd.f32 1.0, %v798_v38  ;;  %v829_v10 = vpop.eup %828  ;;  %v713_v27 = vmul.f32 %v712_v45, %v1484_v30  ;;  %vm682_vm8 = vweird.f32 %v676_v40  ;;  %v688_v29 = vand.u32 2147483648, %v676_v40 }
  0xab   :  { %v638_v47 = vmul.f32 %v829_v10, %v636_v2  ;;  %vm643_vm5 = vweird.f32 %v829_v10  ;;  %v686_v49 = vand.u32 2147483647, %v676_v40  ;;  %v703_v55 = vadd.f32 0.18741608, %v702_v51 }
  0xac   :  { %v762_v39 = vmul.f32 %v746_v41, %v74_v33  ;;  %v714_v3 = vadd.f32 0.4994258, %v713_v27  ;;  %vm644_vm6 = vmor %vm642_vm4, %vm643_vm5  ;;  %v689_v52 = vor.u32 1.1754944e-38, %v688_v29  ;;  %v666_v53 = vmul.f32 %v665_v60, %v1413_v1 }
  0xad   :  { %v639_v21 = vsub.f32 1.0, %v638_v47  ;;  %vm687_vm11 = vcmp.eq.f32.partialorder %v686_v49, 8.507059e+37  ;;  %v75_v14 = vmul.f32 0.5, %v1380_v19  ;;  %v704_v4 = vmul.f32 %v703_v55, %v1484_v30 }
  0xae   :  { %778 = vst [vmem:[%s1542_s2 + $0x60] sm:$0xff] %v762_v39  ;;  %v715_v15 = vmul.f32 %v714_v3, %v1484_v30  ;;  %v76_v20 = vmul.f32 0.5, %v1399_v35 }
  0xaf   :  { %v831_v56 = vpop.eup %830  ;;  %v640_v42 = vmul.f32 %v829_v10, %v639_v21  ;;  %v705_v36 = vadd.f32 1.1283791, %v704_v4 }
  0xb0   :  { %v678_v48 = vmul.f32 %v831_v56, %v676_v40  ;;  %vm683_vm9 = vweird.f32 %v831_v56  ;;  %v716_v17 = vadd.f32 1.0, %v715_v15  ;;  %v77_v40 = vmul.f32 0.5, %v1442_v63 }
  0xb1   :  { %v641_v16 = vadd.f32 %v829_v10, %v640_v42  ;;  %vm684_vm10 = vmor %vm682_vm8, %vm683_vm9  ;;  %v706_v37 = vmul.f32 %v705_v36, %v1466_v43 }
  0xb2   :  { %v679_v61 = vsub.f32 1.0, %v678_v48  ;;  %832 = vrcp.f32 %v716_v17  ;;  %v728_v7 = vand.u32 2147483648, %v716_v17  ;;  %vm722_vm12 = vweird.f32 %v716_v17 }
  0xb3   :  { %v645_v13 = vsel %vm644_vm6, %v829_v10, %v641_v16  ;;  %v726_v1 = vand.u32 2147483647, %v716_v17 }
  0xb4   :  { %v650_v6 = vsel %vm647_vm7, %v649_v28, %v645_v13  ;;  %v680_v22 = vmul.f32 %v831_v56, %v679_v61  ;;  %v729_v33 = vor.u32 1.1754944e-38, %v728_v7 }
  0xb5   :  { %v651_v0 = vmul.f32 %v650_v6, %v626_v44  ;;  %vm727_vm15 = vcmp.eq.f32.partialorder %v726_v1, 8.507059e+37 }
  0xb6   :  { %v681_v58 = vadd.f32 %v831_v56, %v680_v22 }
  0xb7   :  { %v799_v57 = vclamps-f32 %v651_v0, 1.0 }
  0xb8   :  { %v685_v32 = vsel %vm684_vm10, %v831_v56, %v681_v58  ;;  %v833_v2 = vpop.eup %832 }
  0xb9   :  { %v747_v5 = vadd.f32 1.0, %v799_v57  ;;  %v690_v12 = vsel %vm687_vm11, %v689_v52, %v685_v32  ;;  %v718_v23 = vmul.f32 %v833_v2, %v716_v17  ;;  %vm723_vm13 = vweird.f32 %v833_v2 }
  0xba   :  { %v691_v31 = vmul.f32 %v690_v12, %v666_v53  ;;  %vm724_vm14 = vmor %vm722_vm12, %vm723_vm13 }
  0xbb   :  { %v763_v11 = vmul.f32 %v747_v5, %v75_v14  ;;  %v719_v19 = vsub.f32 1.0, %v718_v23 }
  0xbc   :  { %v800_v59 = vclamps-f32 %v691_v31, 1.0 }
  0xbd   :  { %779 = vst [vmem:[%s1542_s2 + $0x68] sm:$0xff] %v763_v11  ;;  %v720_v24 = vmul.f32 %v833_v2, %v719_v19 }
  0xbe   :  { %v748_v30 = vadd.f32 1.0, %v800_v59 }
  0xbf   :  { %v721_v38 = vadd.f32 %v833_v2, %v720_v24 }
  0xc0   :  { %v764_v25 = vmul.f32 %v748_v30, %v76_v20 }
  0xc1   :  { %v725_v35 = vsel %vm724_vm14, %v833_v2, %v721_v38 }
  0xc2   :  { %780 = vst [vmem:[%s1542_s2 + $0x70] sm:$0xff] %v764_v25  ;;  %v730_v26 = vsel %vm727_vm15, %v729_v33, %v725_v35 }
  0xc3   :  { %v731_v9 = vmul.f32 %v730_v26, %v706_v37 }
  0xc5   :  { %v801_v34 = vclamps-f32 %v731_v9, 1.0 }
  0xc7   :  { %v749_v8 = vadd.f32 1.0, %v801_v34 }
  0xc9   :  { %v765_v41 = vmul.f32 %v749_v8, %v77_v40 }
  0xcb   :  { %781 = vst [vmem:[%s1542_s2 + $0x78] sm:$0xff] %v765_v41 }

// kernel: encoder_forward.8
= control target key start
LH: loop header
LB: loop body
LE: loop exit
PB: predicated region body
PF: predicated region fallthrough
CT: control target
= control target key end

     0   :  { %vm180_vm0 = vcmask 130048   ;;  %vm382_vm1 = vcmask 1040384   ;;  %s920_s1 = inlined_call_operand.vmem [shape: bf16[144,128], index: 1, kind: input, shape index: {}]   ;;  %s921_s0 = inlined_call_operand.vmem [shape: bf16[128,144], index: 0, kind: input, shape index: {}]   ;;  %s922_s4 = inlined_call_operand.vmem [shape: f32[128,128], index: 4, kind: output, shape index: {0}]   ;;  %s923_s3 = inlined_call_operand.vmem [shape: f32[128,128], index: 3, kind: input, shape index: {}]   ;;  %s924_s5 = inlined_call_operand.vmem [shape: f32[2,128], index: 5, kind: output, shape index: {1}]   ;;  %s925_s2 = inlined_call_operand.vmem [shape: f32[2,128], index: 2, kind: input, shape index: {}]  }
   0x1   :  { %v595_v0 = vld [vmem:[%s920_s1 + $0x38] sm:$0xff]  ;;  %v596_v1 = vld [vmem:[%s920_s1 + $0x40] sm:$0xff]  ;;  %v468_v3 = vld [vmem:[%s921_s0 + $0x8] sm:$0xf0] }
   0x2   :  { %v572_v2 = vld [vmem:[%s921_s0 + $0x4] sm:$0xf]  ;;  %205 = vmatpush.bf16.msra.mxu0 %v595_v0  ;;  %261 = vmatpush.bf16.msra.mxu1 %v596_v1  ;;  %v594_v5 = vld [vmem:[%s920_s1 + $0x30] sm:$0xff]  ;;  %v593_v6 = vld [vmem:[%s920_s1 + $0x28] sm:$0xff] }
   0x3   :  { %v471_v4 = vor.u32 %v572_v2, %v468_v3  ;;  %597 = vmatpush.bf16.msra.mxu3 %v595_v0  ;;  %605 = vmatpush.bf16.msra.mxu2 %v596_v1  ;;  %v592_v7 = vld [vmem:[%s920_s1 + $0x20] sm:$0xff]  ;;  %v591_v8 = vld [vmem:[%s920_s1 + $0x18] sm:$0xff]  ;;  %v574_v9 = vld [vmem:[%s921_s0 + $0x14] sm:$0xf] }
   0x4   :  { %v476_v10 = vld [vmem:[%s921_s0 + $0x18] sm:$0xf0]  ;;  %v582_v11 = vld [vmem:[%s921_s0 + $0x54] sm:$0xf]  ;;  %v589_v16 = vld [vmem:[%s920_s1 + $0x8] sm:$0xff] }
   0x5   :  { %564 = vmatmul.msk.bf16.vlgmr.msra.gmra.mxu1 %vm180_vm0, %v471_v4  ;;  %v479_v12 = vor.u32 %v574_v9, %v476_v10  ;;  %v508_v13 = vld [vmem:[%s921_s0 + $0x58] sm:$0xf0]  ;;  %v590_v14 = vld [vmem:[%s920_s1 + $0x10] sm:$0xff]  ;;  %v588_v17 = vld [vmem:[%s920_s1] sm:$0xff] }
   0x6   :  { %206 = vmatpush.bf16.msra.mxu0 %v594_v5  ;;  %v511_v15 = vor.u32 %v582_v11, %v508_v13  ;;  %v466_v18 = vld [vmem:[%s921_s0] sm:$0xf]  ;;  %v573_v19 = vld [vmem:[%s921_s0 + $0x4] sm:$0xf0]  ;;  %v576_v24 = vld [vmem:[%s921_s0 + $0x24] sm:$0xf] }
   0x7   :  { %598 = vmatpush.bf16.msra.mxu3 %v594_v5  ;;  %v498_v20 = vld [vmem:[%s921_s0 + $0x40] sm:$0xf]  ;;  %v581_v21 = vld [vmem:[%s921_s0 + $0x44] sm:$0xf0]  ;;  %v467_v22 = vor.u32 %v573_v19, %v466_v18  ;;  %v484_v25 = vld [vmem:[%s921_s0 + $0x28] sm:$0xf0] }
   0x8   :  { %569 = vmatmul.msk.bf16.vlgmr.msra.gmra.mxu2 %vm180_vm0, %v511_v15  ;;  %v499_v23 = vor.u32 %v581_v21, %v498_v20  ;;  %v584_v26 = vld [vmem:[%s921_s0 + $0x64] sm:$0xf]  ;;  %v487_v27 = vor.u32 %v576_v24, %v484_v25  ;;  %v516_v28 = vld [vmem:[%s921_s0 + $0x68] sm:$0xf0]  ;;  %v474_v30 = vld [vmem:[%s921_s0 + $0x10] sm:$0xf] }
   0x9   :  { %v519_v29 = vor.u32 %v584_v26, %v516_v28  ;;  %v575_v31 = vld [vmem:[%s921_s0 + $0x14] sm:$0xf0]  ;;  %v506_v32 = vld [vmem:[%s921_s0 + $0x50] sm:$0xf]  ;;  %v578_v36 = vld [vmem:[%s921_s0 + $0x34] sm:$0xf] }
   0xa   :  { %207 = vmatpush.bf16.msra.mxu0 %v593_v6  ;;  %v583_v33 = vld [vmem:[%s921_s0 + $0x54] sm:$0xf0]  ;;  %v475_v34 = vor.u32 %v575_v31, %v474_v30  ;;  %v492_v37 = vld [vmem:[%s921_s0 + $0x38] sm:$0xf0]  ;;  %v586_v38 = vld [vmem:[%s921_s0 + $0x74] sm:$0xf] }
   0xb   :  { %599 = vmatpush.bf16.msra.mxu3 %v593_v6  ;;  %v507_v35 = vor.u32 %v583_v33, %v506_v32  ;;  %v495_v39 = vor.u32 %v578_v36, %v492_v37  ;;  %v524_v40 = vld [vmem:[%s921_s0 + $0x78] sm:$0xf0]  ;;  %v482_v42 = vld [vmem:[%s921_s0 + $0x20] sm:$0xf]  ;;  %v577_v43 = vld [vmem:[%s921_s0 + $0x24] sm:$0xf0] }
   0xc   :  { %v527_v41 = vor.u32 %v586_v38, %v524_v40  ;;  %v514_v44 = vld [vmem:[%s921_s0 + $0x60] sm:$0xf]  ;;  %v585_v45 = vld [vmem:[%s921_s0 + $0x64] sm:$0xf0]  ;;  %v483_v46 = vor.u32 %v577_v43, %v482_v42  ;;  %v580_v48 = vld [vmem:[%s921_s0 + $0x44] sm:$0xf] }
   0xd   :  { %v515_v47 = vor.u32 %v585_v45, %v514_v44  ;;  %v500_v49 = vld [vmem:[%s921_s0 + $0x48] sm:$0xf0]  ;;  %v490_v51 = vld [vmem:[%s921_s0 + $0x30] sm:$0xf]  ;;  %v579_v52 = vld [vmem:[%s921_s0 + $0x34] sm:$0xf0] }
   0xe   :  { %208 = vmatpush.bf16.msra.mxu0 %v592_v7  ;;  %v503_v50 = vor.u32 %v580_v48, %v500_v49  ;;  %v522_v53 = vld [vmem:[%s921_s0 + $0x70] sm:$0xf]  ;;  %v587_v54 = vld [vmem:[%s921_s0 + $0x74] sm:$0xf0]  ;;  %v491_v55 = vor.u32 %v579_v52, %v490_v51  ;;  %v403_v30 = vld [vmem:[%s923_s3 + $0x60] sm:$0xff]  ;;  %v609_v52 = vmov 0.0  }
   0xf   :  { %600 = vmatpush.bf16.msra.mxu3 %v592_v7  ;;  %v523_v56 = vor.u32 %v587_v54, %v522_v53  ;;  %v406_v10 = vld [vmem:[%s923_s3 + $0x78] sm:$0xff]  ;;  %v405_v26 = vld [vmem:[%s923_s3 + $0x70] sm:$0xff]  ;;  %v399_v51 = vld [vmem:[%s923_s3 + $0x40] sm:$0xff]  ;;  %323 = vst [vmem:[%s924_s5] sm:$0x3] %v609_v52 }
  0x10   :  { %407 = vmatpush.msrb.mxu2 %v406_v10 }
  0x12   :  { %209 = vmatpush.bf16.msra.mxu0 %v591_v8  ;;  %408 = vmatpush.msrb.mxu2 %v405_v26  ;;  %v391_v26 = vld [vmem:[%s923_s3] sm:$0xff] }
  0x13   :  { %601 = vmatpush.bf16.msra.mxu3 %v591_v8 }
  0x15   :  { %565 = vmatmul.msk.bf16.gmra.mxu1 %vm180_vm0, %v479_v12 }
  0x16   :  { %210 = vmatpush.bf16.msra.mxu0 %v590_v14  ;;  %v384_v52 = vld [vmem:[%s924_s5] sm:$0x3] }
  0x17   :  { %602 = vmatpush.bf16.msra.mxu3 %v590_v14 }
  0x18   :  { %570 = vmatmul.msk.bf16.gmra.mxu2 %vm180_vm0, %v519_v29  ;;  %v404_v29 = vld [vmem:[%s923_s3 + $0x68] sm:$0xff] }
  0x19   :  { %409 = vmatpush.msrb.mxu2 %v404_v29 }
  0x1a   :  { %211 = vmatpush.bf16.msra.mxu0 %v589_v16 }
  0x1b   :  { %603 = vmatpush.bf16.msra.mxu3 %v589_v16  ;;  %410 = vmatpush.msrb.mxu2 %v403_v30 }
  0x1e   :  { %212 = vmatpush.bf16.msra.mxu0 %v588_v17 }
  0x1f   :  { %604 = vmatpush.bf16.msra.mxu3 %v588_v17 }
  0x21   :  { %213 = vmatmul.bf16.vlgmr.msra.gmra.mxu0 %v467_v22 }
  0x22   :  { %233 = vmatmul.bf16.vlgmr.msra.gmra.mxu3 %v499_v23 }
  0x25   :  { %566 = vmatmul.msk.bf16.gmra.mxu1 %vm180_vm0, %v487_v27 }
  0x28   :  { %571 = vmatmul.msk.bf16.gmra.mxu2 %vm180_vm0, %v527_v41  ;;  %v401_v41 = vld [vmem:[%s923_s3 + $0x50] sm:$0xff] }
  0x31   :  { %218 = vmatmul.bf16.gmra.mxu0 %v475_v34  ;;  %v402_v34 = vld [vmem:[%s923_s3 + $0x58] sm:$0xff] }
  0x32   :  { %238 = vmatmul.bf16.gmra.mxu3 %v507_v35  ;;  %411 = vmatpush.msrb.mxu2 %v402_v34 }
  0x34   :  { %412 = vmatpush.msrb.mxu2 %v401_v41 }
  0x35   :  { %567 = vmatmul.msk.bf16.gmra.mxu1 %vm180_vm0, %v495_v39 }
  0x41   :  { %223 = vmatmul.bf16.gmra.mxu0 %v483_v46  ;;  %v400_v46 = vld [vmem:[%s923_s3 + $0x48] sm:$0xff] }
  0x42   :  { %243 = vmatmul.bf16.gmra.mxu3 %v515_v47  ;;  %413 = vmatpush.msrb.mxu2 %v400_v46 }
  0x44   :  { %414 = vmatpush.msrb.mxu2 %v399_v51 }
  0x45   :  { %568 = vmatmul.msk.bf16.gmra.mxu1 %vm180_vm0, %v503_v50 }
  0x51   :  { %228 = vmatmul.bf16.gmra.mxu0 %v491_v55 }
  0x52   :  { %248 = vmatmul.bf16.gmra.mxu3 %v523_v56  ;;  %v398_v56 = vld [vmem:[%s923_s3 + $0x38] sm:$0xff] }
  0x53   :  { %415 = vmatpush.msrb.mxu2 %v398_v56 }
  0x82   :  { %v263_v57 = vpop.f32.mrf.mxu1 }
  0x8a   :  { %v265_v58 = vpop.f32.mrf.mxu1 }
  0x8b   :  { %v288_v3 = vpop.f32.mrf.mxu2 }
  0x92   :  { %v268_v59 = vpop.f32.mrf.mxu1 }
  0x93   :  { %v290_v9 = vpop.f32.mrf.mxu2 }
  0x9a   :  { %v270_v60 = vpop.f32.mrf.mxu1 }
  0x9b   :  { %v293_v17 = vpop.f32.mrf.mxu2 }
  0x9e   :  { %v214_v61 = vpop.f32.mrf.mxu0 }
  0x9f   :  { %v264_v62 = vadd.f32 %v263_v57, %v214_v61 }
  0xa1   :  { %303 = vst [vmem:[%s922_s4] sm:$0xff] %v264_v62  ;;  %v345_v35 = vmul.f32 %v264_v62, %v264_v62 }
  0xa2   :  { %v273_v63 = vpop.f32.mrf.mxu1 }
  0xa3   :  { %v295_v28 = vpop.f32.mrf.mxu2 }
  0xa5   :  { %v234_v0 = vpop.f32.mrf.mxu3 }
  0xa6   :  { %v216_v1 = vpop.f32.mrf.mxu0 }
  0xa7   :  { %v266_v2 = vadd.f32 %v265_v58, %v216_v1 }
  0xa9   :  { %304 = vst [vmem:[%s922_s4 + $0x8] sm:$0xff] %v266_v2  ;;  %v346_v32 = vmul.f32 %v266_v2, %v266_v2  ;;  %v324_v36 = vadd.f32 %v266_v2, %v264_v62 }
  0xaa   :  { %v275_v4 = vpop.f32.mrf.mxu1 }
  0xab   :  { %v361_v42 = vadd.f32 %v346_v32, %v345_v35  ;;  %v298_v50 = vpop.f32.mrf.mxu2 }
  0xad   :  { %v236_v5 = vpop.f32.mrf.mxu3 }
  0xae   :  { %v219_v6 = vpop.f32.mrf.mxu0 }
  0xaf   :  { %v269_v7 = vadd.f32 %v268_v59, %v219_v6 }
  0xb1   :  { %305 = vst [vmem:[%s922_s4 + $0x10] sm:$0xff] %v269_v7  ;;  %v347_v37 = vmul.f32 %v269_v7, %v269_v7  ;;  %v325_v43 = vadd.f32 %v324_v36, %v269_v7  ;;  %v395_v7 = vld [vmem:[%s923_s3 + $0x20] sm:$0xff] }
  0xb2   :  { %v278_v8 = vpop.f32.mrf.mxu1 }
  0xb3   :  { %v362_v47 = vadd.f32 %v361_v42, %v347_v37 }
  0xb5   :  { %v239_v11 = vpop.f32.mrf.mxu3 }
  0xb6   :  { %v221_v12 = vpop.f32.mrf.mxu0  ;;  %v783_v13 = vadd.f32 %v288_v3, %v239_v11  ;;  %v396_v3 = vld [vmem:[%s923_s3 + $0x28] sm:$0xff] }
  0xb7   :  { %v271_v14 = vadd.f32 %v270_v60, %v221_v12  ;;  %v300_v12 = vpop.f32.mrf.mxu2 }
  0xb8   :  { %313 = vst [vmem:[%s922_s4 + $0x50] sm:$0xff] %v783_v13 }
  0xb9   :  { %306 = vst [vmem:[%s922_s4 + $0x18] sm:$0xff] %v271_v14  ;;  %v348_v44 = vmul.f32 %v271_v14, %v271_v14  ;;  %v326_v48 = vadd.f32 %v325_v43, %v271_v14  ;;  %v393_v14 = vld [vmem:[%s923_s3 + $0x10] sm:$0xff] }
  0xba   :  { %v792_v15 = vpop.f32.mrf.mxu1 }
  0xbb   :  { %v363_v53 = vadd.f32 %v362_v47, %v348_v44 }
  0xbd   :  { %v241_v16 = vpop.f32.mrf.mxu3 }
  0xbe   :  { %v224_v18 = vpop.f32.mrf.mxu0  ;;  %v794_v19 = vadd.f32 %v290_v9, %v241_v16 }
  0xbf   :  { %v274_v20 = vadd.f32 %v273_v63, %v224_v18  ;;  %v397_v63 = vld [vmem:[%s923_s3 + $0x30] sm:$0xff] }
  0xc0   :  { %314 = vst [vmem:[%s922_s4 + $0x58] sm:$0xff] %v794_v19  ;;  %416 = vmatpush.msrb.mxu2 %v397_v63 }
  0xc1   :  { %307 = vst [vmem:[%s922_s4 + $0x20] sm:$0xff] %v274_v20  ;;  %v349_v49 = vmul.f32 %v274_v20, %v274_v20  ;;  %v327_v54 = vadd.f32 %v326_v48, %v274_v20 }
  0xc2   :  { %v283_v21 = vpop.f32.mrf.mxu1  ;;  %417 = vmatpush.msrb.mxu2 %v396_v3 }
  0xc3   :  { %v803_v22 = vadd.f32 %v283_v21, %v234_v0  ;;  %v364_v57 = vadd.f32 %v363_v53, %v349_v49  ;;  %v392_v21 = vld [vmem:[%s923_s3 + $0x8] sm:$0xff] }
  0xc4   :  { %418 = vmatpush.msrb.mxu2 %v395_v7 }
  0xc5   :  { %311 = vst [vmem:[%s922_s4 + $0x40] sm:$0xff] %v803_v22  ;;  %v244_v23 = vpop.f32.mrf.mxu3  ;;  %v353_v9 = vmul.f32 %v803_v22, %v803_v22 }
  0xc6   :  { %v226_v24 = vpop.f32.mrf.mxu0  ;;  %v809_v25 = vadd.f32 %v293_v17, %v244_v23 }
  0xc7   :  { %v276_v27 = vadd.f32 %v275_v4, %v226_v24 }
  0xc8   :  { %315 = vst [vmem:[%s922_s4 + $0x60] sm:$0xff] %v809_v25 }
  0xc9   :  { %308 = vst [vmem:[%s922_s4 + $0x28] sm:$0xff] %v276_v27  ;;  %v350_v55 = vmul.f32 %v276_v27, %v276_v27  ;;  %v328_v58 = vadd.f32 %v327_v54, %v276_v27  ;;  %v356_v27 = vmul.f32 %v794_v19, %v794_v19 }
  0xca   :  { %v285_v31 = vpop.f32.mrf.mxu1 }
  0xcb   :  { %v286_v33 = vadd.f32 %v285_v31, %v236_v5  ;;  %v365_v0 = vadd.f32 %v364_v57, %v350_v55 }
  0xcd   :  { %312 = vst [vmem:[%s922_s4 + $0x48] sm:$0xff] %v286_v33  ;;  %v246_v38 = vpop.f32.mrf.mxu3 }
  0xce   :  { %v229_v39 = vpop.f32.mrf.mxu0  ;;  %v833_v40 = vadd.f32 %v295_v28, %v246_v38 }
  0xcf   :  { %v279_v45 = vadd.f32 %v278_v8, %v229_v39  ;;  %v394_v8 = vld [vmem:[%s923_s3 + $0x18] sm:$0xff] }
  0xd0   :  { %316 = vst [vmem:[%s922_s4 + $0x68] sm:$0xff] %v833_v40  ;;  %419 = vmatpush.msrb.mxu2 %v394_v8  ;;  %v358_v32 = vmul.f32 %v833_v40, %v833_v40 }
  0xd1   :  { %309 = vst [vmem:[%s922_s4 + $0x30] sm:$0xff] %v279_v45  ;;  %v351_v59 = vmul.f32 %v279_v45, %v279_v45  ;;  %v329_v1 = vadd.f32 %v328_v58, %v279_v45 }
  0xd2   :  { %420 = vmatpush.msrb.mxu2 %v393_v14 }
  0xd3   :  { %v366_v4 = vadd.f32 %v365_v0, %v351_v59 }
  0xd4   :  { %421 = vmatpush.msrb.mxu2 %v392_v21 }
  0xd5   :  { %v249_v60 = vpop.f32.mrf.mxu3 }
  0xd6   :  { %v231_v61 = vpop.f32.mrf.mxu0  ;;  %v299_v62 = vadd.f32 %v298_v50, %v249_v60  ;;  %422 = vmatpush.msrb.mxu2 %v391_v26 }
  0xd7   :  { %v281_v2 = vadd.f32 %v792_v15, %v231_v61  ;;  %v354_v15 = vmul.f32 %v286_v33, %v286_v33 }
  0xd8   :  { %317 = vst [vmem:[%s922_s4 + $0x70] sm:$0xff] %v299_v62  ;;  %v359_v36 = vmul.f32 %v299_v62, %v299_v62 }
  0xd9   :  { %310 = vst [vmem:[%s922_s4 + $0x38] sm:$0xff] %v281_v2  ;;  %v330_v5 = vadd.f32 %v329_v1, %v281_v2  ;;  %v352_v6 = vmul.f32 %v281_v2, %v281_v2 }
  0xdb   :  { %v331_v10 = vadd.f32 %v330_v5, %v803_v22  ;;  %v367_v11 = vadd.f32 %v366_v4, %v352_v6  ;;  %v355_v22 = vmul.f32 %v783_v13, %v783_v13  ;;  %v427_v4 = vld [vmem:[%s925_s2] sm:$0x3] }
  0xdd   :  { %v332_v16 = vadd.f32 %v331_v10, %v286_v33  ;;  %v368_v17 = vadd.f32 %v367_v11, %v353_v9  ;;  %v251_v18 = vpop.f32.mrf.mxu3 }
  0xde   :  { %v301_v20 = vadd.f32 %v300_v12, %v251_v18 }
  0xdf   :  { %v333_v23 = vadd.f32 %v332_v16, %v783_v13  ;;  %v369_v24 = vadd.f32 %v368_v17, %v354_v15  ;;  %v357_v13 = vmul.f32 %v809_v25, %v809_v25 }
  0xe0   :  { %318 = vst [vmem:[%s922_s4 + $0x78] sm:$0xff] %v301_v20 }
  0xe1   :  { %v370_v28 = vadd.f32 %v369_v24, %v355_v22  ;;  %v334_v29 = vadd.f32 %v333_v23, %v794_v19  ;;  %v360_v19 = vmul.f32 %v301_v20, %v301_v20 }
  0xe3   :  { %v335_v30 = vadd.f32 %v334_v29, %v809_v25  ;;  %v371_v31 = vadd.f32 %v370_v28, %v356_v27 }
  0xe5   :  { %v336_v33 = vadd.f32 %v335_v30, %v833_v40  ;;  %v372_v34 = vadd.f32 %v371_v31, %v357_v13 }
  0xe7   :  { %v337_v35 = vadd.f32 %v336_v33, %v299_v62  ;;  %v373_v37 = vadd.f32 %v372_v34, %v358_v32 }
  0xe9   :  { %v374_v38 = vadd.f32 %v373_v37, %v359_v36  ;;  %v338_v39 = vadd.f32 %v337_v35, %v301_v20 }
  0xeb   :  { %v339_v41 = vrot.slane %v338_v39, 4  ;;  %v375_v42 = vadd.f32 %v374_v38, %v360_v19 }
  0xed   :  { %v340_v43 = vadd.f32 %v339_v41, %v338_v39  ;;  %v376_v44 = vrot.slane %v375_v42, 4 }
  0xef   :  { %v341_v45 = vrot.slane %v340_v43, 2  ;;  %v377_v25 = vadd.f32 %v376_v44, %v375_v42 }
  0xf1   :  { %v342_v46 = vadd.f32 %v341_v45, %v340_v43  ;;  %v378_v47 = vrot.slane %v377_v25, 2 }
  0xf3   :  { %v343_v48 = vrot.slane %v342_v46, 1  ;;  %v379_v49 = vadd.f32 %v378_v47, %v377_v25 }
  0xf5   :  { %v380_v50 = vrot.slane %v379_v49, 1  ;;  %v344_v40 = vadd.f32 %v343_v48, %v342_v46 }
  0xf7   :  { %v381_v51 = vadd.f32 %v380_v50, %v379_v49 }
  0xf9   :  { %v383_v53 = vsel %vm382_vm1, %v344_v40, %v381_v51 }
  0xfa   :  { %v385_v54 = vadd.f32 %v384_v52, %v383_v53 }
  0xfc   :  { %386 = vst [vmem:[%s924_s5] sm:$0x3] %v385_v54 }
 0x103   :  { %v390_v55 = vld [vmem:[%s924_s5] sm:$0x3] }
 0x104   :  { %423 = vmatmul.f32.vlgmr.msrb.gmra.mxu2 %v390_v55 }
 0x187   :  { %v424_v56 = vpop.f32.mrf.mxu2 }
 0x188   :  { %v428_v57 = vmul.f32 0.001953125, %v424_v56 }
 0x18a   :  { %v429_v58 = vmul.f32 %v428_v57, %v428_v57 }
 0x18c   :  { %v431_v59 = vrot.slane %v429_v58, 7 }
 0x18e   :  { %v433_v60 = vsub.f32 %v428_v57, %v431_v59 }
 0x190   :  { %v434_v61 = vadd.f32 1e-05, %v433_v60 }
 0x192   :  { %607 = vrsqrt.f32 %v434_v61  ;;  %vm441_vm3 = vweird.f32 %v434_v61 }
 0x198   :  { %v608_v62 = vpop.eup %607 }
 0x199   :  { %v436_v63 = vmul.f32 %v608_v62, %v434_v61  ;;  %vm442_vm2 = vweird.f32 %v608_v62 }
 0x19a   :  { %vm443_vm4 = vmor %vm441_vm3, %vm442_vm2 }
 0x19b   :  { %v437_v0 = vmul.f32 %v608_v62, %v436_v63 }
 0x19d   :  { %v438_v1 = vmul.f32 0.5, %v437_v0 }
 0x19f   :  { %v439_v2 = vsub.f32 1.5, %v438_v1 }
 0x1a1   :  { %v440_v3 = vmul.f32 %v608_v62, %v439_v2 }
 0x1a3   :  { %v444_v5 = vsel %vm443_vm4, %v608_v62, %v440_v3 }
 0x1a4   :  { %v446_v6 = vrot.slane %v444_v5, 1 }
 0x1a6   :  { %v448_v7 = vmul.f32 %v446_v6, %v427_v4 }
 0x1a8   :  { %v449_v8 = vmul.f32 %v448_v7, %v428_v57 }
 0x1aa   :  { %v451_v9 = vrot.slane %v449_v8, 7 }
 0x1ac   :  { %v453_v10 = vsub.f32 %v427_v4, %v451_v9 }
 0x1ae   :  { %v454_v11 = vsel %vm382_vm1, %v448_v7, %v453_v10 }
 0x1af   :  { %455 = vst [vmem:[%s924_s5] sm:$0x3] %v454_v11 }

// kernel: encoder_forward.11
= control target key start
LH: loop header
LB: loop body
LE: loop exit
PB: predicated region body
PF: predicated region fallthrough
CT: control target
= control target key end

     0   :  { %s373_s0 = inlined_call_operand.vmem [shape: f32[32,128], index: 0, kind: input, shape index: {}]   ;;  %s374_s1 = inlined_call_operand.vmem [shape: f32[2,128], index: 1, kind: input, shape index: {}]   ;;  %s375_s2 = inlined_call_operand.vmem [shape: f32[32,128], index: 2, kind: output, shape index: {}]  }
   0x1   :  { %v11_v0 = vld [vmem:[%s374_s1] sm:$0x3]  ;;  %v13_v2 = vld [vmem:[%s373_s0 + $0x8] sm:$0xff]  ;;  %v14_v5 = vld [vmem:[%s373_s0 + $0x10] sm:$0xff] }
   0x2   :  { %v12_v1 = vld [vmem:[%s373_s0] sm:$0xff]  ;;  %v16_v3 = vperm.slane %v11_v0, 0  ;;  %v21_v4 = vperm.slane %v11_v0, 1  ;;  %v15_v6 = vld [vmem:[%s373_s0 + $0x18] sm:$0xff] }
   0x4   :  { %v17_v7 = vmul.f32 %v16_v3, %v12_v1  ;;  %v18_v8 = vmul.f32 %v16_v3, %v13_v2  ;;  %v19_v9 = vmul.f32 %v16_v3, %v14_v5  ;;  %v20_v10 = vmul.f32 %v16_v3, %v15_v6 }
   0x6   :  { %v252_v11 = vadd.f32 %v21_v4, %v17_v7  ;;  %v254_v12 = vadd.f32 %v21_v4, %v18_v8  ;;  %v256_v13 = vadd.f32 %v21_v4, %v19_v9  ;;  %v258_v14 = vadd.f32 %v21_v4, %v20_v10 }
   0x8   :  { %v261_v15 = vmul.f32 0.70710677, %v252_v11  ;;  %v264_v16 = vmul.f32 0.70710677, %v254_v12  ;;  %v267_v17 = vmul.f32 0.70710677, %v256_v13 }
   0x9   :  { %v270_v18 = vmul.f32 0.70710677, %v258_v14 }
   0xa   :  { %v34_v19 = vmul.f32 %v261_v15, %v261_v15  ;;  %v74_v20 = vmul.f32 %v264_v16, %v264_v16  ;;  %v114_v21 = vmul.f32 %v267_v17, %v267_v17 }
   0xb   :  { %v154_v22 = vmul.f32 %v270_v18, %v270_v18 }
   0xc   :  { %v280_v23 = vmin.f32 %v34_v19, 16.0  ;;  %v282_v24 = vmin.f32 %v74_v20, 16.0  ;;  %v284_v25 = vmin.f32 %v114_v21, 16.0 }
   0xd   :  { %v286_v26 = vmin.f32 %v154_v22, 16.0 }
   0xe   :  { %v36_v27 = vmul.f32 2.1237322e-06, %v280_v23  ;;  %v47_v28 = vmul.f32 3.8918573e-05, %v280_v23  ;;  %v76_v29 = vmul.f32 2.1237322e-06, %v282_v24 }
   0xf   :  { %v87_v30 = vmul.f32 3.8918573e-05, %v282_v24  ;;  %v116_v31 = vmul.f32 2.1237322e-06, %v284_v25  ;;  %v127_v32 = vmul.f32 3.8918573e-05, %v284_v25 }
  0x10   :  { %v37_v33 = vadd.f32 0.00028619796, %v36_v27  ;;  %v48_v34 = vadd.f32 0.001143296, %v47_v28  ;;  %v77_v35 = vadd.f32 0.00028619796, %v76_v29 }
  0x11   :  { %v88_v36 = vadd.f32 0.001143296, %v87_v30  ;;  %v117_v37 = vadd.f32 0.00028619796, %v116_v31  ;;  %v128_v38 = vadd.f32 0.001143296, %v127_v32 }
  0x12   :  { %v38_v39 = vmul.f32 %v37_v33, %v280_v23  ;;  %v49_v40 = vmul.f32 %v48_v34, %v280_v23  ;;  %v78_v41 = vmul.f32 %v77_v35, %v282_v24  ;;  %v156_v42 = vmul.f32 2.1237322e-06, %v286_v26 }
  0x13   :  { %v89_v43 = vmul.f32 %v88_v36, %v282_v24  ;;  %v118_v44 = vmul.f32 %v117_v37, %v284_v25  ;;  %v129_v45 = vmul.f32 %v128_v38, %v284_v25  ;;  %v167_v59 = vmul.f32 3.8918573e-05, %v286_v26 }
  0x14   :  { %v39_v46 = vadd.f32 0.0036580483, %v38_v39  ;;  %v50_v47 = vadd.f32 0.014752088, %v49_v40  ;;  %v79_v48 = vadd.f32 0.0036580483, %v78_v41 }
  0x15   :  { %v90_v49 = vadd.f32 0.014752088, %v89_v43  ;;  %v119_v50 = vadd.f32 0.0036580483, %v118_v44  ;;  %v130_v51 = vadd.f32 0.014752088, %v129_v45 }
  0x16   :  { %v40_v52 = vmul.f32 %v39_v46, %v280_v23  ;;  %v51_v53 = vmul.f32 %v50_v47, %v280_v23  ;;  %v80_v54 = vmul.f32 %v79_v48, %v282_v24  ;;  %v157_v55 = vadd.f32 0.00028619796, %v156_v42 }
  0x17   :  { %v91_v56 = vmul.f32 %v90_v49, %v282_v24  ;;  %v120_v57 = vmul.f32 %v119_v50, %v284_v25  ;;  %v131_v58 = vmul.f32 %v130_v51, %v284_v25  ;;  %v168_v7 = vadd.f32 0.001143296, %v167_v59 }
  0x18   :  { %v41_v60 = vadd.f32 0.05243302, %v40_v52  ;;  %v52_v61 = vadd.f32 0.112945676, %v51_v53  ;;  %v81_v62 = vadd.f32 0.05243302, %v80_v54  ;;  %v158_v63 = vmul.f32 %v157_v55, %v286_v26 }
  0x19   :  { %v92_v0 = vadd.f32 0.112945676, %v91_v56  ;;  %v121_v1 = vadd.f32 0.05243302, %v120_v57  ;;  %v132_v4 = vadd.f32 0.112945676, %v131_v58  ;;  %v169_v30 = vmul.f32 %v168_v7, %v286_v26 }
  0x1a   :  { %v42_v2 = vmul.f32 %v41_v60, %v280_v23  ;;  %v53_v3 = vmul.f32 %v52_v61, %v280_v23  ;;  %v82_v5 = vmul.f32 %v81_v62, %v282_v24  ;;  %v159_v19 = vadd.f32 0.0036580483, %v158_v63 }
  0x1b   :  { %v93_v6 = vmul.f32 %v92_v0, %v282_v24  ;;  %v122_v9 = vmul.f32 %v121_v1, %v284_v25  ;;  %v133_v10 = vmul.f32 %v132_v4, %v284_v25  ;;  %v170_v36 = vadd.f32 0.014752088, %v169_v30 }
  0x1c   :  { %v54_v8 = vadd.f32 0.4994258, %v53_v3  ;;  %v43_v21 = vadd.f32 0.18741608, %v42_v2  ;;  %v83_v28 = vadd.f32 0.18741608, %v82_v5  ;;  %v160_v33 = vmul.f32 %v159_v19, %v286_v26 }
  0x1d   :  { %v94_v20 = vadd.f32 0.4994258, %v93_v6  ;;  %v134_v27 = vadd.f32 0.4994258, %v133_v10  ;;  %v123_v32 = vadd.f32 0.18741608, %v122_v9  ;;  %v171_v42 = vmul.f32 %v170_v36, %v286_v26 }
  0x1e   :  { %v55_v22 = vmul.f32 %v54_v8, %v280_v23  ;;  %v44_v37 = vmul.f32 %v43_v21, %v280_v23  ;;  %v84_v38 = vmul.f32 %v83_v28, %v282_v24  ;;  %v161_v40 = vadd.f32 0.05243302, %v160_v33 }
  0x1f   :  { %v95_v29 = vmul.f32 %v94_v20, %v282_v24  ;;  %v135_v35 = vmul.f32 %v134_v27, %v284_v25  ;;  %v124_v39 = vmul.f32 %v123_v32, %v284_v25  ;;  %v172_v48 = vadd.f32 0.112945676, %v171_v42 }
  0x20   :  { %v56_v31 = vadd.f32 1.0, %v55_v22  ;;  %v45_v43 = vadd.f32 1.1283791, %v44_v37  ;;  %v85_v44 = vadd.f32 1.1283791, %v84_v38  ;;  %v162_v47 = vmul.f32 %v161_v40, %v286_v26 }
  0x21   :  { %v96_v34 = vadd.f32 1.0, %v95_v29  ;;  %v136_v41 = vadd.f32 1.0, %v135_v35  ;;  %v125_v46 = vadd.f32 1.1283791, %v124_v39  ;;  %v173_v54 = vmul.f32 %v172_v48, %v286_v26 }
  0x22   :  { %214 = vrcp.f32 %v56_v31  ;;  %v66_v50 = vand.u32 2147483647, %v56_v31  ;;  %v68_v51 = vand.u32 2147483648, %v56_v31  ;;  %v46_v52 = vmul.f32 %v45_v43, %v261_v15 }
  0x23   :  { %216 = vrcp.f32 %v96_v34  ;;  %v106_v24 = vand.u32 2147483647, %v96_v34  ;;  %v108_v53 = vand.u32 2147483648, %v96_v34  ;;  %vm62_vm0 = vweird.f32 %v56_v31 }
  0x24   :  { %218 = vrcp.f32 %v136_v41  ;;  %v86_v56 = vmul.f32 %v85_v44, %v264_v16  ;;  %vm102_vm2 = vweird.f32 %v96_v34  ;;  %v174_v58 = vadd.f32 0.4994258, %v173_v54 }
  0x25   :  { %vm328_vm4 = vcmp.eq.f32.partialorder %v66_v50, 8.507059e+37  ;;  %v69_v15 = vor.u32 1.1754944e-38, %v68_v51  ;;  %vm332_vm5 = vcmp.eq.f32.partialorder %v106_v24, 8.507059e+37  ;;  %v109_v0 = vor.u32 1.1754944e-38, %v108_v53 }
  0x26   :  { %v175_v2 = vmul.f32 %v174_v58, %v286_v26  ;;  %vm142_vm8 = vweird.f32 %v136_v41  ;;  %v146_v5 = vand.u32 2147483647, %v136_v41  ;;  %v148_v6 = vand.u32 2147483648, %v136_v41 }
  0x27   :  { %v163_v19 = vadd.f32 0.18741608, %v162_v47  ;;  %v26_v33 = vmul.f32 0.5, %v252_v11  ;;  %v27_v35 = vmul.f32 0.5, %v254_v12  ;;  %v29_v54 = vmul.f32 0.5, %v258_v14 }
  0x28   :  { %v215_v45 = vpop.eup %214  ;;  %v176_v9 = vadd.f32 1.0, %v175_v2  ;;  %v149_v29 = vor.u32 1.1754944e-38, %v148_v6  ;;  %vm147_vm11 = vcmp.eq.f32.partialorder %v146_v5, 8.507059e+37 }
  0x29   :  { %v217_v49 = vpop.eup %216  ;;  %v58_v23 = vmul.f32 %v215_v45, %v56_v31  ;;  %vm63_vm1 = vweird.f32 %v215_v45  ;;  %v126_v31 = vmul.f32 %v125_v46, %v267_v17  ;;  %v164_v38 = vmul.f32 %v163_v19, %v286_v26 }
  0x2a   :  { %v98_v25 = vmul.f32 %v217_v49, %v96_v34  ;;  %vm103_vm3 = vweird.f32 %v217_v49  ;;  %v219_v59 = vpop.eup %218  ;;  %vm336_vm6 = vmor %vm62_vm0, %vm63_vm1  ;;  %220 = vrcp.f32 %v176_v9  ;;  %v188_v11 = vand.u32 2147483648, %v176_v9 }
  0x2b   :  { %v59_v55 = vsub.f32 1.0, %v58_v23  ;;  %v138_v1 = vmul.f32 %v219_v59, %v136_v41  ;;  %vm341_vm7 = vmor %vm102_vm2, %vm103_vm3  ;;  %vm143_vm9 = vweird.f32 %v219_v59  ;;  %v165_v48 = vadd.f32 1.1283791, %v164_v38 }
  0x2c   :  { %v99_v57 = vsub.f32 1.0, %v98_v25  ;;  %vm144_vm10 = vmor %vm142_vm8, %vm143_vm9  ;;  %vm182_vm12 = vweird.f32 %v176_v9  ;;  %v186_v26 = vand.u32 2147483647, %v176_v9  ;;  %v189_v50 = vor.u32 1.1754944e-38, %v188_v11 }
  0x2d   :  { %v60_v60 = vmul.f32 %v215_v45, %v59_v55  ;;  %v139_v8 = vsub.f32 1.0, %v138_v1  ;;  %v166_v51 = vmul.f32 %v165_v48, %v270_v18 }
  0x2e   :  { %v100_v16 = vmul.f32 %v217_v49, %v99_v57  ;;  %vm187_vm15 = vcmp.eq.f32.partialorder %v186_v26, 8.507059e+37 }
  0x2f   :  { %v61_v3 = vadd.f32 %v215_v45, %v60_v60  ;;  %v140_v22 = vmul.f32 %v219_v59, %v139_v8 }
  0x30   :  { %v101_v7 = vadd.f32 %v217_v49, %v100_v16  ;;  %v221_v42 = vpop.eup %220 }
  0x31   :  { %v65_v10 = vsel %vm336_vm6, %v215_v45, %v61_v3  ;;  %v141_v32 = vadd.f32 %v219_v59, %v140_v22  ;;  %v28_v45 = vmul.f32 0.5, %v256_v13  ;;  %v178_v17 = vmul.f32 %v221_v42, %v176_v9 }
  0x32   :  { %v70_v20 = vsel %vm328_vm4, %v69_v15, %v65_v10  ;;  %v105_v21 = vsel %vm341_vm7, %v217_v49, %v101_v7  ;;  %vm183_vm13 = vweird.f32 %v221_v42 }
  0x33   :  { %v71_v27 = vmul.f32 %v70_v20, %v46_v52  ;;  %v110_v28 = vsel %vm332_vm5, %v109_v0, %v105_v21  ;;  %v145_v37 = vsel %vm144_vm10, %v219_v59, %v141_v32  ;;  %v179_v12 = vsub.f32 1.0, %v178_v17  ;;  %vm184_vm14 = vmor %vm182_vm12, %vm183_vm13 }
  0x34   :  { %v111_v30 = vmul.f32 %v110_v28, %v86_v56  ;;  %v150_v40 = vsel %vm147_vm11, %v149_v29, %v145_v37 }
  0x35   :  { %v210_v34 = vclamps-f32 %v71_v27, 1.0  ;;  %v151_v43 = vmul.f32 %v150_v40, %v126_v31  ;;  %v180_v23 = vmul.f32 %v221_v42, %v179_v12 }
  0x36   :  { %v211_v36 = vclamps-f32 %v111_v30, 1.0 }
  0x37   :  { %v194_v39 = vadd.f32 1.0, %v210_v34  ;;  %v212_v47 = vclamps-f32 %v151_v43, 1.0  ;;  %v181_v24 = vadd.f32 %v221_v42, %v180_v23 }
  0x38   :  { %v195_v41 = vadd.f32 1.0, %v211_v36 }
  0x39   :  { %v198_v44 = vmul.f32 %v194_v39, %v26_v33  ;;  %v196_v49 = vadd.f32 1.0, %v212_v47  ;;  %v185_v52 = vsel %vm184_vm14, %v221_v42, %v181_v24 }
  0x3a   :  { %v199_v46 = vmul.f32 %v195_v41, %v27_v35  ;;  %v190_v25 = vsel %vm187_vm15, %v189_v50, %v185_v52 }
  0x3b   :  { %202 = vst [vmem:[%s375_s2] sm:$0xff] %v198_v44  ;;  %v200_v13 = vmul.f32 %v196_v49, %v28_v45  ;;  %v191_v53 = vmul.f32 %v190_v25, %v166_v51 }
  0x3c   :  { %203 = vst [vmem:[%s375_s2 + $0x8] sm:$0xff] %v199_v46 }
  0x3d   :  { %204 = vst [vmem:[%s375_s2 + $0x10] sm:$0xff] %v200_v13  ;;  %v213_v55 = vclamps-f32 %v191_v53, 1.0 }
  0x3f   :  { %v197_v56 = vadd.f32 1.0, %v213_v55 }
  0x41   :  { %v201_v57 = vmul.f32 %v197_v56, %v29_v54 }
  0x43   :  { %205 = vst [vmem:[%s375_s2 + $0x18] sm:$0xff] %v201_v57 }

// kernel: encoder_forward.10
= control target key start
LH: loop header
LB: loop body
LE: loop exit
PB: predicated region body
PF: predicated region fallthrough
CT: control target
= control target key end

     0   :  { %vm909_vm0 = vcmask 1040384   ;;  %s1887_s1 = inlined_call_operand.vmem [shape: bf16[1152,128], index: 1, kind: input, shape index: {}]   ;;  %s1888_s0 = inlined_call_operand.vmem [shape: bf16[32,1152], index: 0, kind: input, shape index: {}]   ;;  %s1889_s3 = inlined_call_operand.vmem [shape: f32[128,128], index: 3, kind: input, shape index: {}]   ;;  %s1890_s5 = inlined_call_operand.vmem [shape: f32[2,128], index: 5, kind: output, shape index: {1}]   ;;  %s1891_s4 = inlined_call_operand.vmem [shape: f32[32,128], index: 4, kind: output, shape index: {0}]   ;;  %s1892_s2 = inlined_call_operand.vmem [shape: f32[2,128], index: 2, kind: input, shape index: {}]  }
   0x1   :  { %v1376_v0 = vld [vmem:[%s1887_s1 + $0x38] sm:$0xff]  ;;  %v1375_v4 = vld [vmem:[%s1887_s1 + $0x30] sm:$0xff]  ;;  %v1374_v8 = vld [vmem:[%s1887_s1 + $0x28] sm:$0xff] }
   0x2   :  { %v1384_v1 = vld [vmem:[%s1887_s1 + $0x78] sm:$0xff]  ;;  %707 = vmatpush.bf16.msra.mxu0 %v1376_v0  ;;  %v1383_v5 = vld [vmem:[%s1887_s1 + $0x70] sm:$0xff]  ;;  %v1382_v9 = vld [vmem:[%s1887_s1 + $0x68] sm:$0xff] }
   0x3   :  { %v1392_v2 = vld [vmem:[%s1887_s1 + $0xb8] sm:$0xff]  ;;  %726 = vmatpush.bf16.msra.mxu1 %v1384_v1  ;;  %v1391_v6 = vld [vmem:[%s1887_s1 + $0xb0] sm:$0xff]  ;;  %v1390_v10 = vld [vmem:[%s1887_s1 + $0xa8] sm:$0xff] }
   0x4   :  { %v1400_v3 = vld [vmem:[%s1887_s1 + $0xf8] sm:$0xff]  ;;  %745 = vmatpush.bf16.msra.mxu2 %v1392_v2  ;;  %v1399_v7 = vld [vmem:[%s1887_s1 + $0xf0] sm:$0xff]  ;;  %v1398_v11 = vld [vmem:[%s1887_s1 + $0xe8] sm:$0xff] }
   0x5   :  { %764 = vmatpush.bf16.msra.mxu3 %v1400_v3  ;;  %v1373_v12 = vld [vmem:[%s1887_s1 + $0x20] sm:$0xff]  ;;  %v1372_v16 = vld [vmem:[%s1887_s1 + $0x18] sm:$0xff]  ;;  %v1371_v20 = vld [vmem:[%s1887_s1 + $0x10] sm:$0xff] }
   0x6   :  { %708 = vmatpush.bf16.msra.mxu0 %v1375_v4  ;;  %v1381_v13 = vld [vmem:[%s1887_s1 + $0x60] sm:$0xff]  ;;  %v1380_v17 = vld [vmem:[%s1887_s1 + $0x58] sm:$0xff]  ;;  %v1379_v21 = vld [vmem:[%s1887_s1 + $0x50] sm:$0xff] }
   0x7   :  { %727 = vmatpush.bf16.msra.mxu1 %v1383_v5  ;;  %v1389_v14 = vld [vmem:[%s1887_s1 + $0xa0] sm:$0xff]  ;;  %v1388_v18 = vld [vmem:[%s1887_s1 + $0x98] sm:$0xff]  ;;  %v1387_v22 = vld [vmem:[%s1887_s1 + $0x90] sm:$0xff] }
   0x8   :  { %746 = vmatpush.bf16.msra.mxu2 %v1391_v6  ;;  %v1397_v15 = vld [vmem:[%s1887_s1 + $0xe0] sm:$0xff]  ;;  %v1396_v19 = vld [vmem:[%s1887_s1 + $0xd8] sm:$0xff]  ;;  %v1395_v23 = vld [vmem:[%s1887_s1 + $0xd0] sm:$0xff] }
   0x9   :  { %765 = vmatpush.bf16.msra.mxu3 %v1399_v7  ;;  %v1370_v24 = vld [vmem:[%s1887_s1 + $0x8] sm:$0xff]  ;;  %v1369_v28 = vld [vmem:[%s1887_s1] sm:$0xff]  ;;  %v1003_v39 = vld [vmem:[%s1888_s0 + $0x2c] sm:$0xf0] }
   0xa   :  { %709 = vmatpush.bf16.msra.mxu0 %v1374_v8  ;;  %v1378_v25 = vld [vmem:[%s1887_s1 + $0x48] sm:$0xff]  ;;  %v1377_v29 = vld [vmem:[%s1887_s1 + $0x40] sm:$0xff]  ;;  %v1424_v40 = vld [vmem:[%s1887_s1 + $0x1b8] sm:$0xff] }
   0xb   :  { %728 = vmatpush.bf16.msra.mxu1 %v1382_v9  ;;  %v1386_v26 = vld [vmem:[%s1887_s1 + $0x88] sm:$0xff]  ;;  %v1385_v30 = vld [vmem:[%s1887_s1 + $0x80] sm:$0xff]  ;;  %v1408_v41 = vld [vmem:[%s1887_s1 + $0x138] sm:$0xff] }
   0xc   :  { %747 = vmatpush.bf16.msra.mxu2 %v1390_v10  ;;  %v1394_v27 = vld [vmem:[%s1887_s1 + $0xc8] sm:$0xff]  ;;  %v1393_v31 = vld [vmem:[%s1887_s1 + $0xc0] sm:$0xff]  ;;  %v1416_v46 = vld [vmem:[%s1887_s1 + $0x178] sm:$0xff] }
   0xd   :  { %766 = vmatpush.bf16.msra.mxu3 %v1398_v11  ;;  %v993_v32 = vld [vmem:[%s1888_s0] sm:$0xf]  ;;  %v1355_v33 = vld [vmem:[%s1888_s0 + $0x20] sm:$0xf0]  ;;  %v995_v35 = vld [vmem:[%s1888_s0 + $0x24] sm:$0xf0] }
   0xe   :  { %710 = vmatpush.bf16.msra.mxu0 %v1373_v12  ;;  %v1351_v34 = vld [vmem:[%s1888_s0 + $0x4] sm:$0xf]  ;;  %v1001_v36 = vld [vmem:[%s1888_s0 + $0x8] sm:$0xf]  ;;  %v1356_v37 = vld [vmem:[%s1888_s0 + $0x28] sm:$0xf0]  ;;  %v994_v42 = vor.u32 %v1355_v33, %v993_v32 }
   0xf   :  { %729 = vmatpush.bf16.msra.mxu1 %v1381_v13  ;;  %v1352_v38 = vld [vmem:[%s1888_s0 + $0xc] sm:$0xf]  ;;  %v998_v43 = vor.u32 %v1351_v34, %v995_v35  ;;  %v1002_v44 = vor.u32 %v1356_v37, %v1001_v36  ;;  %v1432_v47 = vld [vmem:[%s1887_s1 + $0x1f8] sm:$0xff]  ;;  %v1423_v48 = vld [vmem:[%s1887_s1 + $0x1b0] sm:$0xff] }
  0x10   :  { %748 = vmatpush.bf16.msra.mxu2 %v1389_v14  ;;  %v1006_v45 = vor.u32 %v1352_v38, %v1003_v39  ;;  %v1407_v49 = vld [vmem:[%s1887_s1 + $0x130] sm:$0xff]  ;;  %v1422_v52 = vld [vmem:[%s1887_s1 + $0x1a8] sm:$0xff]  ;;  %v1421_v56 = vld [vmem:[%s1887_s1 + $0x1a0] sm:$0xff] }
  0x11   :  { %767 = vmatpush.bf16.msra.mxu3 %v1397_v15  ;;  %v1415_v50 = vld [vmem:[%s1887_s1 + $0x170] sm:$0xff]  ;;  %v1406_v53 = vld [vmem:[%s1887_s1 + $0x128] sm:$0xff]  ;;  %v1405_v57 = vld [vmem:[%s1887_s1 + $0x120] sm:$0xff] }
  0x12   :  { %711 = vmatpush.bf16.msra.mxu0 %v1372_v16  ;;  %v1431_v51 = vld [vmem:[%s1887_s1 + $0x1f0] sm:$0xff]  ;;  %v1414_v54 = vld [vmem:[%s1887_s1 + $0x168] sm:$0xff]  ;;  %v1413_v58 = vld [vmem:[%s1887_s1 + $0x160] sm:$0xff] }
  0x13   :  { %730 = vmatpush.bf16.msra.mxu1 %v1380_v17  ;;  %v1430_v55 = vld [vmem:[%s1887_s1 + $0x1e8] sm:$0xff]  ;;  %v1429_v59 = vld [vmem:[%s1887_s1 + $0x1e0] sm:$0xff]  ;;  %v1031_v63 = vld [vmem:[%s1888_s0 + $0x6c] sm:$0xf0] }
  0x14   :  { %749 = vmatpush.bf16.msra.mxu2 %v1388_v18  ;;  %v1029_v60 = vld [vmem:[%s1888_s0 + $0x48] sm:$0xf]  ;;  %v1364_v61 = vld [vmem:[%s1888_s0 + $0x68] sm:$0xf0]  ;;  %v1037_v0 = vld [vmem:[%s1888_s0 + $0x50] sm:$0xf] }
  0x15   :  { %768 = vmatpush.bf16.msra.mxu3 %v1396_v19  ;;  %v1360_v62 = vld [vmem:[%s1888_s0 + $0x4c] sm:$0xf]  ;;  %v1365_v1 = vld [vmem:[%s1888_s0 + $0x70] sm:$0xf0]  ;;  %v1039_v3 = vld [vmem:[%s1888_s0 + $0x74] sm:$0xf0]  ;;  %v1030_v6 = vor.u32 %v1364_v61, %v1029_v60 }
  0x16   :  { %712 = vmatpush.bf16.msra.mxu0 %v1371_v20  ;;  %v1361_v2 = vld [vmem:[%s1888_s0 + $0x54] sm:$0xf]  ;;  %v1420_v4 = vld [vmem:[%s1887_s1 + $0x198] sm:$0xff]  ;;  %v1034_v7 = vor.u32 %v1360_v62, %v1031_v63  ;;  %v1038_v8 = vor.u32 %v1365_v1, %v1037_v0  ;;  %v1418_v16 = vld [vmem:[%s1887_s1 + $0x188] sm:$0xff] }
  0x17   :  { %731 = vmatpush.bf16.msra.mxu1 %v1379_v21  ;;  %v1404_v5 = vld [vmem:[%s1887_s1 + $0x118] sm:$0xff]  ;;  %v1042_v9 = vor.u32 %v1361_v2, %v1039_v3  ;;  %v1419_v12 = vld [vmem:[%s1887_s1 + $0x190] sm:$0xff]  ;;  %v1402_v17 = vld [vmem:[%s1887_s1 + $0x108] sm:$0xff] }
  0x18   :  { %750 = vmatpush.bf16.msra.mxu2 %v1387_v22  ;;  %v1412_v10 = vld [vmem:[%s1887_s1 + $0x158] sm:$0xff]  ;;  %v1403_v13 = vld [vmem:[%s1887_s1 + $0x110] sm:$0xff]  ;;  %v1410_v18 = vld [vmem:[%s1887_s1 + $0x148] sm:$0xff] }
  0x19   :  { %769 = vmatpush.bf16.msra.mxu3 %v1395_v23  ;;  %v1428_v11 = vld [vmem:[%s1887_s1 + $0x1d8] sm:$0xff]  ;;  %v1411_v14 = vld [vmem:[%s1887_s1 + $0x150] sm:$0xff]  ;;  %v1426_v19 = vld [vmem:[%s1887_s1 + $0x1c8] sm:$0xff] }
  0x1a   :  { %713 = vmatpush.bf16.msra.mxu0 %v1370_v24  ;;  %v1427_v15 = vld [vmem:[%s1887_s1 + $0x1d0] sm:$0xff]  ;;  %v1417_v20 = vld [vmem:[%s1887_s1 + $0x180] sm:$0xff]  ;;  %v1440_v24 = vld [vmem:[%s1887_s1 + $0x238] sm:$0xff] }
  0x1b   :  { %732 = vmatpush.bf16.msra.mxu1 %v1378_v25  ;;  %v1401_v21 = vld [vmem:[%s1887_s1 + $0x100] sm:$0xff]  ;;  %v1009_v25 = vld [vmem:[%s1888_s0 + $0x10] sm:$0xf]  ;;  %v1438_v38 = vld [vmem:[%s1887_s1 + $0x228] sm:$0xff] }
  0x1c   :  { %751 = vmatpush.bf16.msra.mxu2 %v1386_v26  ;;  %v1409_v22 = vld [vmem:[%s1887_s1 + $0x140] sm:$0xff]  ;;  %v1357_v26 = vld [vmem:[%s1888_s0 + $0x30] sm:$0xf0] }
  0x1d   :  { %770 = vmatpush.bf16.msra.mxu3 %v1394_v27  ;;  %v1425_v23 = vld [vmem:[%s1887_s1 + $0x1c0] sm:$0xff]  ;;  %v1017_v27 = vld [vmem:[%s1888_s0 + $0x18] sm:$0xf]  ;;  %v1010_v33 = vor.u32 %v1357_v26, %v1009_v25  ;;  %v1439_v34 = vld [vmem:[%s1887_s1 + $0x230] sm:$0xff] }
  0x1e   :  { %714 = vmatpush.bf16.msra.mxu0 %v1369_v28  ;;  %v1358_v28 = vld [vmem:[%s1888_s0 + $0x38] sm:$0xf0]  ;;  %v1019_v32 = vld [vmem:[%s1888_s0 + $0x3c] sm:$0xf0]  ;;  %v931_v26 = vld [vmem:[%s1889_s3 + $0x68] sm:$0xff] }
  0x1f   :  { %733 = vmatpush.bf16.msra.mxu1 %v1377_v29  ;;  %v1353_v29 = vld [vmem:[%s1888_s0 + $0x14] sm:$0xf]  ;;  %v1018_v35 = vor.u32 %v1358_v28, %v1017_v27  ;;  %v1437_v39 = vld [vmem:[%s1887_s1 + $0x220] sm:$0xff] }
  0x20   :  { %752 = vmatpush.bf16.msra.mxu2 %v1385_v30  ;;  %v1011_v30 = vld [vmem:[%s1888_s0 + $0x34] sm:$0xf0]  ;;  %v930_v28 = vld [vmem:[%s1889_s3 + $0x60] sm:$0xff] }
  0x21   :  { %771 = vmatpush.bf16.msra.mxu3 %v1393_v31  ;;  %715 = vmatmul.bf16.vlgmr.msra.gmra.mxu0 %v994_v42  ;;  %v1354_v31 = vld [vmem:[%s1888_s0 + $0x1c] sm:$0xf]  ;;  %v1014_v36 = vor.u32 %v1353_v29, %v1011_v30 }
  0x22   :  { %783 = vmatpush.bf16.msrb.mxu0 %v1408_v41  ;;  %734 = vmatmul.bf16.vlgmr.msra.gmra.mxu1 %v998_v43  ;;  %v1022_v37 = vor.u32 %v1354_v31, %v1019_v32  ;;  %v1045_v41 = vld [vmem:[%s1888_s0 + $0x58] sm:$0xf]  ;;  %v1366_v42 = vld [vmem:[%s1888_s0 + $0x78] sm:$0xf0]  ;;  %v1053_v43 = vld [vmem:[%s1888_s0 + $0x60] sm:$0xf] }
  0x23   :  { %753 = vmatmul.bf16.vlgmr.msra.gmra.mxu2 %v1002_v44  ;;  %802 = vmatpush.bf16.msrb.mxu1 %v1416_v46  ;;  %v1367_v44 = vld [vmem:[%s1888_s0 + $0x80] sm:$0xf0]  ;;  %v1047_v46 = vld [vmem:[%s1888_s0 + $0x7c] sm:$0xf0]  ;;  %v929_v32 = vld [vmem:[%s1889_s3 + $0x58] sm:$0xff] }
  0x24   :  { %821 = vmatpush.bf16.msrb.mxu2 %v1424_v40  ;;  %772 = vmatmul.bf16.vlgmr.msra.gmra.mxu3 %v1006_v45  ;;  %v1436_v40 = vld [vmem:[%s1887_s1 + $0x218] sm:$0xff] }
  0x25   :  { %840 = vmatpush.bf16.msrb.mxu3 %v1432_v47  ;;  %v1362_v45 = vld [vmem:[%s1888_s0 + $0x5c] sm:$0xf]  ;;  %v1363_v47 = vld [vmem:[%s1888_s0 + $0x64] sm:$0xf] }
  0x26   :  { %784 = vmatpush.bf16.msrb.mxu0 %v1407_v49  ;;  %v1046_v49 = vor.u32 %v1366_v42, %v1045_v41 }
  0x27   :  { %803 = vmatpush.bf16.msrb.mxu1 %v1415_v50  ;;  %v1435_v50 = vld [vmem:[%s1887_s1 + $0x210] sm:$0xff] }
  0x28   :  { %822 = vmatpush.bf16.msrb.mxu2 %v1423_v48  ;;  %v1055_v48 = vld [vmem:[%s1888_s0 + $0x84] sm:$0xf0] }
  0x29   :  { %841 = vmatpush.bf16.msrb.mxu3 %v1431_v51  ;;  %v1054_v51 = vor.u32 %v1367_v44, %v1053_v43 }
  0x2a   :  { %785 = vmatpush.bf16.msrb.mxu0 %v1406_v53  ;;  %v1058_v53 = vor.u32 %v1363_v47, %v1055_v48 }
  0x2b   :  { %804 = vmatpush.bf16.msrb.mxu1 %v1414_v54  ;;  %v1434_v54 = vld [vmem:[%s1887_s1 + $0x208] sm:$0xff] }
  0x2c   :  { %823 = vmatpush.bf16.msrb.mxu2 %v1422_v52  ;;  %v1050_v52 = vor.u32 %v1362_v45, %v1047_v46  ;;  %v926_v45 = vld [vmem:[%s1889_s3 + $0x40] sm:$0xff]  ;;  %v1452_v46 = vmov 0.0  }
  0x2d   :  { %842 = vmatpush.bf16.msrb.mxu3 %v1430_v55  ;;  %v1433_v55 = vld [vmem:[%s1887_s1 + $0x200] sm:$0xff]  ;;  %886 = vst [vmem:[%s1890_s5] sm:$0x3] %v1452_v46 }
  0x2e   :  { %786 = vmatpush.bf16.msrb.mxu0 %v1405_v57  ;;  %v1359_v57 = vld [vmem:[%s1888_s0 + $0x40] sm:$0xf0] }
  0x2f   :  { %805 = vmatpush.bf16.msrb.mxu1 %v1413_v58  ;;  %v1061_v58 = vld [vmem:[%s1888_s0 + $0x68] sm:$0xf] }
  0x30   :  { %824 = vmatpush.bf16.msrb.mxu2 %v1421_v56  ;;  %v1025_v56 = vld [vmem:[%s1888_s0 + $0x20] sm:$0xf] }
  0x31   :  { %843 = vmatpush.bf16.msrb.mxu3 %v1429_v59  ;;  %720 = vmatmul.bf16.gmra.mxu0 %v1030_v6  ;;  %v1368_v59 = vld [vmem:[%s1888_s0 + $0x88] sm:$0xf0]  ;;  %v1026_v60 = vor.u32 %v1359_v57, %v1025_v56 }
  0x32   :  { %787 = vmatpush.bf16.msrb.mxu0 %v1404_v5  ;;  %739 = vmatmul.bf16.gmra.mxu1 %v1034_v7  ;;  %v1062_v61 = vor.u32 %v1368_v59, %v1061_v58 }
  0x33   :  { %758 = vmatmul.bf16.gmra.mxu2 %v1038_v8  ;;  %806 = vmatpush.bf16.msrb.mxu1 %v1412_v10 }
  0x34   :  { %825 = vmatpush.bf16.msrb.mxu2 %v1420_v4  ;;  %777 = vmatmul.bf16.gmra.mxu3 %v1042_v9 }
  0x35   :  { %844 = vmatpush.bf16.msrb.mxu3 %v1428_v11 }
  0x36   :  { %788 = vmatpush.bf16.msrb.mxu0 %v1403_v13 }
  0x37   :  { %807 = vmatpush.bf16.msrb.mxu1 %v1411_v14 }
  0x38   :  { %826 = vmatpush.bf16.msrb.mxu2 %v1419_v12 }
  0x39   :  { %845 = vmatpush.bf16.msrb.mxu3 %v1427_v15 }
  0x3a   :  { %789 = vmatpush.bf16.msrb.mxu0 %v1402_v17 }
  0x3b   :  { %808 = vmatpush.bf16.msrb.mxu1 %v1410_v18 }
  0x3c   :  { %827 = vmatpush.bf16.msrb.mxu2 %v1418_v16 }
  0x3d   :  { %846 = vmatpush.bf16.msrb.mxu3 %v1426_v19 }
  0x3e   :  { %790 = vmatpush.bf16.msrb.mxu0 %v1401_v21 }
  0x3f   :  { %809 = vmatpush.bf16.msrb.mxu1 %v1409_v22 }
  0x40   :  { %828 = vmatpush.bf16.msrb.mxu2 %v1417_v20  ;;  %v933_v20 = vld [vmem:[%s1889_s3 + $0x78] sm:$0xff] }
  0x41   :  { %847 = vmatpush.bf16.msrb.mxu3 %v1425_v23  ;;  %791 = vmatmul.bf16.vlgmr.msrb.gmra.mxu0 %v1010_v33  ;;  %v932_v23 = vld [vmem:[%s1889_s3 + $0x70] sm:$0xff] }
  0x42   :  { %859 = vmatpush.bf16.msra.mxu0 %v1440_v24  ;;  %810 = vmatmul.bf16.vlgmr.msrb.gmra.mxu1 %v1014_v36 }
  0x43   :  { %829 = vmatmul.bf16.vlgmr.msrb.gmra.mxu2 %v1018_v35  ;;  %934 = vmatpush.msra.mxu1 %v933_v20 }
  0x44   :  { %1441 = vmatpush.bf16.msra.mxu2 %v1440_v24  ;;  %848 = vmatmul.bf16.vlgmr.msrb.gmra.mxu3 %v1022_v37  ;;  %v928_v37 = vld [vmem:[%s1889_s3 + $0x50] sm:$0xff] }
  0x45   :  { %935 = vmatpush.msra.mxu1 %v932_v23 }
  0x46   :  { %860 = vmatpush.bf16.msra.mxu0 %v1439_v34 }
  0x47   :  { %936 = vmatpush.msra.mxu1 %v931_v26 }
  0x48   :  { %1442 = vmatpush.bf16.msra.mxu2 %v1439_v34 }
  0x49   :  { %937 = vmatpush.msra.mxu1 %v930_v28 }
  0x4a   :  { %861 = vmatpush.bf16.msra.mxu0 %v1438_v38 }
  0x4b   :  { %938 = vmatpush.msra.mxu1 %v929_v32 }
  0x4c   :  { %1443 = vmatpush.bf16.msra.mxu2 %v1438_v38 }
  0x4d   :  { %939 = vmatpush.msra.mxu1 %v928_v37 }
  0x4e   :  { %862 = vmatpush.bf16.msra.mxu0 %v1437_v39 }
  0x50   :  { %1444 = vmatpush.bf16.msra.mxu2 %v1437_v39 }
  0x51   :  { %796 = vmatmul.bf16.gmra.mxu0 %v1046_v49 }
  0x52   :  { %863 = vmatpush.bf16.msra.mxu0 %v1436_v40  ;;  %815 = vmatmul.bf16.gmra.mxu1 %v1050_v52 }
  0x53   :  { %834 = vmatmul.bf16.gmra.mxu2 %v1054_v51 }
  0x54   :  { %1445 = vmatpush.bf16.msra.mxu2 %v1436_v40  ;;  %853 = vmatmul.bf16.gmra.mxu3 %v1058_v53  ;;  %v927_v40 = vld [vmem:[%s1889_s3 + $0x48] sm:$0xff] }
  0x55   :  { %940 = vmatpush.msra.mxu1 %v927_v40 }
  0x56   :  { %864 = vmatpush.bf16.msra.mxu0 %v1435_v50 }
  0x57   :  { %941 = vmatpush.msra.mxu1 %v926_v45 }
  0x58   :  { %1446 = vmatpush.bf16.msra.mxu2 %v1435_v50  ;;  %v925_v50 = vld [vmem:[%s1889_s3 + $0x38] sm:$0xff] }
  0x59   :  { %942 = vmatpush.msra.mxu1 %v925_v50 }
  0x5a   :  { %865 = vmatpush.bf16.msra.mxu0 %v1434_v54 }
  0x5c   :  { %1447 = vmatpush.bf16.msra.mxu2 %v1434_v54  ;;  %v924_v54 = vld [vmem:[%s1889_s3 + $0x30] sm:$0xff] }
  0x5d   :  { %943 = vmatpush.msra.mxu1 %v924_v54 }
  0x5e   :  { %866 = vmatpush.bf16.msra.mxu0 %v1433_v55 }
  0x60   :  { %1448 = vmatpush.bf16.msra.mxu2 %v1433_v55 }
  0x61   :  { %867 = vmatmul.bf16.vlgmr.msra.gmra.mxu0 %v1026_v60  ;;  %v923_v60 = vld [vmem:[%s1889_s3 + $0x28] sm:$0xff] }
  0x62   :  { %944 = vmatpush.msra.mxu1 %v923_v60 }
  0x63   :  { %872 = vmatmul.bf16.vlgmr.msra.gmra.mxu2 %v1062_v61 }
  0x9e   :  { %v716_v62 = vpop.f32.mrf.mxu0 }
  0x9f   :  { %v735_v63 = vpop.f32.mrf.mxu1 }
  0xa0   :  { %v736_v18 = vadd.f32 %v735_v63, %v716_v62  ;;  %v922_v63 = vld [vmem:[%s1889_s3 + $0x20] sm:$0xff] }
  0xa1   :  { %945 = vmatpush.msra.mxu1 %v922_v63 }
  0xa6   :  { %v754_v0 = vpop.f32.mrf.mxu2  ;;  %v718_v2 = vpop.f32.mrf.mxu0 }
  0xa7   :  { %v773_v1 = vpop.f32.mrf.mxu3  ;;  %v737_v3 = vpop.f32.mrf.mxu1  ;;  %v755_v21 = vadd.f32 %v754_v0, %v736_v18 }
  0xa8   :  { %v738_v30 = vadd.f32 %v737_v3, %v718_v2 }
  0xa9   :  { %v774_v27 = vadd.f32 %v773_v1, %v755_v21  ;;  %v921_v1 = vld [vmem:[%s1889_s3 + $0x18] sm:$0xff] }
  0xaa   :  { %946 = vmatpush.msra.mxu1 %v921_v1 }
  0xae   :  { %v756_v4 = vpop.f32.mrf.mxu2  ;;  %v721_v6 = vpop.f32.mrf.mxu0 }
  0xaf   :  { %v775_v5 = vpop.f32.mrf.mxu3  ;;  %v740_v7 = vpop.f32.mrf.mxu1  ;;  %v757_v34 = vadd.f32 %v756_v4, %v738_v30  ;;  %v920_v4 = vld [vmem:[%s1889_s3 + $0x10] sm:$0xff] }
  0xb0   :  { %v741_v29 = vadd.f32 %v740_v7, %v721_v6  ;;  %947 = vmatpush.msra.mxu1 %v920_v4 }
  0xb1   :  { %v776_v42 = vadd.f32 %v775_v5, %v757_v34 }
  0xb6   :  { %v759_v8 = vpop.f32.mrf.mxu2  ;;  %v723_v9 = vpop.f32.mrf.mxu0 }
  0xb7   :  { %v778_v10 = vpop.f32.mrf.mxu3  ;;  %v742_v11 = vpop.f32.mrf.mxu1  ;;  %v760_v33 = vadd.f32 %v759_v8, %v741_v29  ;;  %v919_v8 = vld [vmem:[%s1889_s3 + $0x8] sm:$0xff] }
  0xb8   :  { %v743_v47 = vadd.f32 %v742_v11, %v723_v9  ;;  %948 = vmatpush.msra.mxu1 %v919_v8 }
  0xb9   :  { %v779_v41 = vadd.f32 %v778_v10, %v760_v33 }
  0xbe   :  { %v761_v12 = vpop.f32.mrf.mxu2  ;;  %v792_v13 = vpop.f32.mrf.mxu0 }
  0xbf   :  { %v780_v14 = vpop.f32.mrf.mxu3  ;;  %v811_v15 = vpop.f32.mrf.mxu1  ;;  %v793_v31 = vadd.f32 %v792_v13, %v774_v27  ;;  %v762_v51 = vadd.f32 %v761_v12, %v743_v47  ;;  %v918_v13 = vld [vmem:[%s1889_s3] sm:$0xff] }
  0xc0   :  { %949 = vmatpush.msra.mxu1 %v918_v13 }
  0xc1   :  { %v812_v39 = vadd.f32 %v811_v15, %v793_v31  ;;  %v781_v61 = vadd.f32 %v780_v14, %v762_v51 }
  0xc6   :  { %v830_v16 = vpop.f32.mrf.mxu2  ;;  %v794_v17 = vpop.f32.mrf.mxu0 }
  0xc7   :  { %v849_v19 = vpop.f32.mrf.mxu3  ;;  %v813_v25 = vpop.f32.mrf.mxu1  ;;  %v831_v43 = vadd.f32 %v830_v16, %v812_v39  ;;  %v795_v49 = vadd.f32 %v794_v17, %v776_v42 }
  0xc9   :  { %v850_v52 = vadd.f32 %v849_v19, %v831_v43  ;;  %v814_v57 = vadd.f32 %v813_v25, %v795_v49 }
  0xce   :  { %v832_v22 = vpop.f32.mrf.mxu2  ;;  %v797_v24 = vpop.f32.mrf.mxu0 }
  0xcf   :  { %v851_v35 = vpop.f32.mrf.mxu3  ;;  %v816_v44 = vpop.f32.mrf.mxu1  ;;  %v798_v48 = vadd.f32 %v797_v24, %v779_v41  ;;  %v833_v0 = vadd.f32 %v832_v22, %v814_v57  ;;  %v911_v41 = vld [vmem:[%s1890_s5] sm:$0x3] }
  0xd0   :  { %v954_v57 = vld [vmem:[%s1892_s2] sm:$0x3] }
  0xd1   :  { %v817_v55 = vadd.f32 %v816_v44, %v798_v48  ;;  %v852_v6 = vadd.f32 %v851_v35, %v833_v0 }
  0xd6   :  { %v835_v36 = vpop.f32.mrf.mxu2  ;;  %v799_v38 = vpop.f32.mrf.mxu0 }
  0xd7   :  { %v854_v58 = vpop.f32.mrf.mxu3  ;;  %v836_v62 = vadd.f32 %v835_v36, %v817_v55  ;;  %v800_v2 = vadd.f32 %v799_v38, %v781_v61  ;;  %v818_v3 = vpop.f32.mrf.mxu1 }
  0xd9   :  { %v855_v5 = vadd.f32 %v854_v58, %v836_v62  ;;  %v819_v9 = vadd.f32 %v818_v3, %v800_v2 }
  0xde   :  { %v837_v53 = vpop.f32.mrf.mxu2  ;;  %v868_v56 = vpop.f32.mrf.mxu0 }
  0xdf   :  { %v869_v59 = vadd.f32 %v868_v56, %v850_v52  ;;  %v838_v14 = vadd.f32 %v837_v53, %v819_v9  ;;  %v856_v15 = vpop.f32.mrf.mxu3 }
  0xe1   :  { %878 = vst [vmem:[%s1891_s4] sm:$0xff] %v869_v59  ;;  %v896_v17 = vmul.f32 %v869_v59, %v869_v59  ;;  %v857_v19 = vadd.f32 %v856_v15, %v838_v14 }
  0xe6   :  { %v873_v7 = vpop.f32.mrf.mxu2  ;;  %v870_v11 = vpop.f32.mrf.mxu0 }
  0xe7   :  { %v874_v10 = vadd.f32 %v873_v7, %v855_v5  ;;  %v871_v12 = vadd.f32 %v870_v11, %v852_v6 }
  0xe9   :  { %880 = vst [vmem:[%s1891_s4 + $0x10] sm:$0xff] %v874_v10  ;;  %v897_v16 = vmul.f32 %v871_v12, %v871_v12  ;;  %v887_v18 = vadd.f32 %v871_v12, %v869_v59  ;;  %v898_v22 = vmul.f32 %v874_v10, %v874_v10 }
  0xea   :  { %879 = vst [vmem:[%s1891_s4 + $0x8] sm:$0xff] %v871_v12 }
  0xeb   :  { %v900_v20 = vadd.f32 %v897_v16, %v896_v17  ;;  %v888_v24 = vadd.f32 %v887_v18, %v874_v10 }
  0xed   :  { %v901_v27 = vadd.f32 %v900_v20, %v898_v22 }
  0xee   :  { %v875_v21 = vpop.f32.mrf.mxu2 }
  0xef   :  { %v876_v23 = vadd.f32 %v875_v21, %v857_v19 }
  0xf1   :  { %881 = vst [vmem:[%s1891_s4 + $0x18] sm:$0xff] %v876_v23  ;;  %v889_v25 = vadd.f32 %v888_v24, %v876_v23  ;;  %v899_v26 = vmul.f32 %v876_v23, %v876_v23 }
  0xf3   :  { %v890_v28 = vrot.slane %v889_v25, 4  ;;  %v902_v29 = vadd.f32 %v901_v27, %v899_v26 }
  0xf5   :  { %v891_v30 = vadd.f32 %v890_v28, %v889_v25  ;;  %v903_v31 = vrot.slane %v902_v29, 4 }
  0xf7   :  { %v892_v32 = vrot.slane %v891_v30, 2  ;;  %v904_v33 = vadd.f32 %v903_v31, %v902_v29 }
  0xf9   :  { %v893_v34 = vadd.f32 %v892_v32, %v891_v30  ;;  %v905_v35 = vrot.slane %v904_v33, 2 }
  0xfb   :  { %v894_v36 = vrot.slane %v893_v34, 1  ;;  %v906_v37 = vadd.f32 %v905_v35, %v904_v33 }
  0xfd   :  { %v907_v38 = vrot.slane %v906_v37, 1  ;;  %v895_v39 = vadd.f32 %v894_v36, %v893_v34 }
  0xff   :  { %v908_v40 = vadd.f32 %v907_v38, %v906_v37 }
 0x101   :  { %v910_v42 = vsel %vm909_vm0, %v895_v39, %v908_v40 }
 0x102   :  { %v912_v43 = vadd.f32 %v911_v41, %v910_v42 }
 0x104   :  { %913 = vst [vmem:[%s1890_s5] sm:$0x3] %v912_v43 }
 0x10b   :  { %v917_v44 = vld [vmem:[%s1890_s5] sm:$0x3] }
 0x10c   :  { %950 = vmatmul.f32.vlgmr.msra.gmra.mxu1 %v917_v44 }
 0x189   :  { %v951_v45 = vpop.f32.mrf.mxu1 }
 0x18a   :  { %v955_v46 = vmul.f32 0.0078125, %v951_v45 }
 0x18c   :  { %v956_v47 = vmul.f32 %v955_v46, %v955_v46 }
 0x18e   :  { %v958_v48 = vrot.slane %v956_v47, 7 }
 0x190   :  { %v960_v49 = vsub.f32 %v955_v46, %v958_v48 }
 0x192   :  { %v961_v50 = vadd.f32 1e-05, %v960_v49 }
 0x194   :  { %1450 = vrsqrt.f32 %v961_v50  ;;  %vm968_vm2 = vweird.f32 %v961_v50 }
 0x19a   :  { %v1451_v51 = vpop.eup %1450 }
 0x19b   :  { %v963_v52 = vmul.f32 %v1451_v51, %v961_v50  ;;  %vm969_vm1 = vweird.f32 %v1451_v51 }
 0x19c   :  { %vm970_vm3 = vmor %vm968_vm2, %vm969_vm1 }
 0x19d   :  { %v964_v53 = vmul.f32 %v1451_v51, %v963_v52 }
 0x19f   :  { %v965_v54 = vmul.f32 0.5, %v964_v53 }
 0x1a1   :  { %v966_v55 = vsub.f32 1.5, %v965_v54 }
 0x1a3   :  { %v967_v56 = vmul.f32 %v1451_v51, %v966_v55 }
 0x1a5   :  { %v971_v58 = vsel %vm970_vm3, %v1451_v51, %v967_v56 }
 0x1a6   :  { %v973_v59 = vrot.slane %v971_v58, 1 }
 0x1a8   :  { %v975_v60 = vmul.f32 %v973_v59, %v954_v57 }
 0x1aa   :  { %v976_v61 = vmul.f32 %v975_v60, %v955_v46 }
 0x1ac   :  { %v978_v62 = vrot.slane %v976_v61, 7 }
 0x1ae   :  { %v980_v63 = vsub.f32 %v954_v57, %v978_v62 }
 0x1b0   :  { %v981_v0 = vsel %vm909_vm0, %v975_v60, %v980_v63 }
 0x1b1   :  { %982 = vst [vmem:[%s1890_s5] sm:$0x3] %v981_v0 }

// kernel: encoder_forward.15
= control target key start
LH: loop header
LB: loop body
LE: loop exit
PB: predicated region body
PF: predicated region fallthrough
CT: control target
= control target key end

     0   :  { %s93_s0 = inlined_call_operand.vmem [shape: f32[8,128], index: 0, kind: input, shape index: {}]   ;;  %s94_s1 = inlined_call_operand.vmem [shape: f32[2,128], index: 1, kind: input, shape index: {}]   ;;  %s95_s2 = inlined_call_operand.vmem [shape: f32[8,128], index: 2, kind: output, shape index: {}]  }
   0x1   :  { %v11_v0 = vld [vmem:[%s94_s1] sm:$0x3] }
   0x2   :  { %v12_v1 = vld [vmem:[%s93_s0] sm:$0xff]  ;;  %v13_v2 = vperm.slane %v11_v0, 0  ;;  %v15_v3 = vperm.slane %v11_v0, 1 }
   0x4   :  { %v14_v4 = vmul.f32 %v13_v2, %v12_v1 }
   0x6   :  { %v16_v5 = vadd.f32 %v15_v3, %v14_v4 }
   0x8   :  { %v18_v6 = vmul.f32 0.70710677, %v16_v5  ;;  %v17_v41 = vmul.f32 0.5, %v16_v5 }
   0xa   :  { %v19_v7 = vmul.f32 %v18_v6, %v18_v6 }
   0xc   :  { %v20_v8 = vmin.f32 %v19_v7, 16.0 }
   0xe   :  { %v21_v9 = vmul.f32 2.1237322e-06, %v20_v8  ;;  %v32_v10 = vmul.f32 3.8918573e-05, %v20_v8 }
  0x10   :  { %v22_v11 = vadd.f32 0.00028619796, %v21_v9  ;;  %v33_v12 = vadd.f32 0.001143296, %v32_v10 }
  0x12   :  { %v23_v13 = vmul.f32 %v22_v11, %v20_v8  ;;  %v34_v14 = vmul.f32 %v33_v12, %v20_v8 }
  0x14   :  { %v24_v15 = vadd.f32 0.0036580483, %v23_v13  ;;  %v35_v16 = vadd.f32 0.014752088, %v34_v14 }
  0x16   :  { %v25_v17 = vmul.f32 %v24_v15, %v20_v8  ;;  %v36_v18 = vmul.f32 %v35_v16, %v20_v8 }
  0x18   :  { %v37_v19 = vadd.f32 0.112945676, %v36_v18  ;;  %v26_v20 = vadd.f32 0.05243302, %v25_v17 }
  0x1a   :  { %v38_v21 = vmul.f32 %v37_v19, %v20_v8  ;;  %v27_v23 = vmul.f32 %v26_v20, %v20_v8 }
  0x1c   :  { %v39_v22 = vadd.f32 0.4994258, %v38_v21  ;;  %v28_v26 = vadd.f32 0.18741608, %v27_v23 }
  0x1e   :  { %v40_v24 = vmul.f32 %v39_v22, %v20_v8  ;;  %v29_v27 = vmul.f32 %v28_v26, %v20_v8 }
  0x20   :  { %v41_v25 = vadd.f32 1.0, %v40_v24  ;;  %v30_v30 = vadd.f32 1.1283791, %v29_v27 }
  0x22   :  { %67 = vrcp.f32 %v41_v25  ;;  %v53_v31 = vand.u32 2147483648, %v41_v25  ;;  %vm47_vm0 = vweird.f32 %v41_v25  ;;  %v51_v33 = vand.u32 2147483647, %v41_v25 }
  0x23   :  { %v31_v36 = vmul.f32 %v30_v30, %v18_v6 }
  0x24   :  { %v54_v35 = vor.u32 1.1754944e-38, %v53_v31  ;;  %vm52_vm3 = vcmp.eq.f32.partialorder %v51_v33, 8.507059e+37 }
  0x28   :  { %v68_v28 = vpop.eup %67 }
  0x29   :  { %v43_v29 = vmul.f32 %v68_v28, %v41_v25  ;;  %vm48_vm1 = vweird.f32 %v68_v28 }
  0x2a   :  { %vm49_vm2 = vmor %vm47_vm0, %vm48_vm1 }
  0x2b   :  { %v44_v32 = vsub.f32 1.0, %v43_v29 }
  0x2d   :  { %v45_v34 = vmul.f32 %v68_v28, %v44_v32 }
  0x2f   :  { %v46_v37 = vadd.f32 %v68_v28, %v45_v34 }
  0x31   :  { %v50_v38 = vsel %vm49_vm2, %v68_v28, %v46_v37 }
  0x32   :  { %v55_v39 = vsel %vm52_vm3, %v54_v35, %v50_v38 }
  0x33   :  { %v56_v40 = vmul.f32 %v55_v39, %v31_v36 }
  0x35   :  { %v66_v42 = vclamps-f32 %v56_v40, 1.0 }
  0x37   :  { %v59_v43 = vadd.f32 1.0, %v66_v42 }
  0x39   :  { %v60_v44 = vmul.f32 %v59_v43, %v17_v41 }
  0x3b   :  { %61 = vst [vmem:[%s95_s2] sm:$0xff] %v60_v44 }

// kernel: encoder_forward.14
= control target key start
LH: loop header
LB: loop body
LE: loop exit
PB: predicated region body
PF: predicated region fallthrough
CT: control target
= control target key end

     0   :  { %vm768_vm0 = vcmask 1040384   ;;  %s1546_s1 = inlined_call_operand.vmem [shape: bf16[1152,128], index: 1, kind: input, shape index: {}]   ;;  %s1547_s0 = inlined_call_operand.vmem [shape: bf16[8,1152], index: 0, kind: input, shape index: {}]   ;;  %s1548_s3 = inlined_call_operand.vmem [shape: f32[128,128], index: 3, kind: input, shape index: {}]   ;;  %s1549_s5 = inlined_call_operand.vmem [shape: f32[2,128], index: 5, kind: output, shape index: {1}]   ;;  %s1550_s4 = inlined_call_operand.vmem [shape: f32[8,128], index: 4, kind: output, shape index: {0}]   ;;  %s1551_s2 = inlined_call_operand.vmem [shape: f32[2,128], index: 2, kind: input, shape index: {}]  }
   0x1   :  { %v1145_v0 = vld [vmem:[%s1546_s1 + $0x38] sm:$0xff]  ;;  %v1144_v4 = vld [vmem:[%s1546_s1 + $0x30] sm:$0xff]  ;;  %v1143_v8 = vld [vmem:[%s1546_s1 + $0x28] sm:$0xff] }
   0x2   :  { %v1161_v1 = vld [vmem:[%s1546_s1 + $0xb8] sm:$0xff]  ;;  %632 = vmatpush.bf16.msra.mxu0 %v1145_v0  ;;  %v1160_v5 = vld [vmem:[%s1546_s1 + $0xb0] sm:$0xff]  ;;  %v1159_v9 = vld [vmem:[%s1546_s1 + $0xa8] sm:$0xff] }
   0x3   :  { %v1169_v2 = vld [vmem:[%s1546_s1 + $0xf8] sm:$0xff]  ;;  %658 = vmatpush.bf16.msra.mxu2 %v1161_v1  ;;  %v1168_v6 = vld [vmem:[%s1546_s1 + $0xf0] sm:$0xff]  ;;  %v1167_v10 = vld [vmem:[%s1546_s1 + $0xe8] sm:$0xff] }
   0x4   :  { %v1153_v3 = vld [vmem:[%s1546_s1 + $0x78] sm:$0xff]  ;;  %671 = vmatpush.bf16.msra.mxu3 %v1169_v2  ;;  %v1152_v7 = vld [vmem:[%s1546_s1 + $0x70] sm:$0xff]  ;;  %v1151_v11 = vld [vmem:[%s1546_s1 + $0x68] sm:$0xff] }
   0x5   :  { %645 = vmatpush.bf16.msra.mxu1 %v1153_v3  ;;  %v1142_v12 = vld [vmem:[%s1546_s1 + $0x20] sm:$0xff]  ;;  %v1141_v16 = vld [vmem:[%s1546_s1 + $0x18] sm:$0xff]  ;;  %v1140_v20 = vld [vmem:[%s1546_s1 + $0x10] sm:$0xff] }
   0x6   :  { %633 = vmatpush.bf16.msra.mxu0 %v1144_v4  ;;  %v1158_v13 = vld [vmem:[%s1546_s1 + $0xa0] sm:$0xff]  ;;  %v1157_v17 = vld [vmem:[%s1546_s1 + $0x98] sm:$0xff]  ;;  %v1156_v21 = vld [vmem:[%s1546_s1 + $0x90] sm:$0xff] }
   0x7   :  { %659 = vmatpush.bf16.msra.mxu2 %v1160_v5  ;;  %v1166_v14 = vld [vmem:[%s1546_s1 + $0xe0] sm:$0xff]  ;;  %v1165_v18 = vld [vmem:[%s1546_s1 + $0xd8] sm:$0xff]  ;;  %v1164_v22 = vld [vmem:[%s1546_s1 + $0xd0] sm:$0xff] }
   0x8   :  { %672 = vmatpush.bf16.msra.mxu3 %v1168_v6  ;;  %v1150_v15 = vld [vmem:[%s1546_s1 + $0x60] sm:$0xff]  ;;  %v1149_v19 = vld [vmem:[%s1546_s1 + $0x58] sm:$0xff]  ;;  %v1148_v23 = vld [vmem:[%s1546_s1 + $0x50] sm:$0xff] }
   0x9   :  { %646 = vmatpush.bf16.msra.mxu1 %v1152_v7  ;;  %v1139_v24 = vld [vmem:[%s1546_s1 + $0x8] sm:$0xff]  ;;  %v19_v29 = vld [vmem:[%s1547_s0] sm:$0xff]  ;;  %v1177_v34 = vld [vmem:[%s1546_s1 + $0x138] sm:$0xff] }
   0xa   :  { %634 = vmatpush.bf16.msra.mxu0 %v1143_v8  ;;  %v1155_v25 = vld [vmem:[%s1546_s1 + $0x88] sm:$0xff]  ;;  %v1138_v30 = vld [vmem:[%s1546_s1] sm:$0xff]  ;;  %v173_v33 = vunpack.c.l.b16 %v19_v29  ;;  %v1193_v35 = vld [vmem:[%s1546_s1 + $0x1b8] sm:$0xff]  ;;  %v174_v39 = vunpack.c.h.b16 %v19_v29 }
   0xb   :  { %660 = vmatpush.bf16.msra.mxu2 %v1159_v9  ;;  %v1163_v26 = vld [vmem:[%s1546_s1 + $0xc8] sm:$0xff]  ;;  %v1154_v31 = vld [vmem:[%s1546_s1 + $0x80] sm:$0xff]  ;;  %v1201_v40 = vld [vmem:[%s1546_s1 + $0x1f8] sm:$0xff] }
   0xc   :  { %673 = vmatpush.bf16.msra.mxu3 %v1167_v10  ;;  %v1147_v27 = vld [vmem:[%s1546_s1 + $0x48] sm:$0xff]  ;;  %v1162_v36 = vld [vmem:[%s1546_s1 + $0xc0] sm:$0xff]  ;;  %v1185_v41 = vld [vmem:[%s1546_s1 + $0x178] sm:$0xff]  ;;  %v182_v43 = vpack.c.b16 %v173_v33, %v173_v33  ;;  %v183_v47 = vpack.c.b16 %v174_v39, %v174_v39 }
   0xd   :  { %647 = vmatpush.bf16.msra.mxu1 %v1151_v11  ;;  %v20_v28 = vld [vmem:[%s1547_s0 + $0x8] sm:$0xff]  ;;  %v1146_v37 = vld [vmem:[%s1546_s1 + $0x40] sm:$0xff]  ;;  %v1176_v44 = vld [vmem:[%s1546_s1 + $0x130] sm:$0xff] }
   0xe   :  { %635 = vmatpush.bf16.msra.mxu0 %v1142_v12  ;;  %v175_v32 = vunpack.c.l.b16 %v20_v28  ;;  %v176_v38 = vunpack.c.h.b16 %v20_v28  ;;  %v1192_v45 = vld [vmem:[%s1546_s1 + $0x1b0] sm:$0xff]  ;;  %v1175_v50 = vld [vmem:[%s1546_s1 + $0x128] sm:$0xff]  ;;  %v1174_v54 = vld [vmem:[%s1546_s1 + $0x120] sm:$0xff] }
   0xf   :  { %661 = vmatpush.bf16.msra.mxu2 %v1158_v13  ;;  %v1200_v48 = vld [vmem:[%s1546_s1 + $0x1f0] sm:$0xff]  ;;  %v1191_v51 = vld [vmem:[%s1546_s1 + $0x1a8] sm:$0xff]  ;;  %v1190_v55 = vld [vmem:[%s1546_s1 + $0x1a0] sm:$0xff] }
  0x10   :  { %674 = vmatpush.bf16.msra.mxu3 %v1166_v14  ;;  %v184_v42 = vpack.c.b16 %v175_v32, %v175_v32  ;;  %v185_v46 = vpack.c.b16 %v176_v38, %v176_v38  ;;  %v1184_v49 = vld [vmem:[%s1546_s1 + $0x170] sm:$0xff]  ;;  %v1199_v52 = vld [vmem:[%s1546_s1 + $0x1e8] sm:$0xff]  ;;  %v1198_v56 = vld [vmem:[%s1546_s1 + $0x1e0] sm:$0xff] }
  0x11   :  { %648 = vmatpush.bf16.msra.mxu1 %v1150_v15  ;;  %v1183_v53 = vld [vmem:[%s1546_s1 + $0x168] sm:$0xff]  ;;  %v1182_v57 = vld [vmem:[%s1546_s1 + $0x160] sm:$0xff]  ;;  %v1173_v58 = vld [vmem:[%s1546_s1 + $0x118] sm:$0xff] }
  0x12   :  { %636 = vmatpush.bf16.msra.mxu0 %v1141_v16  ;;  %v1189_v59 = vld [vmem:[%s1546_s1 + $0x198] sm:$0xff]  ;;  %v1172_v62 = vld [vmem:[%s1546_s1 + $0x110] sm:$0xff]  ;;  %v1171_v2 = vld [vmem:[%s1546_s1 + $0x108] sm:$0xff] }
  0x13   :  { %662 = vmatpush.bf16.msra.mxu2 %v1157_v17  ;;  %v1197_v60 = vld [vmem:[%s1546_s1 + $0x1d8] sm:$0xff]  ;;  %v1188_v63 = vld [vmem:[%s1546_s1 + $0x190] sm:$0xff]  ;;  %v1187_v3 = vld [vmem:[%s1546_s1 + $0x188] sm:$0xff] }
  0x14   :  { %675 = vmatpush.bf16.msra.mxu3 %v1165_v18  ;;  %v1181_v61 = vld [vmem:[%s1546_s1 + $0x158] sm:$0xff]  ;;  %v1196_v0 = vld [vmem:[%s1546_s1 + $0x1d0] sm:$0xff]  ;;  %v1195_v6 = vld [vmem:[%s1546_s1 + $0x1c8] sm:$0xff] }
  0x15   :  { %649 = vmatpush.bf16.msra.mxu1 %v1149_v19  ;;  %v1180_v1 = vld [vmem:[%s1546_s1 + $0x150] sm:$0xff]  ;;  %v22_v4 = vld [vmem:[%s1547_s0 + $0x18] sm:$0xff]  ;;  %v1179_v7 = vld [vmem:[%s1546_s1 + $0x148] sm:$0xff] }
  0x16   :  { %637 = vmatpush.bf16.msra.mxu0 %v1140_v20  ;;  %v21_v5 = vld [vmem:[%s1547_s0 + $0x10] sm:$0xff]  ;;  %v179_v8 = vunpack.c.l.b16 %v22_v4  ;;  %v1170_v10 = vld [vmem:[%s1546_s1 + $0x100] sm:$0xff]  ;;  %v1209_v12 = vld [vmem:[%s1546_s1 + $0x238] sm:$0xff]  ;;  %v180_v13 = vunpack.c.h.b16 %v22_v4 }
  0x17   :  { %663 = vmatpush.bf16.msra.mxu2 %v1156_v21  ;;  %v177_v9 = vunpack.c.l.b16 %v21_v5  ;;  %v1186_v11 = vld [vmem:[%s1546_s1 + $0x180] sm:$0xff]  ;;  %v178_v16 = vunpack.c.h.b16 %v21_v5  ;;  %v1208_v19 = vld [vmem:[%s1546_s1 + $0x230] sm:$0xff] }
  0x18   :  { %676 = vmatpush.bf16.msra.mxu3 %v1164_v22  ;;  %v1194_v14 = vld [vmem:[%s1546_s1 + $0x1c0] sm:$0xff]  ;;  %v188_v17 = vpack.c.b16 %v179_v8, %v179_v8  ;;  %v189_v20 = vpack.c.b16 %v180_v13, %v180_v13  ;;  %v1207_v22 = vld [vmem:[%s1546_s1 + $0x228] sm:$0xff]  ;;  %v791_v38 = vld [vmem:[%s1548_s3 + $0x70] sm:$0xff] }
  0x19   :  { %650 = vmatpush.bf16.msra.mxu1 %v1148_v23  ;;  %v1178_v15 = vld [vmem:[%s1546_s1 + $0x140] sm:$0xff]  ;;  %v186_v18 = vpack.c.b16 %v177_v9, %v177_v9  ;;  %v187_v21 = vpack.c.b16 %v178_v16, %v178_v16 }
  0x1a   :  { %638 = vmatpush.bf16.msra.mxu0 %v1139_v24  ;;  %v1206_v23 = vld [vmem:[%s1546_s1 + $0x220] sm:$0xff]  ;;  %v1205_v24 = vld [vmem:[%s1546_s1 + $0x218] sm:$0xff] }
  0x1b   :  { %664 = vmatpush.bf16.msra.mxu2 %v1155_v25  ;;  %v1204_v25 = vld [vmem:[%s1546_s1 + $0x210] sm:$0xff]  ;;  %v1202_v29 = vld [vmem:[%s1546_s1 + $0x200] sm:$0xff] }
  0x1c   :  { %677 = vmatpush.bf16.msra.mxu3 %v1163_v26  ;;  %v1203_v26 = vld [vmem:[%s1546_s1 + $0x208] sm:$0xff]  ;;  %v777_v4 = vld [vmem:[%s1548_s3] sm:$0xff] }
  0x1d   :  { %651 = vmatpush.bf16.msra.mxu1 %v1147_v27  ;;  %v23_v27 = vld [vmem:[%s1547_s0 + $0x20] sm:$0xf] }
  0x1e   :  { %639 = vmatpush.bf16.msra.mxu0 %v1138_v30  ;;  %v181_v28 = vunpack.c.l.b16 %v23_v27 }
  0x1f   :  { %665 = vmatpush.bf16.msra.mxu2 %v1154_v31 }
  0x20   :  { %678 = vmatpush.bf16.msra.mxu3 %v1162_v36  ;;  %v190_v30 = vpack.c.b16 %v181_v28, %v181_v28 }
  0x21   :  { %652 = vmatpush.bf16.msra.mxu1 %v1146_v37  ;;  %640 = vmatmul.bf16.vlgmr.msra.gmra.mxu0 %v182_v43  ;;  %v792_v37 = vld [vmem:[%s1548_s3 + $0x78] sm:$0xff] }
  0x22   :  { %684 = vmatpush.bf16.msrb.mxu0 %v1177_v34  ;;  %666 = vmatmul.bf16.vlgmr.msra.gmra.mxu2 %v184_v42  ;;  %v789_v42 = vld [vmem:[%s1548_s3 + $0x60] sm:$0xff] }
  0x23   :  { %710 = vmatpush.bf16.msrb.mxu2 %v1193_v35  ;;  %679 = vmatmul.bf16.vlgmr.msra.gmra.mxu3 %v185_v46  ;;  %v787_v46 = vld [vmem:[%s1548_s3 + $0x50] sm:$0xff] }
  0x24   :  { %723 = vmatpush.bf16.msrb.mxu3 %v1201_v40  ;;  %653 = vmatmul.bf16.vlgmr.msra.gmra.mxu1 %v183_v47 }
  0x25   :  { %697 = vmatpush.bf16.msrb.mxu1 %v1185_v41  ;;  %v790_v41 = vld [vmem:[%s1548_s3 + $0x68] sm:$0xff] }
  0x26   :  { %685 = vmatpush.bf16.msrb.mxu0 %v1176_v44  ;;  %v788_v44 = vld [vmem:[%s1548_s3 + $0x58] sm:$0xff] }
  0x27   :  { %711 = vmatpush.bf16.msrb.mxu2 %v1192_v45 }
  0x28   :  { %724 = vmatpush.bf16.msrb.mxu3 %v1200_v48  ;;  %v786_v48 = vld [vmem:[%s1548_s3 + $0x48] sm:$0xff] }
  0x29   :  { %698 = vmatpush.bf16.msrb.mxu1 %v1184_v49 }
  0x2a   :  { %686 = vmatpush.bf16.msrb.mxu0 %v1175_v50  ;;  %v785_v50 = vld [vmem:[%s1548_s3 + $0x40] sm:$0xff] }
  0x2b   :  { %712 = vmatpush.bf16.msrb.mxu2 %v1191_v51  ;;  %v1213_v51 = vmov 0.0  }
  0x2c   :  { %725 = vmatpush.bf16.msrb.mxu3 %v1199_v52  ;;  %754 = vst [vmem:[%s1549_s5] sm:$0x3] %v1213_v51 }
  0x2d   :  { %699 = vmatpush.bf16.msrb.mxu1 %v1183_v53 }
  0x2e   :  { %687 = vmatpush.bf16.msrb.mxu0 %v1174_v54 }
  0x2f   :  { %713 = vmatpush.bf16.msrb.mxu2 %v1190_v55  ;;  %v784_v55 = vld [vmem:[%s1548_s3 + $0x38] sm:$0xff] }
  0x30   :  { %726 = vmatpush.bf16.msrb.mxu3 %v1198_v56 }
  0x31   :  { %700 = vmatpush.bf16.msrb.mxu1 %v1182_v57  ;;  %v783_v57 = vld [vmem:[%s1548_s3 + $0x30] sm:$0xff] }
  0x32   :  { %688 = vmatpush.bf16.msrb.mxu0 %v1173_v58 }
  0x33   :  { %714 = vmatpush.bf16.msrb.mxu2 %v1189_v59  ;;  %v782_v59 = vld [vmem:[%s1548_s3 + $0x28] sm:$0xff] }
  0x34   :  { %727 = vmatpush.bf16.msrb.mxu3 %v1197_v60 }
  0x35   :  { %701 = vmatpush.bf16.msrb.mxu1 %v1181_v61  ;;  %v781_v61 = vld [vmem:[%s1548_s3 + $0x20] sm:$0xff] }
  0x36   :  { %689 = vmatpush.bf16.msrb.mxu0 %v1172_v62  ;;  %v780_v62 = vld [vmem:[%s1548_s3 + $0x18] sm:$0xff] }
  0x37   :  { %715 = vmatpush.bf16.msrb.mxu2 %v1188_v63 }
  0x38   :  { %728 = vmatpush.bf16.msrb.mxu3 %v1196_v0 }
  0x39   :  { %702 = vmatpush.bf16.msrb.mxu1 %v1180_v1  ;;  %v779_v1 = vld [vmem:[%s1548_s3 + $0x10] sm:$0xff] }
  0x3a   :  { %690 = vmatpush.bf16.msrb.mxu0 %v1171_v2  ;;  %v778_v2 = vld [vmem:[%s1548_s3 + $0x8] sm:$0xff] }
  0x3b   :  { %716 = vmatpush.bf16.msrb.mxu2 %v1187_v3 }
  0x3c   :  { %729 = vmatpush.bf16.msrb.mxu3 %v1195_v6 }
  0x3d   :  { %703 = vmatpush.bf16.msrb.mxu1 %v1179_v7 }
  0x3e   :  { %691 = vmatpush.bf16.msrb.mxu0 %v1170_v10 }
  0x3f   :  { %717 = vmatpush.bf16.msrb.mxu2 %v1186_v11 }
  0x40   :  { %730 = vmatpush.bf16.msrb.mxu3 %v1194_v14 }
  0x41   :  { %704 = vmatpush.bf16.msrb.mxu1 %v1178_v15  ;;  %692 = vmatmul.bf16.vlgmr.msrb.gmra.mxu0 %v186_v18 }
  0x42   :  { %736 = vmatpush.bf16.msra.mxu0 %v1209_v12  ;;  %718 = vmatmul.bf16.vlgmr.msrb.gmra.mxu2 %v188_v17 }
  0x43   :  { %731 = vmatmul.bf16.vlgmr.msrb.gmra.mxu3 %v189_v20 }
  0x44   :  { %705 = vmatmul.bf16.vlgmr.msrb.gmra.mxu1 %v187_v21 }
  0x45   :  { %793 = vmatpush.msra.mxu1 %v792_v37 }
  0x46   :  { %737 = vmatpush.bf16.msra.mxu0 %v1208_v19 }
  0x47   :  { %794 = vmatpush.msra.mxu1 %v791_v38 }
  0x49   :  { %795 = vmatpush.msra.mxu1 %v790_v41 }
  0x4a   :  { %738 = vmatpush.bf16.msra.mxu0 %v1207_v22 }
  0x4b   :  { %796 = vmatpush.msra.mxu1 %v789_v42 }
  0x4d   :  { %797 = vmatpush.msra.mxu1 %v788_v44 }
  0x4e   :  { %739 = vmatpush.bf16.msra.mxu0 %v1206_v23  ;;  %v770_v23 = vld [vmem:[%s1549_s5] sm:$0x3] }
  0x4f   :  { %798 = vmatpush.msra.mxu1 %v787_v46 }
  0x51   :  { %799 = vmatpush.msra.mxu1 %v786_v48 }
  0x52   :  { %740 = vmatpush.bf16.msra.mxu0 %v1205_v24 }
  0x53   :  { %800 = vmatpush.msra.mxu1 %v785_v50 }
  0x55   :  { %801 = vmatpush.msra.mxu1 %v784_v55 }
  0x56   :  { %741 = vmatpush.bf16.msra.mxu0 %v1204_v25 }
  0x57   :  { %802 = vmatpush.msra.mxu1 %v783_v57 }
  0x59   :  { %803 = vmatpush.msra.mxu1 %v782_v59 }
  0x5a   :  { %742 = vmatpush.bf16.msra.mxu0 %v1203_v26 }
  0x5b   :  { %804 = vmatpush.msra.mxu1 %v781_v61 }
  0x5d   :  { %805 = vmatpush.msra.mxu1 %v780_v62 }
  0x5e   :  { %743 = vmatpush.bf16.msra.mxu0 %v1202_v29 }
  0x5f   :  { %806 = vmatpush.msra.mxu1 %v779_v1 }
  0x61   :  { %744 = vmatmul.bf16.vlgmr.msra.gmra.mxu0 %v190_v30  ;;  %807 = vmatpush.msra.mxu1 %v778_v2 }
  0x63   :  { %808 = vmatpush.msra.mxu1 %v777_v4 }
  0x9e   :  { %v641_v31 = vpop.f32.mrf.mxu0 }
  0xa1   :  { %v654_v32 = vpop.f32.mrf.mxu1 }
  0xa2   :  { %v655_v47 = vadd.f32 %v654_v32, %v641_v31 }
  0xa5   :  { %v667_v33 = vpop.f32.mrf.mxu2 }
  0xa6   :  { %v680_v34 = vpop.f32.mrf.mxu3  ;;  %v643_v35 = vpop.f32.mrf.mxu0  ;;  %v668_v52 = vadd.f32 %v667_v33, %v655_v47 }
  0xa8   :  { %v681_v58 = vadd.f32 %v680_v34, %v668_v52 }
  0xa9   :  { %v656_v36 = vpop.f32.mrf.mxu1 }
  0xad   :  { %v669_v39 = vpop.f32.mrf.mxu2 }
  0xae   :  { %v682_v40 = vpop.f32.mrf.mxu3  ;;  %v813_v39 = vld [vmem:[%s1551_s2] sm:$0x3] }
  0xbe   :  { %v693_v43 = vpop.f32.mrf.mxu0 }
  0xbf   :  { %v694_v63 = vadd.f32 %v693_v43, %v681_v58 }
  0xc1   :  { %v706_v45 = vpop.f32.mrf.mxu1 }
  0xc2   :  { %v707_v3 = vadd.f32 %v706_v45, %v694_v63 }
  0xc5   :  { %v719_v49 = vpop.f32.mrf.mxu2 }
  0xc6   :  { %v732_v53 = vpop.f32.mrf.mxu3  ;;  %v695_v54 = vpop.f32.mrf.mxu0  ;;  %v720_v5 = vadd.f32 %v719_v49, %v707_v3 }
  0xc8   :  { %v733_v6 = vadd.f32 %v732_v53, %v720_v5 }
  0xc9   :  { %v708_v56 = vpop.f32.mrf.mxu1 }
  0xcd   :  { %v721_v60 = vpop.f32.mrf.mxu2 }
  0xce   :  { %v734_v0 = vpop.f32.mrf.mxu3 }
  0xde   :  { %v745_v7 = vpop.f32.mrf.mxu0 }
  0xdf   :  { %v746_v8 = vadd.f32 %v745_v7, %v733_v6 }
  0xe1   :  { %749 = vst [vmem:[%s1550_s4] sm:$0xff] %v746_v8  ;;  %v755_v9 = vrot.slane %v746_v8, 4  ;;  %v761_v10 = vmul.f32 %v746_v8, %v746_v8 }
  0xe3   :  { %v756_v11 = vadd.f32 %v755_v9, %v746_v8  ;;  %v762_v12 = vrot.slane %v761_v10, 4 }
  0xe5   :  { %v757_v13 = vrot.slane %v756_v11, 2  ;;  %v763_v14 = vadd.f32 %v762_v12, %v761_v10 }
  0xe6   :  { %v747_v15 = vpop.f32.mrf.mxu0 }
  0xe7   :  { %v758_v16 = vadd.f32 %v757_v13, %v756_v11  ;;  %v764_v17 = vrot.slane %v763_v14, 2 }
  0xe9   :  { %v759_v18 = vrot.slane %v758_v16, 1  ;;  %v765_v19 = vadd.f32 %v764_v17, %v763_v14 }
  0xeb   :  { %v766_v20 = vrot.slane %v765_v19, 1  ;;  %v760_v21 = vadd.f32 %v759_v18, %v758_v16 }
  0xed   :  { %v767_v22 = vadd.f32 %v766_v20, %v765_v19 }
  0xef   :  { %v769_v24 = vsel %vm768_vm0, %v760_v21, %v767_v22 }
  0xf0   :  { %v771_v25 = vadd.f32 %v770_v23, %v769_v24 }
  0xf2   :  { %772 = vst [vmem:[%s1549_s5] sm:$0x3] %v771_v25 }
  0xf9   :  { %v776_v26 = vld [vmem:[%s1549_s5] sm:$0x3] }
  0xfa   :  { %809 = vmatmul.f32.vlgmr.msra.gmra.mxu1 %v776_v26 }
 0x177   :  { %v810_v27 = vpop.f32.mrf.mxu1 }
 0x178   :  { %v814_v28 = vmul.f32 0.03125, %v810_v27 }
 0x17a   :  { %v815_v29 = vmul.f32 %v814_v28, %v814_v28 }
 0x17c   :  { %v817_v30 = vrot.slane %v815_v29, 7 }
 0x17e   :  { %v819_v31 = vsub.f32 %v814_v28, %v817_v30 }
 0x180   :  { %v820_v32 = vadd.f32 1e-05, %v819_v31 }
 0x182   :  { %1211 = vrsqrt.f32 %v820_v32  ;;  %vm827_vm2 = vweird.f32 %v820_v32 }
 0x188   :  { %v1212_v33 = vpop.eup %1211 }
 0x189   :  { %v822_v34 = vmul.f32 %v1212_v33, %v820_v32  ;;  %vm828_vm1 = vweird.f32 %v1212_v33 }
 0x18a   :  { %vm829_vm3 = vmor %vm827_vm2, %vm828_vm1 }
 0x18b   :  { %v823_v35 = vmul.f32 %v1212_v33, %v822_v34 }
 0x18d   :  { %v824_v36 = vmul.f32 0.5, %v823_v35 }
 0x18f   :  { %v825_v37 = vsub.f32 1.5, %v824_v36 }
 0x191   :  { %v826_v38 = vmul.f32 %v1212_v33, %v825_v37 }
 0x193   :  { %v830_v40 = vsel %vm829_vm3, %v1212_v33, %v826_v38 }
 0x194   :  { %v832_v41 = vrot.slane %v830_v40, 1 }
 0x196   :  { %v834_v42 = vmul.f32 %v832_v41, %v813_v39 }
 0x198   :  { %v835_v43 = vmul.f32 %v834_v42, %v814_v28 }
 0x19a   :  { %v837_v44 = vrot.slane %v835_v43, 7 }
 0x19c   :  { %v839_v45 = vsub.f32 %v813_v39, %v837_v44 }
 0x19e   :  { %v840_v46 = vsel %vm768_vm0, %v834_v42, %v839_v45 }
 0x19f   :  { %841 = vst [vmem:[%s1549_s5] sm:$0x3] %v840_v46 }

</bundles_post_ra>
